<compile_context>
chip_gen: v7x
topology: tpu7x:2x2x1
jax: 0.10.0
libtpu: 0.0.40
codegen_flags: <defaults>
</compile_context>

<pallas_src>
import functools

import jax
import jax.numpy as jnp
from jax import lax
from jax.experimental import pallas as pl
from jax.experimental.pallas import tpu as pltpu


def _round_up_128(x):
    return ((x + 127) // 128) * 128


# ----------------------------------------------------------------------------
# Pallas kernel
# ----------------------------------------------------------------------------
def encoder_query_kernel(
    x_dp_ref,                      # (T, 2D)      [x_diag | x_proc]
    wih_dp_ref, bih_dp_ref,        # (2D, 3*Hp2), (1, 3*Hp2)  fused d/p input side
    whh_dp_ref, bhhn_dp_ref,       # (Hp2, 3*Hp2),(1, Hp2)    fused d/p recurrent side
    wlin_ref, blin_ref,            # (Hp2, Hp),   (1, Hp)     linear_embedding (W^T, b)
    wih_r_ref, bih_r_ref,          # (Hp, 3*Hp),  (1, 3*Hp)   gru_representation input side
    whh_r_ref, bhhn_r_ref,         # (Hp, 3*Hp),  (1, Hp)     gru_representation recurrent side
    queries_ref,                   # out (T, Hp)  lane-padded queries
    gx_dp_ref,                     # VMEM scratch (T, 3*Hp2)  per-step input gates (d/p)
    hcat_ref,                      # VMEM scratch (T, Hp2)    relu([out_d | out_p]) rows
    gx_r_ref,                      # VMEM scratch (T, 3*Hp)   per-step input gates (repr)
):
    # Gate layout of every fused projection: [r | z | n], each gate block
    # padded to a 128-lane stride (Hp2 / Hp); inside each d/p gate block:
    # [diag (H) | proc (H) | zero pad].  bhh for r and z is pre-folded into
    # bih (wrapper); bhh_n is applied inside r * (h @ Whn + bhn), matching
    # PyTorch GRU semantics.  Padding lanes of h / hr provably stay 0.
    T = x_dp_ref.shape[0]
    Hp2 = whh_dp_ref.shape[0]
    Hp = whh_r_ref.shape[0]

    unroll = T if T <= 8 else 8

    # ---- fused diagnoses + procedures GRU ----------------------------------
    # Input-side gate projections for all timesteps at once (one MXU matmul),
    # staged in VMEM so the recurrence reads one row per step.
    gx_dp_ref[...] = (jnp.dot(x_dp_ref[...], wih_dp_ref[...],
                              preferred_element_type=jnp.float32)
                      + bih_dp_ref[...])                                # (T, 3*Hp2)

    bhhn_dp = bhhn_dp_ref[...]                                          # (1, Hp2)

    def dp_step(t, h):                                                  # h: (1, Hp2)
        gh = jnp.dot(h, whh_dp_ref[...],
                     preferred_element_type=jnp.float32)                # (1, 3*Hp2)
        gxt = gx_dp_ref[pl.ds(t, 1)]                                    # (1, 3*Hp2)
        r = jax.nn.sigmoid(gxt[:, 0:Hp2] + gh[:, 0:Hp2])
        z = jax.nn.sigmoid(gxt[:, Hp2:2 * Hp2] + gh[:, Hp2:2 * Hp2])
        n = jnp.tanh(gxt[:, 2 * Hp2:3 * Hp2]
                     + r * (gh[:, 2 * Hp2:3 * Hp2] + bhhn_dp))
        h = (1.0 - z) * n + z * h
        # ReLU fused at store time (linear_embedding starts with ReLU);
        # row t = [relu(out_d_t) | relu(out_p_t) | 0], concat is free.
        hcat_ref[pl.ds(t, 1), :] = jnp.maximum(h, 0.0)
        return h

    lax.fori_loop(0, T, dp_step, jnp.zeros((1, Hp2), jnp.float32), unroll=unroll)

    # ---- linear_embedding = Sequential(ReLU, Linear(2H, H)) ----------------
    lin = (jnp.dot(hcat_ref[...], wlin_ref[...],
                   preferred_element_type=jnp.float32) + blin_ref[...])  # (T, Hp)

    # ---- gru_representation -------------------------------------------------
    gx_r_ref[...] = (jnp.dot(lin, wih_r_ref[...],
                             preferred_element_type=jnp.float32)
                     + bih_r_ref[...])                                   # (T, 3*Hp)

    bhhn_r = bhhn_r_ref[...]                                             # (1, Hp)

    def r_step(t, h):                                                    # h: (1, Hp)
        gh = jnp.dot(h, whh_r_ref[...],
                     preferred_element_type=jnp.float32)                 # (1, 3*Hp)
        gxt = gx_r_ref[pl.ds(t, 1)]                                      # (1, 3*Hp)
        r = jax.nn.sigmoid(gxt[:, 0:Hp] + gh[:, 0:Hp])
        z = jax.nn.sigmoid(gxt[:, Hp:2 * Hp] + gh[:, Hp:2 * Hp])
        n = jnp.tanh(gxt[:, 2 * Hp:3 * Hp]
                     + r * (gh[:, 2 * Hp:3 * Hp] + bhhn_r))
        h = (1.0 - z) * n + z * h
        queries_ref[pl.ds(t, 1), :] = h   # lane-dense 128-wide store
        return h

    lax.fori_loop(0, T, r_step, jnp.zeros((1, Hp), jnp.float32), unroll=unroll)


# ----------------------------------------------------------------------------
# Wrapper-side weight packing (done ONCE, outside the per-call path)
# ----------------------------------------------------------------------------
def _pack_params(params):
    gd, gp, gr = params["gru_d"], params["gru_p"], params["gru_r"]
    H = gd["whh"].shape[-1]
    D = gd["wih"].shape[1]
    Hp2 = _round_up_128(2 * H)     # padded d/p hidden width / gate stride
    Hp = _round_up_128(H)          # padded repr hidden width / gate stride

    wih_dp = jnp.zeros((2 * D, 3 * Hp2), jnp.float32)
    whh_dp = jnp.zeros((Hp2, 3 * Hp2), jnp.float32)
    bih_dp = jnp.zeros((1, 3 * Hp2), jnp.float32)
    for g in range(3):  # gate order: r, z, n
        c = g * Hp2
        wih_dp = wih_dp.at[0:D, c:c + H].set(gd["wih"][g])
        wih_dp = wih_dp.at[D:2 * D, c + H:c + 2 * H].set(gp["wih"][g])
        whh_dp = whh_dp.at[0:H, c:c + H].set(gd["whh"][g])
        whh_dp = whh_dp.at[H:2 * H, c + H:c + 2 * H].set(gp["whh"][g])
        # Fold bhh_r / bhh_z into the input-side bias; bhh_n stays separate.
        bd = gd["bih"][g] + (gd["bhh"][g] if g < 2 else 0.0)
        bp = gp["bih"][g] + (gp["bhh"][g] if g < 2 else 0.0)
        bih_dp = bih_dp.at[:, c:c + H].set(bd)
        bih_dp = bih_dp.at[:, c + H:c + 2 * H].set(bp)
    bhhn_dp = (jnp.zeros((1, Hp2), jnp.float32)
               .at[:, 0:H].set(gd["bhh"][2])
               .at[:, H:2 * H].set(gp["bhh"][2]))

    wlin = jnp.zeros((Hp2, Hp), jnp.float32).at[0:2 * H, 0:H].set(params["wlin"])
    blin = jnp.zeros((1, Hp), jnp.float32).at[:, 0:H].set(params["blin"])

    wih_r = jnp.zeros((Hp, 3 * Hp), jnp.float32)
    whh_r = jnp.zeros((Hp, 3 * Hp), jnp.float32)
    bih_r = jnp.zeros((1, 3 * Hp), jnp.float32)
    for g in range(3):
        c = g * Hp
        wih_r = wih_r.at[0:H, c:c + H].set(gr["wih"][g])
        whh_r = whh_r.at[0:H, c:c + H].set(gr["whh"][g])
        b = gr["bih"][g] + (gr["bhh"][g] if g < 2 else 0.0)
        bih_r = bih_r.at[:, c:c + H].set(b)
    bhhn_r = jnp.zeros((1, Hp), jnp.float32).at[:, 0:H].set(gr["bhh"][2])

    return dict(wih_dp=wih_dp, bih_dp=bih_dp, whh_dp=whh_dp, bhhn_dp=bhhn_dp,
                wlin=wlin, blin=blin,
                wih_r=wih_r, bih_r=bih_r, whh_r=whh_r, bhhn_r=bhhn_r,
                H=H, Hp=Hp, Hp2=Hp2)


# ----------------------------------------------------------------------------
# Forward factory: pack weights once, return a jitted forward.
# ----------------------------------------------------------------------------
def make_encoder_forward(params):
    pk = _pack_params(params)
    emb_tbl = params["embedding_diagnoses"]
    H, Hp, Hp2 = pk["H"], pk["Hp"], pk["Hp2"]

    @jax.jit
    def forward(input_medication, input_diagnoses, input_procedures):
        # NOTE: the reference forward embeds procedures with embedding_diagnoses
        # (a bug in the original PyTorch code) -- reproduced here on purpose.
        # TODO(synk): embedding gather (data-dependent vocab lookup) stays in JAX.
        x_d = emb_tbl[input_diagnoses].mean(axis=1)        # (T, D)
        x_p = emb_tbl[input_procedures].mean(axis=1)       # (T, D)
        x_dp = jnp.concatenate([x_d, x_p], axis=-1).astype(jnp.float32)  # (T, 2D)
        T = x_dp.shape[0]

        args = (x_dp,
                pk["wih_dp"], pk["bih_dp"], pk["whh_dp"], pk["bhhn_dp"],
                pk["wlin"], pk["blin"],
                pk["wih_r"], pk["bih_r"], pk["whh_r"], pk["bhhn_r"])

        queries_pad = pl.pallas_call(
            encoder_query_kernel,
            out_shape=jax.ShapeDtypeStruct((T, Hp), jnp.float32),
            in_specs=[pl.BlockSpec(memory_space=pltpu.MemorySpace.VMEM)] * len(args),
            out_specs=pl.BlockSpec(memory_space=pltpu.MemorySpace.VMEM),
            scratch_shapes=[pltpu.VMEM((T, 3 * Hp2), jnp.float32),   # gx_dp
                            pltpu.VMEM((T, Hp2), jnp.float32),       # hcat (relu'd)
                            pltpu.VMEM((T, 3 * Hp), jnp.float32)],   # gx_r
        )(*args)

        queries = queries_pad[:, :H]                       # drop lane padding
        query = queries[-1:]                               # (1, H)
        if T > 1:
            memory_keys = queries[:-1]                     # (T-1, H)
            memory_values = input_medication[:-1]          # (T-1, ...)
        else:
            memory_keys = None
            memory_values = None
        return query, memory_keys, memory_values

    return forward


# ----------------------------------------------------------------------------
# Deterministic parameter init (shapes from the module's __init__)
# ----------------------------------------------------------------------------
def _gru_params(key, in_dim, hidden):
    k1, k2, k3, k4 = jax.random.split(key, 4)
    s = 1.0 / float(hidden) ** 0.5
    u = functools.partial(jax.random.uniform, dtype=jnp.float32, minval=-s, maxval=s)
    return dict(
        wih=u(k1, (3, in_dim, hidden)),   # stacked, pre-transposed (r, z, n)
        whh=u(k2, (3, hidden, hidden)),
        bih=u(k3, (3, 1, hidden)),
        bhh=u(k4, (3, 1, hidden)),
    )


def init_params(key, input_size, hidden_size, diagnoses_count, procedures_count):
    ks = jax.random.split(key, 8)
    init_range = 0.1
    s_lin = 1.0 / float(2 * hidden_size) ** 0.5
    return dict(
        embedding_diagnoses=jax.random.uniform(
            ks[0], (diagnoses_count, input_size), jnp.float32,
            -init_range, init_range),
        embedding_procedures=jax.random.uniform(   # created per __init__; unused in forward (bug kept)
            ks[1], (procedures_count, input_size), jnp.float32,
            -init_range, init_range),
        gru_d=_gru_params(ks[2], input_size, hidden_size),
        gru_p=_gru_params(ks[3], input_size, hidden_size),
        gru_r=_gru_params(ks[4], hidden_size, hidden_size),
        wlin=jax.random.uniform(ks[5], (2 * hidden_size, hidden_size),
                                jnp.float32, -s_lin, s_lin),
        blin=jax.random.uniform(ks[6], (1, hidden_size),
                                jnp.float32, -s_lin, s_lin),
    )


# ----------------------------------------------------------------------------
# Pure-JAX reference (for correctness check)
# ----------------------------------------------------------------------------
def _reference_forward(params, input_medication, input_diagnoses, input_procedures):
    emb_tbl = params["embedding_diagnoses"]
    x_d = emb_tbl[input_diagnoses].mean(axis=1)
    x_p = emb_tbl[input_procedures].mean(axis=1)
    H = params["gru_d"]["whh"].shape[-1]

    def run_gru(x, p):
        T = x.shape[0]
        h = jnp.zeros((1, H), jnp.float32)
        outs = []
        for t in range(T):
            xt = x[t:t + 1]
            gxr = xt @ p["wih"][0] + p["bih"][0]
            gxz = xt @ p["wih"][1] + p["bih"][1]
            gxn = xt @ p["wih"][2] + p["bih"][2]
            ghr = h @ p["whh"][0] + p["bhh"][0]
            ghz = h @ p["whh"][1] + p["bhh"][1]
            ghn = h @ p["whh"][2] + p["bhh"][2]
            r = jax.nn.sigmoid(gxr + ghr)
            z = jax.nn.sigmoid(gxz + ghz)
            n = jnp.tanh(gxn + r * ghn)
            h = (1.0 - z) * n + z * h
            outs.append(h)
        return jnp.concatenate(outs, axis=0)

    out_d = run_gru(x_d, params["gru_d"])
    out_p = run_gru(x_p, params["gru_p"])
    cat = jnp.concatenate([out_d, out_p], axis=-1)
    lin = jnp.maximum(cat, 0.0) @ params["wlin"] + params["blin"]
    queries = run_gru(lin, params["gru_r"])
    query = queries[-1:]
    memory_keys = queries[:-1] if queries.shape[0] > 1 else None
    memory_values = input_medication[:-1] if queries.shape[0] > 1 else None
    return query, memory_keys, memory_values


# ----------------------------------------------------------------------------
if __name__ == "__main__":
    key = jax.random.PRNGKey(0)
    T, C = 8, 4            # admissions (seq len), codes per admission (padded)
    D, H = 32, 32          # input_size, hidden_size
    V_DIAG, V_PROC, M = 64, 48, 5

    k_p, k_d, k_pr, k_m = jax.random.split(key, 4)
    params = init_params(k_p, D, H, V_DIAG, V_PROC)

    input_diagnoses = jax.random.randint(k_d, (T, C), 0, V_DIAG, dtype=jnp.int32)
    # forward uses the diagnoses embedding table for procedures too (bug kept),
    # so procedure indices must stay < diagnoses_count.
    input_procedures = jax.random.randint(k_pr, (T, C), 0, V_DIAG, dtype=jnp.int32)
    input_medication = jax.random.randint(k_m, (T, M), 0, 100, dtype=jnp.int32)

    forward = make_encoder_forward(params)   # packs weights once, jitted forward
    query, memory_keys, memory_values = forward(
        input_medication, input_diagnoses, input_procedures)
    jax.block_until_ready((query, memory_keys, memory_values))

    q_ref, mk_ref, mv_ref = _reference_forward(
        params, input_medication, input_diagnoses, input_procedures)
    assert query.shape == (1, H) and memory_keys.shape == (T - 1, H)
    assert memory_values.shape == (T - 1, M)
    assert jnp.allclose(query, q_ref, atol=1e-5, rtol=1e-5)
    assert jnp.allclose(memory_keys, mk_ref, atol=1e-5, rtol=1e-5)
    assert jnp.array_equal(memory_values, mv_ref)

    print("KERNEL_OK")
</pallas_src>

<mosaic_0001>
module attributes {stable_mosaic.version = 11 : i64} {
  func.func @encoder_query_kernel(%arg0: memref<8x64xf32, #tpu.memory_space<vmem>>, %arg1: memref<64x384xf32, #tpu.memory_space<vmem>>, %arg2: memref<1x384xf32, #tpu.memory_space<vmem>>, %arg3: memref<128x384xf32, #tpu.memory_space<vmem>>, %arg4: memref<1x128xf32, #tpu.memory_space<vmem>>, %arg5: memref<128x128xf32, #tpu.memory_space<vmem>>, %arg6: memref<1x128xf32, #tpu.memory_space<vmem>>, %arg7: memref<128x384xf32, #tpu.memory_space<vmem>>, %arg8: memref<1x384xf32, #tpu.memory_space<vmem>>, %arg9: memref<128x384xf32, #tpu.memory_space<vmem>>, %arg10: memref<1x128xf32, #tpu.memory_space<vmem>>, %arg11: memref<8x128xf32, #tpu.memory_space<vmem>>, %arg12: memref<8x384xf32, #tpu.memory_space<vmem>>, %arg13: memref<8x128xf32, #tpu.memory_space<vmem>>, %arg14: memref<8x384xf32, #tpu.memory_space<vmem>>) attributes {dimension_semantics = [], scalar_prefetch = 0 : i64, scratch_operands = 3 : i64, tpu.core_type = #tpu.core_type<tc>} {
    %c0 = arith.constant 0 : index
    %c0_0 = arith.constant 0 : index
    %0 = vector.load %arg0[%c0, %c0_0] : memref<8x64xf32, #tpu.memory_space<vmem>>, vector<8x64xf32>
    %c0_1 = arith.constant 0 : index
    %c0_2 = arith.constant 0 : index
    %1 = vector.load %arg1[%c0_1, %c0_2] : memref<64x384xf32, #tpu.memory_space<vmem>>, vector<64x384xf32>
    %cst = arith.constant dense<0.000000e+00> : vector<8x384xf32>
    %2 = tpu.matmul %0, %1, %cst {dimension_numbers = #tpu.dot_dimension_numbers<[1], [0], [0], [1], [0, 0, 1, 1], [], []>} : vector<8x64xf32>, vector<64x384xf32>, vector<8x384xf32> -> vector<8x384xf32>
    %c0_3 = arith.constant 0 : index
    %c0_4 = arith.constant 0 : index
    %3 = vector.load %arg2[%c0_3, %c0_4] : memref<1x384xf32, #tpu.memory_space<vmem>>, vector<1x384xf32>
    %4 = vector.broadcast %3 : vector<1x384xf32> to vector<8x384xf32>
    %5 = arith.addf %2, %4 : vector<8x384xf32>
    %c0_5 = arith.constant 0 : index
    %c0_6 = arith.constant 0 : index
    %6 = vector.load %arg12[%c0_5, %c0_6] : memref<8x384xf32, #tpu.memory_space<vmem>>, vector<8x384xf32>
    tpu.vector_store %arg12[%c0_5, %c0_6], %5 {strides = array<i32>} : memref<8x384xf32, #tpu.memory_space<vmem>>, vector<8x384xf32>,
    %c0_7 = arith.constant 0 : index
    %c0_8 = arith.constant 0 : index
    %7 = vector.load %arg4[%c0_7, %c0_8] : memref<1x128xf32, #tpu.memory_space<vmem>>, vector<1x128xf32>
    %cst_9 = arith.constant 0.000000e+00 : f32
    %8 = vector.broadcast %cst_9 : f32 to vector<1x128xf32>
    %c0_i32 = arith.constant 0 : i32
    %c0_10 = arith.constant 0 : index
    %c0_11 = arith.constant 0 : index
    %9 = vector.load %arg3[%c0_10, %c0_11] : memref<128x384xf32, #tpu.memory_space<vmem>>, vector<128x384xf32>
    %cst_12 = arith.constant dense<0.000000e+00> : vector<1x384xf32>
    %10 = tpu.matmul %8, %9, %cst_12 {dimension_numbers = #tpu.dot_dimension_numbers<[1], [0], [0], [1], [0, 0, 1, 1], [], []>} : vector<1x128xf32>, vector<128x384xf32>, vector<1x384xf32> -> vector<1x384xf32>
    %11 = arith.index_cast %c0_i32 : i32 to index
    %c0_13 = arith.constant 0 : index
    %12 = vector.load %arg12[%11, %c0_13] : memref<8x384xf32, #tpu.memory_space<vmem>>, vector<1x384xf32>
    %13 = vector.extract_strided_slice %12 {offsets = [0, 0], sizes = [1, 128], strides = [1, 1]} : vector<1x384xf32> to vector<1x128xf32>
    %14 = vector.extract_strided_slice %10 {offsets = [0, 0], sizes = [1, 128], strides = [1, 1]} : vector<1x384xf32> to vector<1x128xf32>
    %15 = arith.addf %13, %14 : vector<1x128xf32>
    %16 = arith.negf %15 : vector<1x128xf32>
    %17 = math.exp %16 : vector<1x128xf32>
    %cst_14 = arith.constant 1.000000e+00 : f32
    %18 = vector.broadcast %cst_14 : f32 to vector<1x128xf32>
    %19 = arith.addf %18, %17 : vector<1x128xf32>
    %20 = arith.divf %18, %19 : vector<1x128xf32>
    %21 = vector.extract_strided_slice %12 {offsets = [0, 128], sizes = [1, 128], strides = [1, 1]} : vector<1x384xf32> to vector<1x128xf32>
    %22 = vector.extract_strided_slice %10 {offsets = [0, 128], sizes = [1, 128], strides = [1, 1]} : vector<1x384xf32> to vector<1x128xf32>
    %23 = arith.addf %21, %22 : vector<1x128xf32>
    %24 = arith.negf %23 : vector<1x128xf32>
    %25 = math.exp %24 : vector<1x128xf32>
    %cst_15 = arith.constant 1.000000e+00 : f32
    %26 = vector.broadcast %cst_15 : f32 to vector<1x128xf32>
    %27 = arith.addf %26, %25 : vector<1x128xf32>
    %28 = arith.divf %26, %27 : vector<1x128xf32>
    %29 = vector.extract_strided_slice %12 {offsets = [0, 256], sizes = [1, 128], strides = [1, 1]} : vector<1x384xf32> to vector<1x128xf32>
    %30 = vector.extract_strided_slice %10 {offsets = [0, 256], sizes = [1, 128], strides = [1, 1]} : vector<1x384xf32> to vector<1x128xf32>
    %31 = arith.addf %30, %7 : vector<1x128xf32>
    %32 = arith.mulf %20, %31 : vector<1x128xf32>
    %33 = arith.addf %29, %32 : vector<1x128xf32>
    %34 = math.tanh %33 : vector<1x128xf32>
    %cst_16 = arith.constant 1.000000e+00 : f32
    %35 = vector.broadcast %cst_16 : f32 to vector<1x128xf32>
    %36 = arith.subf %35, %28 : vector<1x128xf32>
    %37 = arith.mulf %36, %34 : vector<1x128xf32>
    %38 = arith.mulf %28, %8 : vector<1x128xf32>
    %39 = arith.addf %37, %38 : vector<1x128xf32>
    %cst_17 = arith.constant 0.000000e+00 : f32
    %40 = vector.broadcast %cst_17 : f32 to vector<1x128xf32>
    %41 = arith.maximumf %39, %40 : vector<1x128xf32>
    %42 = arith.index_cast %c0_i32 : i32 to index
    %c0_18 = arith.constant 0 : index
    %43 = vector.load %arg13[%42, %c0_18] : memref<8x128xf32, #tpu.memory_space<vmem>>, vector<1x128xf32>
    tpu.vector_store %arg13[%42, %c0_18], %41 {strides = array<i32>} : memref<8x128xf32, #tpu.memory_space<vmem>>, vector<1x128xf32>,
    %c1_i32 = arith.constant 1 : i32
    %c0_19 = arith.constant 0 : index
    %c0_20 = arith.constant 0 : index
    %44 = vector.load %arg3[%c0_19, %c0_20] : memref<128x384xf32, #tpu.memory_space<vmem>>, vector<128x384xf32>
    %cst_21 = arith.constant dense<0.000000e+00> : vector<1x384xf32>
    %45 = tpu.matmul %39, %44, %cst_21 {dimension_numbers = #tpu.dot_dimension_numbers<[1], [0], [0], [1], [0, 0, 1, 1], [], []>} : vector<1x128xf32>, vector<128x384xf32>, vector<1x384xf32> -> vector<1x384xf32>
    %46 = arith.index_cast %c1_i32 : i32 to index
    %c0_22 = arith.constant 0 : index
    %47 = vector.load %arg12[%46, %c0_22] : memref<8x384xf32, #tpu.memory_space<vmem>>, vector<1x384xf32>
    %48 = vector.extract_strided_slice %47 {offsets = [0, 0], sizes = [1, 128], strides = [1, 1]} : vector<1x384xf32> to vector<1x128xf32>
    %49 = vector.extract_strided_slice %45 {offsets = [0, 0], sizes = [1, 128], strides = [1, 1]} : vector<1x384xf32> to vector<1x128xf32>
    %50 = arith.addf %48, %49 : vector<1x128xf32>
    %51 = arith.negf %50 : vector<1x128xf32>
    %52 = math.exp %51 : vector<1x128xf32>
    %cst_23 = arith.constant 1.000000e+00 : f32
    %53 = vector.broadcast %cst_23 : f32 to vector<1x128xf32>
    %54 = arith.addf %53, %52 : vector<1x128xf32>
    %55 = arith.divf %53, %54 : vector<1x128xf32>
    %56 = vector.extract_strided_slice %47 {offsets = [0, 128], sizes = [1, 128], strides = [1, 1]} : vector<1x384xf32> to vector<1x128xf32>
    %57 = vector.extract_strided_slice %45 {offsets = [0, 128], sizes = [1, 128], strides = [1, 1]} : vector<1x384xf32> to vector<1x128xf32>
    %58 = arith.addf %56, %57 : vector<1x128xf32>
    %59 = arith.negf %58 : vector<1x128xf32>
    %60 = math.exp %59 : vector<1x128xf32>
    %cst_24 = arith.constant 1.000000e+00 : f32
    %61 = vector.broadcast %cst_24 : f32 to vector<1x128xf32>
    %62 = arith.addf %61, %60 : vector<1x128xf32>
    %63 = arith.divf %61, %62 : vector<1x128xf32>
    %64 = vector.extract_strided_slice %47 {offsets = [0, 256], sizes = [1, 128], strides = [1, 1]} : vector<1x384xf32> to vector<1x128xf32>
    %65 = vector.extract_strided_slice %45 {offsets = [0, 256], sizes = [1, 128], strides = [1, 1]} : vector<1x384xf32> to vector<1x128xf32>
    %66 = arith.addf %65, %7 : vector<1x128xf32>
    %67 = arith.mulf %55, %66 : vector<1x128xf32>
    %68 = arith.addf %64, %67 : vector<1x128xf32>
    %69 = math.tanh %68 : vector<1x128xf32>
    %cst_25 = arith.constant 1.000000e+00 : f32
    %70 = vector.broadcast %cst_25 : f32 to vector<1x128xf32>
    %71 = arith.subf %70, %63 : vector<1x128xf32>
    %72 = arith.mulf %71, %69 : vector<1x128xf32>
    %73 = arith.mulf %63, %39 : vector<1x128xf32>
    %74 = arith.addf %72, %73 : vector<1x128xf32>
    %cst_26 = arith.constant 0.000000e+00 : f32
    %75 = vector.broadcast %cst_26 : f32 to vector<1x128xf32>
    %76 = arith.maximumf %74, %75 : vector<1x128xf32>
    %77 = arith.index_cast %c1_i32 : i32 to index
    %c0_27 = arith.constant 0 : index
    %78 = vector.load %arg13[%77, %c0_27] : memref<8x128xf32, #tpu.memory_space<vmem>>, vector<1x128xf32>
    tpu.vector_store %arg13[%77, %c0_27], %76 {strides = array<i32>} : memref<8x128xf32, #tpu.memory_space<vmem>>, vector<1x128xf32>,
    %c2_i32 = arith.constant 2 : i32
    %c0_28 = arith.constant 0 : index
    %c0_29 = arith.constant 0 : index
    %79 = vector.load %arg3[%c0_28, %c0_29] : memref<128x384xf32, #tpu.memory_space<vmem>>, vector<128x384xf32>
    %cst_30 = arith.constant dense<0.000000e+00> : vector<1x384xf32>
    %80 = tpu.matmul %74, %79, %cst_30 {dimension_numbers = #tpu.dot_dimension_numbers<[1], [0], [0], [1], [0, 0, 1, 1], [], []>} : vector<1x128xf32>, vector<128x384xf32>, vector<1x384xf32> -> vector<1x384xf32>
    %81 = arith.index_cast %c2_i32 : i32 to index
    %c0_31 = arith.constant 0 : index
    %82 = vector.load %arg12[%81, %c0_31] : memref<8x384xf32, #tpu.memory_space<vmem>>, vector<1x384xf32>
    %83 = vector.extract_strided_slice %82 {offsets = [0, 0], sizes = [1, 128], strides = [1, 1]} : vector<1x384xf32> to vector<1x128xf32>
    %84 = vector.extract_strided_slice %80 {offsets = [0, 0], sizes = [1, 128], strides = [1, 1]} : vector<1x384xf32> to vector<1x128xf32>
    %85 = arith.addf %83, %84 : vector<1x128xf32>
    %86 = arith.negf %85 : vector<1x128xf32>
    %87 = math.exp %86 : vector<1x128xf32>
    %cst_32 = arith.constant 1.000000e+00 : f32
    %88 = vector.broadcast %cst_32 : f32 to vector<1x128xf32>
    %89 = arith.addf %88, %87 : vector<1x128xf32>
    %90 = arith.divf %88, %89 : vector<1x128xf32>
    %91 = vector.extract_strided_slice %82 {offsets = [0, 128], sizes = [1, 128], strides = [1, 1]} : vector<1x384xf32> to vector<1x128xf32>
    %92 = vector.extract_strided_slice %80 {offsets = [0, 128], sizes = [1, 128], strides = [1, 1]} : vector<1x384xf32> to vector<1x128xf32>
    %93 = arith.addf %91, %92 : vector<1x128xf32>
    %94 = arith.negf %93 : vector<1x128xf32>
    %95 = math.exp %94 : vector<1x128xf32>
    %cst_33 = arith.constant 1.000000e+00 : f32
    %96 = vector.broadcast %cst_33 : f32 to vector<1x128xf32>
    %97 = arith.addf %96, %95 : vector<1x128xf32>
    %98 = arith.divf %96, %97 : vector<1x128xf32>
    %99 = vector.extract_strided_slice %82 {offsets = [0, 256], sizes = [1, 128], strides = [1, 1]} : vector<1x384xf32> to vector<1x128xf32>
    %100 = vector.extract_strided_slice %80 {offsets = [0, 256], sizes = [1, 128], strides = [1, 1]} : vector<1x384xf32> to vector<1x128xf32>
    %101 = arith.addf %100, %7 : vector<1x128xf32>
    %102 = arith.mulf %90, %101 : vector<1x128xf32>
    %103 = arith.addf %99, %102 : vector<1x128xf32>
    %104 = math.tanh %103 : vector<1x128xf32>
    %cst_34 = arith.constant 1.000000e+00 : f32
    %105 = vector.broadcast %cst_34 : f32 to vector<1x128xf32>
    %106 = arith.subf %105, %98 : vector<1x128xf32>
    %107 = arith.mulf %106, %104 : vector<1x128xf32>
    %108 = arith.mulf %98, %74 : vector<1x128xf32>
    %109 = arith.addf %107, %108 : vector<1x128xf32>
    %cst_35 = arith.constant 0.000000e+00 : f32
    %110 = vector.broadcast %cst_35 : f32 to vector<1x128xf32>
    %111 = arith.maximumf %109, %110 : vector<1x128xf32>
    %112 = arith.index_cast %c2_i32 : i32 to index
    %c0_36 = arith.constant 0 : index
    %113 = vector.load %arg13[%112, %c0_36] : memref<8x128xf32, #tpu.memory_space<vmem>>, vector<1x128xf32>
    tpu.vector_store %arg13[%112, %c0_36], %111 {strides = array<i32>} : memref<8x128xf32, #tpu.memory_space<vmem>>, vector<1x128xf32>,
    %c3_i32 = arith.constant 3 : i32
    %c0_37 = arith.constant 0 : index
    %c0_38 = arith.constant 0 : index
    %114 = vector.load %arg3[%c0_37, %c0_38] : memref<128x384xf32, #tpu.memory_space<vmem>>, vector<128x384xf32>
    %cst_39 = arith.constant dense<0.000000e+00> : vector<1x384xf32>
    %115 = tpu.matmul %109, %114, %cst_39 {dimension_numbers = #tpu.dot_dimension_numbers<[1], [0], [0], [1], [0, 0, 1, 1], [], []>} : vector<1x128xf32>, vector<128x384xf32>, vector<1x384xf32> -> vector<1x384xf32>
    %116 = arith.index_cast %c3_i32 : i32 to index
    %c0_40 = arith.constant 0 : index
    %117 = vector.load %arg12[%116, %c0_40] : memref<8x384xf32, #tpu.memory_space<vmem>>, vector<1x384xf32>
    %118 = vector.extract_strided_slice %117 {offsets = [0, 0], sizes = [1, 128], strides = [1, 1]} : vector<1x384xf32> to vector<1x128xf32>
    %119 = vector.extract_strided_slice %115 {offsets = [0, 0], sizes = [1, 128], strides = [1, 1]} : vector<1x384xf32> to vector<1x128xf32>
    %120 = arith.addf %118, %119 : vector<1x128xf32>
    %121 = arith.negf %120 : vector<1x128xf32>
    %122 = math.exp %121 : vector<1x128xf32>
    %cst_41 = arith.constant 1.000000e+00 : f32
    %123 = vector.broadcast %cst_41 : f32 to vector<1x128xf32>
    %124 = arith.addf %123, %122 : vector<1x128xf32>
    %125 = arith.divf %123, %124 : vector<1x128xf32>
    %126 = vector.extract_strided_slice %117 {offsets = [0, 128], sizes = [1, 128], strides = [1, 1]} : vector<1x384xf32> to vector<1x128xf32>
    %127 = vector.extract_strided_slice %115 {offsets = [0, 128], sizes = [1, 128], strides = [1, 1]} : vector<1x384xf32> to vector<1x128xf32>
    %128 = arith.addf %126, %127 : vector<1x128xf32>
    %129 = arith.negf %128 : vector<1x128xf32>
    %130 = math.exp %129 : vector<1x128xf32>
    %cst_42 = arith.constant 1.000000e+00 : f32
    %131 = vector.broadcast %cst_42 : f32 to vector<1x128xf32>
    %132 = arith.addf %131, %130 : vector<1x128xf32>
    %133 = arith.divf %131, %132 : vector<1x128xf32>
    %134 = vector.extract_strided_slice %117 {offsets = [0, 256], sizes = [1, 128], strides = [1, 1]} : vector<1x384xf32> to vector<1x128xf32>
    %135 = vector.extract_strided_slice %115 {offsets = [0, 256], sizes = [1, 128], strides = [1, 1]} : vector<1x384xf32> to vector<1x128xf32>
    %136 = arith.addf %135, %7 : vector<1x128xf32>
    %137 = arith.mulf %125, %136 : vector<1x128xf32>
    %138 = arith.addf %134, %137 : vector<1x128xf32>
    %139 = math.tanh %138 : vector<1x128xf32>
    %cst_43 = arith.constant 1.000000e+00 : f32
    %140 = vector.broadcast %cst_43 : f32 to vector<1x128xf32>
    %141 = arith.subf %140, %133 : vector<1x128xf32>
    %142 = arith.mulf %141, %139 : vector<1x128xf32>
    %143 = arith.mulf %133, %109 : vector<1x128xf32>
    %144 = arith.addf %142, %143 : vector<1x128xf32>
    %cst_44 = arith.constant 0.000000e+00 : f32
    %145 = vector.broadcast %cst_44 : f32 to vector<1x128xf32>
    %146 = arith.maximumf %144, %145 : vector<1x128xf32>
    %147 = arith.index_cast %c3_i32 : i32 to index
    %c0_45 = arith.constant 0 : index
    %148 = vector.load %arg13[%147, %c0_45] : memref<8x128xf32, #tpu.memory_space<vmem>>, vector<1x128xf32>
    tpu.vector_store %arg13[%147, %c0_45], %146 {strides = array<i32>} : memref<8x128xf32, #tpu.memory_space<vmem>>, vector<1x128xf32>,
    %c4_i32 = arith.constant 4 : i32
    %c0_46 = arith.constant 0 : index
    %c0_47 = arith.constant 0 : index
    %149 = vector.load %arg3[%c0_46, %c0_47] : memref<128x384xf32, #tpu.memory_space<vmem>>, vector<128x384xf32>
    %cst_48 = arith.constant dense<0.000000e+00> : vector<1x384xf32>
    %150 = tpu.matmul %144, %149, %cst_48 {dimension_numbers = #tpu.dot_dimension_numbers<[1], [0], [0], [1], [0, 0, 1, 1], [], []>} : vector<1x128xf32>, vector<128x384xf32>, vector<1x384xf32> -> vector<1x384xf32>
    %151 = arith.index_cast %c4_i32 : i32 to index
    %c0_49 = arith.constant 0 : index
    %152 = vector.load %arg12[%151, %c0_49] : memref<8x384xf32, #tpu.memory_space<vmem>>, vector<1x384xf32>
    %153 = vector.extract_strided_slice %152 {offsets = [0, 0], sizes = [1, 128], strides = [1, 1]} : vector<1x384xf32> to vector<1x128xf32>
    %154 = vector.extract_strided_slice %150 {offsets = [0, 0], sizes = [1, 128], strides = [1, 1]} : vector<1x384xf32> to vector<1x128xf32>
    %155 = arith.addf %153, %154 : vector<1x128xf32>
    %156 = arith.negf %155 : vector<1x128xf32>
    %157 = math.exp %156 : vector<1x128xf32>
    %cst_50 = arith.constant 1.000000e+00 : f32
    %158 = vector.broadcast %cst_50 : f32 to vector<1x128xf32>
    %159 = arith.addf %158, %157 : vector<1x128xf32>
    %160 = arith.divf %158, %159 : vector<1x128xf32>
    %161 = vector.extract_strided_slice %152 {offsets = [0, 128], sizes = [1, 128], strides = [1, 1]} : vector<1x384xf32> to vector<1x128xf32>
    %162 = vector.extract_strided_slice %150 {offsets = [0, 128], sizes = [1, 128], strides = [1, 1]} : vector<1x384xf32> to vector<1x128xf32>
    %163 = arith.addf %161, %162 : vector<1x128xf32>
    %164 = arith.negf %163 : vector<1x128xf32>
    %165 = math.exp %164 : vector<1x128xf32>
    %cst_51 = arith.constant 1.000000e+00 : f32
    %166 = vector.broadcast %cst_51 : f32 to vector<1x128xf32>
    %167 = arith.addf %166, %165 : vector<1x128xf32>
    %168 = arith.divf %166, %167 : vector<1x128xf32>
    %169 = vector.extract_strided_slice %152 {offsets = [0, 256], sizes = [1, 128], strides = [1, 1]} : vector<1x384xf32> to vector<1x128xf32>
    %170 = vector.extract_strided_slice %150 {offsets = [0, 256], sizes = [1, 128], strides = [1, 1]} : vector<1x384xf32> to vector<1x128xf32>
    %171 = arith.addf %170, %7 : vector<1x128xf32>
    %172 = arith.mulf %160, %171 : vector<1x128xf32>
    %173 = arith.addf %169, %172 : vector<1x128xf32>
    %174 = math.tanh %173 : vector<1x128xf32>
    %cst_52 = arith.constant 1.000000e+00 : f32
    %175 = vector.broadcast %cst_52 : f32 to vector<1x128xf32>
    %176 = arith.subf %175, %168 : vector<1x128xf32>
    %177 = arith.mulf %176, %174 : vector<1x128xf32>
    %178 = arith.mulf %168, %144 : vector<1x128xf32>
    %179 = arith.addf %177, %178 : vector<1x128xf32>
    %cst_53 = arith.constant 0.000000e+00 : f32
    %180 = vector.broadcast %cst_53 : f32 to vector<1x128xf32>
    %181 = arith.maximumf %179, %180 : vector<1x128xf32>
    %182 = arith.index_cast %c4_i32 : i32 to index
    %c0_54 = arith.constant 0 : index
    %183 = vector.load %arg13[%182, %c0_54] : memref<8x128xf32, #tpu.memory_space<vmem>>, vector<1x128xf32>
    tpu.vector_store %arg13[%182, %c0_54], %181 {strides = array<i32>} : memref<8x128xf32, #tpu.memory_space<vmem>>, vector<1x128xf32>,
    %c5_i32 = arith.constant 5 : i32
    %c0_55 = arith.constant 0 : index
    %c0_56 = arith.constant 0 : index
    %184 = vector.load %arg3[%c0_55, %c0_56] : memref<128x384xf32, #tpu.memory_space<vmem>>, vector<128x384xf32>
    %cst_57 = arith.constant dense<0.000000e+00> : vector<1x384xf32>
    %185 = tpu.matmul %179, %184, %cst_57 {dimension_numbers = #tpu.dot_dimension_numbers<[1], [0], [0], [1], [0, 0, 1, 1], [], []>} : vector<1x128xf32>, vector<128x384xf32>, vector<1x384xf32> -> vector<1x384xf32>
    %186 = arith.index_cast %c5_i32 : i32 to index
    %c0_58 = arith.constant 0 : index
    %187 = vector.load %arg12[%186, %c0_58] : memref<8x384xf32, #tpu.memory_space<vmem>>, vector<1x384xf32>
    %188 = vector.extract_strided_slice %187 {offsets = [0, 0], sizes = [1, 128], strides = [1, 1]} : vector<1x384xf32> to vector<1x128xf32>
    %189 = vector.extract_strided_slice %185 {offsets = [0, 0], sizes = [1, 128], strides = [1, 1]} : vector<1x384xf32> to vector<1x128xf32>
    %190 = arith.addf %188, %189 : vector<1x128xf32>
    %191 = arith.negf %190 : vector<1x128xf32>
    %192 = math.exp %191 : vector<1x128xf32>
    %cst_59 = arith.constant 1.000000e+00 : f32
    %193 = vector.broadcast %cst_59 : f32 to vector<1x128xf32>
    %194 = arith.addf %193, %192 : vector<1x128xf32>
    %195 = arith.divf %193, %194 : vector<1x128xf32>
    %196 = vector.extract_strided_slice %187 {offsets = [0, 128], sizes = [1, 128], strides = [1, 1]} : vector<1x384xf32> to vector<1x128xf32>
    %197 = vector.extract_strided_slice %185 {offsets = [0, 128], sizes = [1, 128], strides = [1, 1]} : vector<1x384xf32> to vector<1x128xf32>
    %198 = arith.addf %196, %197 : vector<1x128xf32>
    %199 = arith.negf %198 : vector<1x128xf32>
    %200 = math.exp %199 : vector<1x128xf32>
    %cst_60 = arith.constant 1.000000e+00 : f32
    %201 = vector.broadcast %cst_60 : f32 to vector<1x128xf32>
    %202 = arith.addf %201, %200 : vector<1x128xf32>
    %203 = arith.divf %201, %202 : vector<1x128xf32>
    %204 = vector.extract_strided_slice %187 {offsets = [0, 256], sizes = [1, 128], strides = [1, 1]} : vector<1x384xf32> to vector<1x128xf32>
    %205 = vector.extract_strided_slice %185 {offsets = [0, 256], sizes = [1, 128], strides = [1, 1]} : vector<1x384xf32> to vector<1x128xf32>
    %206 = arith.addf %205, %7 : vector<1x128xf32>
    %207 = arith.mulf %195, %206 : vector<1x128xf32>
    %208 = arith.addf %204, %207 : vector<1x128xf32>
    %209 = math.tanh %208 : vector<1x128xf32>
    %cst_61 = arith.constant 1.000000e+00 : f32
    %210 = vector.broadcast %cst_61 : f32 to vector<1x128xf32>
    %211 = arith.subf %210, %203 : vector<1x128xf32>
    %212 = arith.mulf %211, %209 : vector<1x128xf32>
    %213 = arith.mulf %203, %179 : vector<1x128xf32>
    %214 = arith.addf %212, %213 : vector<1x128xf32>
    %cst_62 = arith.constant 0.000000e+00 : f32
    %215 = vector.broadcast %cst_62 : f32 to vector<1x128xf32>
    %216 = arith.maximumf %214, %215 : vector<1x128xf32>
    %217 = arith.index_cast %c5_i32 : i32 to index
    %c0_63 = arith.constant 0 : index
    %218 = vector.load %arg13[%217, %c0_63] : memref<8x128xf32, #tpu.memory_space<vmem>>, vector<1x128xf32>
    tpu.vector_store %arg13[%217, %c0_63], %216 {strides = array<i32>} : memref<8x128xf32, #tpu.memory_space<vmem>>, vector<1x128xf32>,
    %c6_i32 = arith.constant 6 : i32
    %c0_64 = arith.constant 0 : index
    %c0_65 = arith.constant 0 : index
    %219 = vector.load %arg3[%c0_64, %c0_65] : memref<128x384xf32, #tpu.memory_space<vmem>>, vector<128x384xf32>
    %cst_66 = arith.constant dense<0.000000e+00> : vector<1x384xf32>
    %220 = tpu.matmul %214, %219, %cst_66 {dimension_numbers = #tpu.dot_dimension_numbers<[1], [0], [0], [1], [0, 0, 1, 1], [], []>} : vector<1x128xf32>, vector<128x384xf32>, vector<1x384xf32> -> vector<1x384xf32>
    %221 = arith.index_cast %c6_i32 : i32 to index
    %c0_67 = arith.constant 0 : index
    %222 = vector.load %arg12[%221, %c0_67] : memref<8x384xf32, #tpu.memory_space<vmem>>, vector<1x384xf32>
    %223 = vector.extract_strided_slice %222 {offsets = [0, 0], sizes = [1, 128], strides = [1, 1]} : vector<1x384xf32> to vector<1x128xf32>
    %224 = vector.extract_strided_slice %220 {offsets = [0, 0], sizes = [1, 128], strides = [1, 1]} : vector<1x384xf32> to vector<1x128xf32>
    %225 = arith.addf %223, %224 : vector<1x128xf32>
    %226 = arith.negf %225 : vector<1x128xf32>
    %227 = math.exp %226 : vector<1x128xf32>
    %cst_68 = arith.constant 1.000000e+00 : f32
    %228 = vector.broadcast %cst_68 : f32 to vector<1x128xf32>
    %229 = arith.addf %228, %227 : vector<1x128xf32>
    %230 = arith.divf %228, %229 : vector<1x128xf32>
    %231 = vector.extract_strided_slice %222 {offsets = [0, 128], sizes = [1, 128], strides = [1, 1]} : vector<1x384xf32> to vector<1x128xf32>
    %232 = vector.extract_strided_slice %220 {offsets = [0, 128], sizes = [1, 128], strides = [1, 1]} : vector<1x384xf32> to vector<1x128xf32>
    %233 = arith.addf %231, %232 : vector<1x128xf32>
    %234 = arith.negf %233 : vector<1x128xf32>
    %235 = math.exp %234 : vector<1x128xf32>
    %cst_69 = arith.constant 1.000000e+00 : f32
    %236 = vector.broadcast %cst_69 : f32 to vector<1x128xf32>
    %237 = arith.addf %236, %235 : vector<1x128xf32>
    %238 = arith.divf %236, %237 : vector<1x128xf32>
    %239 = vector.extract_strided_slice %222 {offsets = [0, 256], sizes = [1, 128], strides = [1, 1]} : vector<1x384xf32> to vector<1x128xf32>
    %240 = vector.extract_strided_slice %220 {offsets = [0, 256], sizes = [1, 128], strides = [1, 1]} : vector<1x384xf32> to vector<1x128xf32>
    %241 = arith.addf %240, %7 : vector<1x128xf32>
    %242 = arith.mulf %230, %241 : vector<1x128xf32>
    %243 = arith.addf %239, %242 : vector<1x128xf32>
    %244 = math.tanh %243 : vector<1x128xf32>
    %cst_70 = arith.constant 1.000000e+00 : f32
    %245 = vector.broadcast %cst_70 : f32 to vector<1x128xf32>
    %246 = arith.subf %245, %238 : vector<1x128xf32>
    %247 = arith.mulf %246, %244 : vector<1x128xf32>
    %248 = arith.mulf %238, %214 : vector<1x128xf32>
    %249 = arith.addf %247, %248 : vector<1x128xf32>
    %cst_71 = arith.constant 0.000000e+00 : f32
    %250 = vector.broadcast %cst_71 : f32 to vector<1x128xf32>
    %251 = arith.maximumf %249, %250 : vector<1x128xf32>
    %252 = arith.index_cast %c6_i32 : i32 to index
    %c0_72 = arith.constant 0 : index
    %253 = vector.load %arg13[%252, %c0_72] : memref<8x128xf32, #tpu.memory_space<vmem>>, vector<1x128xf32>
    tpu.vector_store %arg13[%252, %c0_72], %251 {strides = array<i32>} : memref<8x128xf32, #tpu.memory_space<vmem>>, vector<1x128xf32>,
    %c7_i32 = arith.constant 7 : i32
    %c0_73 = arith.constant 0 : index
    %c0_74 = arith.constant 0 : index
    %254 = vector.load %arg3[%c0_73, %c0_74] : memref<128x384xf32, #tpu.memory_space<vmem>>, vector<128x384xf32>
    %cst_75 = arith.constant dense<0.000000e+00> : vector<1x384xf32>
    %255 = tpu.matmul %249, %254, %cst_75 {dimension_numbers = #tpu.dot_dimension_numbers<[1], [0], [0], [1], [0, 0, 1, 1], [], []>} : vector<1x128xf32>, vector<128x384xf32>, vector<1x384xf32> -> vector<1x384xf32>
    %256 = arith.index_cast %c7_i32 : i32 to index
    %c0_76 = arith.constant 0 : index
    %257 = vector.load %arg12[%256, %c0_76] : memref<8x384xf32, #tpu.memory_space<vmem>>, vector<1x384xf32>
    %258 = vector.extract_strided_slice %257 {offsets = [0, 0], sizes = [1, 128], strides = [1, 1]} : vector<1x384xf32> to vector<1x128xf32>
    %259 = vector.extract_strided_slice %255 {offsets = [0, 0], sizes = [1, 128], strides = [1, 1]} : vector<1x384xf32> to vector<1x128xf32>
    %260 = arith.addf %258, %259 : vector<1x128xf32>
    %261 = arith.negf %260 : vector<1x128xf32>
    %262 = math.exp %261 : vector<1x128xf32>
    %cst_77 = arith.constant 1.000000e+00 : f32
    %263 = vector.broadcast %cst_77 : f32 to vector<1x128xf32>
    %264 = arith.addf %263, %262 : vector<1x128xf32>
    %265 = arith.divf %263, %264 : vector<1x128xf32>
    %266 = vector.extract_strided_slice %257 {offsets = [0, 128], sizes = [1, 128], strides = [1, 1]} : vector<1x384xf32> to vector<1x128xf32>
    %267 = vector.extract_strided_slice %255 {offsets = [0, 128], sizes = [1, 128], strides = [1, 1]} : vector<1x384xf32> to vector<1x128xf32>
    %268 = arith.addf %266, %267 : vector<1x128xf32>
    %269 = arith.negf %268 : vector<1x128xf32>
    %270 = math.exp %269 : vector<1x128xf32>
    %cst_78 = arith.constant 1.000000e+00 : f32
    %271 = vector.broadcast %cst_78 : f32 to vector<1x128xf32>
    %272 = arith.addf %271, %270 : vector<1x128xf32>
    %273 = arith.divf %271, %272 : vector<1x128xf32>
    %274 = vector.extract_strided_slice %257 {offsets = [0, 256], sizes = [1, 128], strides = [1, 1]} : vector<1x384xf32> to vector<1x128xf32>
    %275 = vector.extract_strided_slice %255 {offsets = [0, 256], sizes = [1, 128], strides = [1, 1]} : vector<1x384xf32> to vector<1x128xf32>
    %276 = arith.addf %275, %7 : vector<1x128xf32>
    %277 = arith.mulf %265, %276 : vector<1x128xf32>
    %278 = arith.addf %274, %277 : vector<1x128xf32>
    %279 = math.tanh %278 : vector<1x128xf32>
    %cst_79 = arith.constant 1.000000e+00 : f32
    %280 = vector.broadcast %cst_79 : f32 to vector<1x128xf32>
    %281 = arith.subf %280, %273 : vector<1x128xf32>
    %282 = arith.mulf %281, %279 : vector<1x128xf32>
    %283 = arith.mulf %273, %249 : vector<1x128xf32>
    %284 = arith.addf %282, %283 : vector<1x128xf32>
    %cst_80 = arith.constant 0.000000e+00 : f32
    %285 = vector.broadcast %cst_80 : f32 to vector<1x128xf32>
    %286 = arith.maximumf %284, %285 : vector<1x128xf32>
    %287 = arith.index_cast %c7_i32 : i32 to index
    %c0_81 = arith.constant 0 : index
    %288 = vector.load %arg13[%287, %c0_81] : memref<8x128xf32, #tpu.memory_space<vmem>>, vector<1x128xf32>
    tpu.vector_store %arg13[%287, %c0_81], %286 {strides = array<i32>} : memref<8x128xf32, #tpu.memory_space<vmem>>, vector<1x128xf32>,
    %c8_i32 = arith.constant 8 : i32
    %c0_82 = arith.constant 0 : index
    %c0_83 = arith.constant 0 : index
    %289 = vector.load %arg13[%c0_82, %c0_83] : memref<8x128xf32, #tpu.memory_space<vmem>>, vector<8x128xf32>
    %c0_84 = arith.constant 0 : index
    %c0_85 = arith.constant 0 : index
    %290 = vector.load %arg5[%c0_84, %c0_85] : memref<128x128xf32, #tpu.memory_space<vmem>>, vector<128x128xf32>
    %cst_86 = arith.constant dense<0.000000e+00> : vector<8x128xf32>
    %291 = tpu.matmul %289, %290, %cst_86 {dimension_numbers = #tpu.dot_dimension_numbers<[1], [0], [0], [1], [0, 0, 1, 1], [], []>} : vector<8x128xf32>, vector<128x128xf32>, vector<8x128xf32> -> vector<8x128xf32>
    %c0_87 = arith.constant 0 : index
    %c0_88 = arith.constant 0 : index
    %292 = vector.load %arg6[%c0_87, %c0_88] : memref<1x128xf32, #tpu.memory_space<vmem>>, vector<1x128xf32>
    %293 = vector.broadcast %292 : vector<1x128xf32> to vector<8x128xf32>
    %294 = arith.addf %291, %293 : vector<8x128xf32>
    %c0_89 = arith.constant 0 : index
    %c0_90 = arith.constant 0 : index
    %295 = vector.load %arg7[%c0_89, %c0_90] : memref<128x384xf32, #tpu.memory_space<vmem>>, vector<128x384xf32>
    %cst_91 = arith.constant dense<0.000000e+00> : vector<8x384xf32>
    %296 = tpu.matmul %294, %295, %cst_91 {dimension_numbers = #tpu.dot_dimension_numbers<[1], [0], [0], [1], [0, 0, 1, 1], [], []>} : vector<8x128xf32>, vector<128x384xf32>, vector<8x384xf32> -> vector<8x384xf32>
    %c0_92 = arith.constant 0 : index
    %c0_93 = arith.constant 0 : index
    %297 = vector.load %arg8[%c0_92, %c0_93] : memref<1x384xf32, #tpu.memory_space<vmem>>, vector<1x384xf32>
    %298 = vector.broadcast %297 : vector<1x384xf32> to vector<8x384xf32>
    %299 = arith.addf %296, %298 : vector<8x384xf32>
    %c0_94 = arith.constant 0 : index
    %c0_95 = arith.constant 0 : index
    %300 = vector.load %arg14[%c0_94, %c0_95] : memref<8x384xf32, #tpu.memory_space<vmem>>, vector<8x384xf32>
    tpu.vector_store %arg14[%c0_94, %c0_95], %299 {strides = array<i32>} : memref<8x384xf32, #tpu.memory_space<vmem>>, vector<8x384xf32>,
    %c0_96 = arith.constant 0 : index
    %c0_97 = arith.constant 0 : index
    %301 = vector.load %arg10[%c0_96, %c0_97] : memref<1x128xf32, #tpu.memory_space<vmem>>, vector<1x128xf32>
    %cst_98 = arith.constant 0.000000e+00 : f32
    %302 = vector.broadcast %cst_98 : f32 to vector<1x128xf32>
    %c0_i32_99 = arith.constant 0 : i32
    %c0_100 = arith.constant 0 : index
    %c0_101 = arith.constant 0 : index
    %303 = vector.load %arg9[%c0_100, %c0_101] : memref<128x384xf32, #tpu.memory_space<vmem>>, vector<128x384xf32>
    %cst_102 = arith.constant dense<0.000000e+00> : vector<1x384xf32>
    %304 = tpu.matmul %302, %303, %cst_102 {dimension_numbers = #tpu.dot_dimension_numbers<[1], [0], [0], [1], [0, 0, 1, 1], [], []>} : vector<1x128xf32>, vector<128x384xf32>, vector<1x384xf32> -> vector<1x384xf32>
    %305 = arith.index_cast %c0_i32_99 : i32 to index
    %c0_103 = arith.constant 0 : index
    %306 = vector.load %arg14[%305, %c0_103] : memref<8x384xf32, #tpu.memory_space<vmem>>, vector<1x384xf32>
    %307 = vector.extract_strided_slice %306 {offsets = [0, 0], sizes = [1, 128], strides = [1, 1]} : vector<1x384xf32> to vector<1x128xf32>
    %308 = vector.extract_strided_slice %304 {offsets = [0, 0], sizes = [1, 128], strides = [1, 1]} : vector<1x384xf32> to vector<1x128xf32>
    %309 = arith.addf %307, %308 : vector<1x128xf32>
    %310 = arith.negf %309 : vector<1x128xf32>
    %311 = math.exp %310 : vector<1x128xf32>
    %cst_104 = arith.constant 1.000000e+00 : f32
    %312 = vector.broadcast %cst_104 : f32 to vector<1x128xf32>
    %313 = arith.addf %312, %311 : vector<1x128xf32>
    %314 = arith.divf %312, %313 : vector<1x128xf32>
    %315 = vector.extract_strided_slice %306 {offsets = [0, 128], sizes = [1, 128], strides = [1, 1]} : vector<1x384xf32> to vector<1x128xf32>
    %316 = vector.extract_strided_slice %304 {offsets = [0, 128], sizes = [1, 128], strides = [1, 1]} : vector<1x384xf32> to vector<1x128xf32>
    %317 = arith.addf %315, %316 : vector<1x128xf32>
    %318 = arith.negf %317 : vector<1x128xf32>
    %319 = math.exp %318 : vector<1x128xf32>
    %cst_105 = arith.constant 1.000000e+00 : f32
    %320 = vector.broadcast %cst_105 : f32 to vector<1x128xf32>
    %321 = arith.addf %320, %319 : vector<1x128xf32>
    %322 = arith.divf %320, %321 : vector<1x128xf32>
    %323 = vector.extract_strided_slice %306 {offsets = [0, 256], sizes = [1, 128], strides = [1, 1]} : vector<1x384xf32> to vector<1x128xf32>
    %324 = vector.extract_strided_slice %304 {offsets = [0, 256], sizes = [1, 128], strides = [1, 1]} : vector<1x384xf32> to vector<1x128xf32>
    %325 = arith.addf %324, %301 : vector<1x128xf32>
    %326 = arith.mulf %314, %325 : vector<1x128xf32>
    %327 = arith.addf %323, %326 : vector<1x128xf32>
    %328 = math.tanh %327 : vector<1x128xf32>
    %cst_106 = arith.constant 1.000000e+00 : f32
    %329 = vector.broadcast %cst_106 : f32 to vector<1x128xf32>
    %330 = arith.subf %329, %322 : vector<1x128xf32>
    %331 = arith.mulf %330, %328 : vector<1x128xf32>
    %332 = arith.mulf %322, %302 : vector<1x128xf32>
    %333 = arith.addf %331, %332 : vector<1x128xf32>
    %334 = arith.index_cast %c0_i32_99 : i32 to index
    %c0_107 = arith.constant 0 : index
    %335 = vector.load %arg11[%334, %c0_107] : memref<8x128xf32, #tpu.memory_space<vmem>>, vector<1x128xf32>
    tpu.vector_store %arg11[%334, %c0_107], %333 {strides = array<i32>} : memref<8x128xf32, #tpu.memory_space<vmem>>, vector<1x128xf32>,
    %c1_i32_108 = arith.constant 1 : i32
    %c0_109 = arith.constant 0 : index
    %c0_110 = arith.constant 0 : index
    %336 = vector.load %arg9[%c0_109, %c0_110] : memref<128x384xf32, #tpu.memory_space<vmem>>, vector<128x384xf32>
    %cst_111 = arith.constant dense<0.000000e+00> : vector<1x384xf32>
    %337 = tpu.matmul %333, %336, %cst_111 {dimension_numbers = #tpu.dot_dimension_numbers<[1], [0], [0], [1], [0, 0, 1, 1], [], []>} : vector<1x128xf32>, vector<128x384xf32>, vector<1x384xf32> -> vector<1x384xf32>
    %338 = arith.index_cast %c1_i32_108 : i32 to index
    %c0_112 = arith.constant 0 : index
    %339 = vector.load %arg14[%338, %c0_112] : memref<8x384xf32, #tpu.memory_space<vmem>>, vector<1x384xf32>
    %340 = vector.extract_strided_slice %339 {offsets = [0, 0], sizes = [1, 128], strides = [1, 1]} : vector<1x384xf32> to vector<1x128xf32>
    %341 = vector.extract_strided_slice %337 {offsets = [0, 0], sizes = [1, 128], strides = [1, 1]} : vector<1x384xf32> to vector<1x128xf32>
    %342 = arith.addf %340, %341 : vector<1x128xf32>
    %343 = arith.negf %342 : vector<1x128xf32>
    %344 = math.exp %343 : vector<1x128xf32>
    %cst_113 = arith.constant 1.000000e+00 : f32
    %345 = vector.broadcast %cst_113 : f32 to vector<1x128xf32>
    %346 = arith.addf %345, %344 : vector<1x128xf32>
    %347 = arith.divf %345, %346 : vector<1x128xf32>
    %348 = vector.extract_strided_slice %339 {offsets = [0, 128], sizes = [1, 128], strides = [1, 1]} : vector<1x384xf32> to vector<1x128xf32>
    %349 = vector.extract_strided_slice %337 {offsets = [0, 128], sizes = [1, 128], strides = [1, 1]} : vector<1x384xf32> to vector<1x128xf32>
    %350 = arith.addf %348, %349 : vector<1x128xf32>
    %351 = arith.negf %350 : vector<1x128xf32>
    %352 = math.exp %351 : vector<1x128xf32>
    %cst_114 = arith.constant 1.000000e+00 : f32
    %353 = vector.broadcast %cst_114 : f32 to vector<1x128xf32>
    %354 = arith.addf %353, %352 : vector<1x128xf32>
    %355 = arith.divf %353, %354 : vector<1x128xf32>
    %356 = vector.extract_strided_slice %339 {offsets = [0, 256], sizes = [1, 128], strides = [1, 1]} : vector<1x384xf32> to vector<1x128xf32>
    %357 = vector.extract_strided_slice %337 {offsets = [0, 256], sizes = [1, 128], strides = [1, 1]} : vector<1x384xf32> to vector<1x128xf32>
    %358 = arith.addf %357, %301 : vector<1x128xf32>
    %359 = arith.mulf %347, %358 : vector<1x128xf32>
    %360 = arith.addf %356, %359 : vector<1x128xf32>
    %361 = math.tanh %360 : vector<1x128xf32>
    %cst_115 = arith.constant 1.000000e+00 : f32
    %362 = vector.broadcast %cst_115 : f32 to vector<1x128xf32>
    %363 = arith.subf %362, %355 : vector<1x128xf32>
    %364 = arith.mulf %363, %361 : vector<1x128xf32>
    %365 = arith.mulf %355, %333 : vector<1x128xf32>
    %366 = arith.addf %364, %365 : vector<1x128xf32>
    %367 = arith.index_cast %c1_i32_108 : i32 to index
    %c0_116 = arith.constant 0 : index
    %368 = vector.load %arg11[%367, %c0_116] : memref<8x128xf32, #tpu.memory_space<vmem>>, vector<1x128xf32>
    tpu.vector_store %arg11[%367, %c0_116], %366 {strides = array<i32>} : memref<8x128xf32, #tpu.memory_space<vmem>>, vector<1x128xf32>,
    %c2_i32_117 = arith.constant 2 : i32
    %c0_118 = arith.constant 0 : index
    %c0_119 = arith.constant 0 : index
    %369 = vector.load %arg9[%c0_118, %c0_119] : memref<128x384xf32, #tpu.memory_space<vmem>>, vector<128x384xf32>
    %cst_120 = arith.constant dense<0.000000e+00> : vector<1x384xf32>
    %370 = tpu.matmul %366, %369, %cst_120 {dimension_numbers = #tpu.dot_dimension_numbers<[1], [0], [0], [1], [0, 0, 1, 1], [], []>} : vector<1x128xf32>, vector<128x384xf32>, vector<1x384xf32> -> vector<1x384xf32>
    %371 = arith.index_cast %c2_i32_117 : i32 to index
    %c0_121 = arith.constant 0 : index
    %372 = vector.load %arg14[%371, %c0_121] : memref<8x384xf32, #tpu.memory_space<vmem>>, vector<1x384xf32>
    %373 = vector.extract_strided_slice %372 {offsets = [0, 0], sizes = [1, 128], strides = [1, 1]} : vector<1x384xf32> to vector<1x128xf32>
    %374 = vector.extract_strided_slice %370 {offsets = [0, 0], sizes = [1, 128], strides = [1, 1]} : vector<1x384xf32> to vector<1x128xf32>
    %375 = arith.addf %373, %374 : vector<1x128xf32>
    %376 = arith.negf %375 : vector<1x128xf32>
    %377 = math.exp %376 : vector<1x128xf32>
    %cst_122 = arith.constant 1.000000e+00 : f32
    %378 = vector.broadcast %cst_122 : f32 to vector<1x128xf32>
    %379 = arith.addf %378, %377 : vector<1x128xf32>
    %380 = arith.divf %378, %379 : vector<1x128xf32>
    %381 = vector.extract_strided_slice %372 {offsets = [0, 128], sizes = [1, 128], strides = [1, 1]} : vector<1x384xf32> to vector<1x128xf32>
    %382 = vector.extract_strided_slice %370 {offsets = [0, 128], sizes = [1, 128], strides = [1, 1]} : vector<1x384xf32> to vector<1x128xf32>
    %383 = arith.addf %381, %382 : vector<1x128xf32>
    %384 = arith.negf %383 : vector<1x128xf32>
    %385 = math.exp %384 : vector<1x128xf32>
    %cst_123 = arith.constant 1.000000e+00 : f32
    %386 = vector.broadcast %cst_123 : f32 to vector<1x128xf32>
    %387 = arith.addf %386, %385 : vector<1x128xf32>
    %388 = arith.divf %386, %387 : vector<1x128xf32>
    %389 = vector.extract_strided_slice %372 {offsets = [0, 256], sizes = [1, 128], strides = [1, 1]} : vector<1x384xf32> to vector<1x128xf32>
    %390 = vector.extract_strided_slice %370 {offsets = [0, 256], sizes = [1, 128], strides = [1, 1]} : vector<1x384xf32> to vector<1x128xf32>
    %391 = arith.addf %390, %301 : vector<1x128xf32>
    %392 = arith.mulf %380, %391 : vector<1x128xf32>
    %393 = arith.addf %389, %392 : vector<1x128xf32>
    %394 = math.tanh %393 : vector<1x128xf32>
    %cst_124 = arith.constant 1.000000e+00 : f32
    %395 = vector.broadcast %cst_124 : f32 to vector<1x128xf32>
    %396 = arith.subf %395, %388 : vector<1x128xf32>
    %397 = arith.mulf %396, %394 : vector<1x128xf32>
    %398 = arith.mulf %388, %366 : vector<1x128xf32>
    %399 = arith.addf %397, %398 : vector<1x128xf32>
    %400 = arith.index_cast %c2_i32_117 : i32 to index
    %c0_125 = arith.constant 0 : index
    %401 = vector.load %arg11[%400, %c0_125] : memref<8x128xf32, #tpu.memory_space<vmem>>, vector<1x128xf32>
    tpu.vector_store %arg11[%400, %c0_125], %399 {strides = array<i32>} : memref<8x128xf32, #tpu.memory_space<vmem>>, vector<1x128xf32>,
    %c3_i32_126 = arith.constant 3 : i32
    %c0_127 = arith.constant 0 : index
    %c0_128 = arith.constant 0 : index
    %402 = vector.load %arg9[%c0_127, %c0_128] : memref<128x384xf32, #tpu.memory_space<vmem>>, vector<128x384xf32>
    %cst_129 = arith.constant dense<0.000000e+00> : vector<1x384xf32>
    %403 = tpu.matmul %399, %402, %cst_129 {dimension_numbers = #tpu.dot_dimension_numbers<[1], [0], [0], [1], [0, 0, 1, 1], [], []>} : vector<1x128xf32>, vector<128x384xf32>, vector<1x384xf32> -> vector<1x384xf32>
    %404 = arith.index_cast %c3_i32_126 : i32 to index
    %c0_130 = arith.constant 0 : index
    %405 = vector.load %arg14[%404, %c0_130] : memref<8x384xf32, #tpu.memory_space<vmem>>, vector<1x384xf32>
    %406 = vector.extract_strided_slice %405 {offsets = [0, 0], sizes = [1, 128], strides = [1, 1]} : vector<1x384xf32> to vector<1x128xf32>
    %407 = vector.extract_strided_slice %403 {offsets = [0, 0], sizes = [1, 128], strides = [1, 1]} : vector<1x384xf32> to vector<1x128xf32>
    %408 = arith.addf %406, %407 : vector<1x128xf32>
    %409 = arith.negf %408 : vector<1x128xf32>
    %410 = math.exp %409 : vector<1x128xf32>
    %cst_131 = arith.constant 1.000000e+00 : f32
    %411 = vector.broadcast %cst_131 : f32 to vector<1x128xf32>
    %412 = arith.addf %411, %410 : vector<1x128xf32>
    %413 = arith.divf %411, %412 : vector<1x128xf32>
    %414 = vector.extract_strided_slice %405 {offsets = [0, 128], sizes = [1, 128], strides = [1, 1]} : vector<1x384xf32> to vector<1x128xf32>
    %415 = vector.extract_strided_slice %403 {offsets = [0, 128], sizes = [1, 128], strides = [1, 1]} : vector<1x384xf32> to vector<1x128xf32>
    %416 = arith.addf %414, %415 : vector<1x128xf32>
    %417 = arith.negf %416 : vector<1x128xf32>
    %418 = math.exp %417 : vector<1x128xf32>
    %cst_132 = arith.constant 1.000000e+00 : f32
    %419 = vector.broadcast %cst_132 : f32 to vector<1x128xf32>
    %420 = arith.addf %419, %418 : vector<1x128xf32>
    %421 = arith.divf %419, %420 : vector<1x128xf32>
    %422 = vector.extract_strided_slice %405 {offsets = [0, 256], sizes = [1, 128], strides = [1, 1]} : vector<1x384xf32> to vector<1x128xf32>
    %423 = vector.extract_strided_slice %403 {offsets = [0, 256], sizes = [1, 128], strides = [1, 1]} : vector<1x384xf32> to vector<1x128xf32>
    %424 = arith.addf %423, %301 : vector<1x128xf32>
    %425 = arith.mulf %413, %424 : vector<1x128xf32>
    %426 = arith.addf %422, %425 : vector<1x128xf32>
    %427 = math.tanh %426 : vector<1x128xf32>
    %cst_133 = arith.constant 1.000000e+00 : f32
    %428 = vector.broadcast %cst_133 : f32 to vector<1x128xf32>
    %429 = arith.subf %428, %421 : vector<1x128xf32>
    %430 = arith.mulf %429, %427 : vector<1x128xf32>
    %431 = arith.mulf %421, %399 : vector<1x128xf32>
    %432 = arith.addf %430, %431 : vector<1x128xf32>
    %433 = arith.index_cast %c3_i32_126 : i32 to index
    %c0_134 = arith.constant 0 : index
    %434 = vector.load %arg11[%433, %c0_134] : memref<8x128xf32, #tpu.memory_space<vmem>>, vector<1x128xf32>
    tpu.vector_store %arg11[%433, %c0_134], %432 {strides = array<i32>} : memref<8x128xf32, #tpu.memory_space<vmem>>, vector<1x128xf32>,
    %c4_i32_135 = arith.constant 4 : i32
    %c0_136 = arith.constant 0 : index
    %c0_137 = arith.constant 0 : index
    %435 = vector.load %arg9[%c0_136, %c0_137] : memref<128x384xf32, #tpu.memory_space<vmem>>, vector<128x384xf32>
    %cst_138 = arith.constant dense<0.000000e+00> : vector<1x384xf32>
    %436 = tpu.matmul %432, %435, %cst_138 {dimension_numbers = #tpu.dot_dimension_numbers<[1], [0], [0], [1], [0, 0, 1, 1], [], []>} : vector<1x128xf32>, vector<128x384xf32>, vector<1x384xf32> -> vector<1x384xf32>
    %437 = arith.index_cast %c4_i32_135 : i32 to index
    %c0_139 = arith.constant 0 : index
    %438 = vector.load %arg14[%437, %c0_139] : memref<8x384xf32, #tpu.memory_space<vmem>>, vector<1x384xf32>
    %439 = vector.extract_strided_slice %438 {offsets = [0, 0], sizes = [1, 128], strides = [1, 1]} : vector<1x384xf32> to vector<1x128xf32>
    %440 = vector.extract_strided_slice %436 {offsets = [0, 0], sizes = [1, 128], strides = [1, 1]} : vector<1x384xf32> to vector<1x128xf32>
    %441 = arith.addf %439, %440 : vector<1x128xf32>
    %442 = arith.negf %441 : vector<1x128xf32>
    %443 = math.exp %442 : vector<1x128xf32>
    %cst_140 = arith.constant 1.000000e+00 : f32
    %444 = vector.broadcast %cst_140 : f32 to vector<1x128xf32>
    %445 = arith.addf %444, %443 : vector<1x128xf32>
    %446 = arith.divf %444, %445 : vector<1x128xf32>
    %447 = vector.extract_strided_slice %438 {offsets = [0, 128], sizes = [1, 128], strides = [1, 1]} : vector<1x384xf32> to vector<1x128xf32>
    %448 = vector.extract_strided_slice %436 {offsets = [0, 128], sizes = [1, 128], strides = [1, 1]} : vector<1x384xf32> to vector<1x128xf32>
    %449 = arith.addf %447, %448 : vector<1x128xf32>
    %450 = arith.negf %449 : vector<1x128xf32>
    %451 = math.exp %450 : vector<1x128xf32>
    %cst_141 = arith.constant 1.000000e+00 : f32
    %452 = vector.broadcast %cst_141 : f32 to vector<1x128xf32>
    %453 = arith.addf %452, %451 : vector<1x128xf32>
    %454 = arith.divf %452, %453 : vector<1x128xf32>
    %455 = vector.extract_strided_slice %438 {offsets = [0, 256], sizes = [1, 128], strides = [1, 1]} : vector<1x384xf32> to vector<1x128xf32>
    %456 = vector.extract_strided_slice %436 {offsets = [0, 256], sizes = [1, 128], strides = [1, 1]} : vector<1x384xf32> to vector<1x128xf32>
    %457 = arith.addf %456, %301 : vector<1x128xf32>
    %458 = arith.mulf %446, %457 : vector<1x128xf32>
    %459 = arith.addf %455, %458 : vector<1x128xf32>
    %460 = math.tanh %459 : vector<1x128xf32>
    %cst_142 = arith.constant 1.000000e+00 : f32
    %461 = vector.broadcast %cst_142 : f32 to vector<1x128xf32>
    %462 = arith.subf %461, %454 : vector<1x128xf32>
    %463 = arith.mulf %462, %460 : vector<1x128xf32>
    %464 = arith.mulf %454, %432 : vector<1x128xf32>
    %465 = arith.addf %463, %464 : vector<1x128xf32>
    %466 = arith.index_cast %c4_i32_135 : i32 to index
    %c0_143 = arith.constant 0 : index
    %467 = vector.load %arg11[%466, %c0_143] : memref<8x128xf32, #tpu.memory_space<vmem>>, vector<1x128xf32>
    tpu.vector_store %arg11[%466, %c0_143], %465 {strides = array<i32>} : memref<8x128xf32, #tpu.memory_space<vmem>>, vector<1x128xf32>,
    %c5_i32_144 = arith.constant 5 : i32
    %c0_145 = arith.constant 0 : index
    %c0_146 = arith.constant 0 : index
    %468 = vector.load %arg9[%c0_145, %c0_146] : memref<128x384xf32, #tpu.memory_space<vmem>>, vector<128x384xf32>
    %cst_147 = arith.constant dense<0.000000e+00> : vector<1x384xf32>
    %469 = tpu.matmul %465, %468, %cst_147 {dimension_numbers = #tpu.dot_dimension_numbers<[1], [0], [0], [1], [0, 0, 1, 1], [], []>} : vector<1x128xf32>, vector<128x384xf32>, vector<1x384xf32> -> vector<1x384xf32>
    %470 = arith.index_cast %c5_i32_144 : i32 to index
    %c0_148 = arith.constant 0 : index
    %471 = vector.load %arg14[%470, %c0_148] : memref<8x384xf32, #tpu.memory_space<vmem>>, vector<1x384xf32>
    %472 = vector.extract_strided_slice %471 {offsets = [0, 0], sizes = [1, 128], strides = [1, 1]} : vector<1x384xf32> to vector<1x128xf32>
    %473 = vector.extract_strided_slice %469 {offsets = [0, 0], sizes = [1, 128], strides = [1, 1]} : vector<1x384xf32> to vector<1x128xf32>
    %474 = arith.addf %472, %473 : vector<1x128xf32>
    %475 = arith.negf %474 : vector<1x128xf32>
    %476 = math.exp %475 : vector<1x128xf32>
    %cst_149 = arith.constant 1.000000e+00 : f32
    %477 = vector.broadcast %cst_149 : f32 to vector<1x128xf32>
    %478 = arith.addf %477, %476 : vector<1x128xf32>
    %479 = arith.divf %477, %478 : vector<1x128xf32>
    %480 = vector.extract_strided_slice %471 {offsets = [0, 128], sizes = [1, 128], strides = [1, 1]} : vector<1x384xf32> to vector<1x128xf32>
    %481 = vector.extract_strided_slice %469 {offsets = [0, 128], sizes = [1, 128], strides = [1, 1]} : vector<1x384xf32> to vector<1x128xf32>
    %482 = arith.addf %480, %481 : vector<1x128xf32>
    %483 = arith.negf %482 : vector<1x128xf32>
    %484 = math.exp %483 : vector<1x128xf32>
    %cst_150 = arith.constant 1.000000e+00 : f32
    %485 = vector.broadcast %cst_150 : f32 to vector<1x128xf32>
    %486 = arith.addf %485, %484 : vector<1x128xf32>
    %487 = arith.divf %485, %486 : vector<1x128xf32>
    %488 = vector.extract_strided_slice %471 {offsets = [0, 256], sizes = [1, 128], strides = [1, 1]} : vector<1x384xf32> to vector<1x128xf32>
    %489 = vector.extract_strided_slice %469 {offsets = [0, 256], sizes = [1, 128], strides = [1, 1]} : vector<1x384xf32> to vector<1x128xf32>
    %490 = arith.addf %489, %301 : vector<1x128xf32>
    %491 = arith.mulf %479, %490 : vector<1x128xf32>
    %492 = arith.addf %488, %491 : vector<1x128xf32>
    %493 = math.tanh %492 : vector<1x128xf32>
    %cst_151 = arith.constant 1.000000e+00 : f32
    %494 = vector.broadcast %cst_151 : f32 to vector<1x128xf32>
    %495 = arith.subf %494, %487 : vector<1x128xf32>
    %496 = arith.mulf %495, %493 : vector<1x128xf32>
    %497 = arith.mulf %487, %465 : vector<1x128xf32>
    %498 = arith.addf %496, %497 : vector<1x128xf32>
    %499 = arith.index_cast %c5_i32_144 : i32 to index
    %c0_152 = arith.constant 0 : index
    %500 = vector.load %arg11[%499, %c0_152] : memref<8x128xf32, #tpu.memory_space<vmem>>, vector<1x128xf32>
    tpu.vector_store %arg11[%499, %c0_152], %498 {strides = array<i32>} : memref<8x128xf32, #tpu.memory_space<vmem>>, vector<1x128xf32>,
    %c6_i32_153 = arith.constant 6 : i32
    %c0_154 = arith.constant 0 : index
    %c0_155 = arith.constant 0 : index
    %501 = vector.load %arg9[%c0_154, %c0_155] : memref<128x384xf32, #tpu.memory_space<vmem>>, vector<128x384xf32>
    %cst_156 = arith.constant dense<0.000000e+00> : vector<1x384xf32>
    %502 = tpu.matmul %498, %501, %cst_156 {dimension_numbers = #tpu.dot_dimension_numbers<[1], [0], [0], [1], [0, 0, 1, 1], [], []>} : vector<1x128xf32>, vector<128x384xf32>, vector<1x384xf32> -> vector<1x384xf32>
    %503 = arith.index_cast %c6_i32_153 : i32 to index
    %c0_157 = arith.constant 0 : index
    %504 = vector.load %arg14[%503, %c0_157] : memref<8x384xf32, #tpu.memory_space<vmem>>, vector<1x384xf32>
    %505 = vector.extract_strided_slice %504 {offsets = [0, 0], sizes = [1, 128], strides = [1, 1]} : vector<1x384xf32> to vector<1x128xf32>
    %506 = vector.extract_strided_slice %502 {offsets = [0, 0], sizes = [1, 128], strides = [1, 1]} : vector<1x384xf32> to vector<1x128xf32>
    %507 = arith.addf %505, %506 : vector<1x128xf32>
    %508 = arith.negf %507 : vector<1x128xf32>
    %509 = math.exp %508 : vector<1x128xf32>
    %cst_158 = arith.constant 1.000000e+00 : f32
    %510 = vector.broadcast %cst_158 : f32 to vector<1x128xf32>
    %511 = arith.addf %510, %509 : vector<1x128xf32>
    %512 = arith.divf %510, %511 : vector<1x128xf32>
    %513 = vector.extract_strided_slice %504 {offsets = [0, 128], sizes = [1, 128], strides = [1, 1]} : vector<1x384xf32> to vector<1x128xf32>
    %514 = vector.extract_strided_slice %502 {offsets = [0, 128], sizes = [1, 128], strides = [1, 1]} : vector<1x384xf32> to vector<1x128xf32>
    %515 = arith.addf %513, %514 : vector<1x128xf32>
    %516 = arith.negf %515 : vector<1x128xf32>
    %517 = math.exp %516 : vector<1x128xf32>
    %cst_159 = arith.constant 1.000000e+00 : f32
    %518 = vector.broadcast %cst_159 : f32 to vector<1x128xf32>
    %519 = arith.addf %518, %517 : vector<1x128xf32>
    %520 = arith.divf %518, %519 : vector<1x128xf32>
    %521 = vector.extract_strided_slice %504 {offsets = [0, 256], sizes = [1, 128], strides = [1, 1]} : vector<1x384xf32> to vector<1x128xf32>
    %522 = vector.extract_strided_slice %502 {offsets = [0, 256], sizes = [1, 128], strides = [1, 1]} : vector<1x384xf32> to vector<1x128xf32>
    %523 = arith.addf %522, %301 : vector<1x128xf32>
    %524 = arith.mulf %512, %523 : vector<1x128xf32>
    %525 = arith.addf %521, %524 : vector<1x128xf32>
    %526 = math.tanh %525 : vector<1x128xf32>
    %cst_160 = arith.constant 1.000000e+00 : f32
    %527 = vector.broadcast %cst_160 : f32 to vector<1x128xf32>
    %528 = arith.subf %527, %520 : vector<1x128xf32>
    %529 = arith.mulf %528, %526 : vector<1x128xf32>
    %530 = arith.mulf %520, %498 : vector<1x128xf32>
    %531 = arith.addf %529, %530 : vector<1x128xf32>
    %532 = arith.index_cast %c6_i32_153 : i32 to index
    %c0_161 = arith.constant 0 : index
    %533 = vector.load %arg11[%532, %c0_161] : memref<8x128xf32, #tpu.memory_space<vmem>>, vector<1x128xf32>
    tpu.vector_store %arg11[%532, %c0_161], %531 {strides = array<i32>} : memref<8x128xf32, #tpu.memory_space<vmem>>, vector<1x128xf32>,
    %c7_i32_162 = arith.constant 7 : i32
    %c0_163 = arith.constant 0 : index
    %c0_164 = arith.constant 0 : index
    %534 = vector.load %arg9[%c0_163, %c0_164] : memref<128x384xf32, #tpu.memory_space<vmem>>, vector<128x384xf32>
    %cst_165 = arith.constant dense<0.000000e+00> : vector<1x384xf32>
    %535 = tpu.matmul %531, %534, %cst_165 {dimension_numbers = #tpu.dot_dimension_numbers<[1], [0], [0], [1], [0, 0, 1, 1], [], []>} : vector<1x128xf32>, vector<128x384xf32>, vector<1x384xf32> -> vector<1x384xf32>
    %536 = arith.index_cast %c7_i32_162 : i32 to index
    %c0_166 = arith.constant 0 : index
    %537 = vector.load %arg14[%536, %c0_166] : memref<8x384xf32, #tpu.memory_space<vmem>>, vector<1x384xf32>
    %538 = vector.extract_strided_slice %537 {offsets = [0, 0], sizes = [1, 128], strides = [1, 1]} : vector<1x384xf32> to vector<1x128xf32>
    %539 = vector.extract_strided_slice %535 {offsets = [0, 0], sizes = [1, 128], strides = [1, 1]} : vector<1x384xf32> to vector<1x128xf32>
    %540 = arith.addf %538, %539 : vector<1x128xf32>
    %541 = arith.negf %540 : vector<1x128xf32>
    %542 = math.exp %541 : vector<1x128xf32>
    %cst_167 = arith.constant 1.000000e+00 : f32
    %543 = vector.broadcast %cst_167 : f32 to vector<1x128xf32>
    %544 = arith.addf %543, %542 : vector<1x128xf32>
    %545 = arith.divf %543, %544 : vector<1x128xf32>
    %546 = vector.extract_strided_slice %537 {offsets = [0, 128], sizes = [1, 128], strides = [1, 1]} : vector<1x384xf32> to vector<1x128xf32>
    %547 = vector.extract_strided_slice %535 {offsets = [0, 128], sizes = [1, 128], strides = [1, 1]} : vector<1x384xf32> to vector<1x128xf32>
    %548 = arith.addf %546, %547 : vector<1x128xf32>
    %549 = arith.negf %548 : vector<1x128xf32>
    %550 = math.exp %549 : vector<1x128xf32>
    %cst_168 = arith.constant 1.000000e+00 : f32
    %551 = vector.broadcast %cst_168 : f32 to vector<1x128xf32>
    %552 = arith.addf %551, %550 : vector<1x128xf32>
    %553 = arith.divf %551, %552 : vector<1x128xf32>
    %554 = vector.extract_strided_slice %537 {offsets = [0, 256], sizes = [1, 128], strides = [1, 1]} : vector<1x384xf32> to vector<1x128xf32>
    %555 = vector.extract_strided_slice %535 {offsets = [0, 256], sizes = [1, 128], strides = [1, 1]} : vector<1x384xf32> to vector<1x128xf32>
    %556 = arith.addf %555, %301 : vector<1x128xf32>
    %557 = arith.mulf %545, %556 : vector<1x128xf32>
    %558 = arith.addf %554, %557 : vector<1x128xf32>
    %559 = math.tanh %558 : vector<1x128xf32>
    %cst_169 = arith.constant 1.000000e+00 : f32
    %560 = vector.broadcast %cst_169 : f32 to vector<1x128xf32>
    %561 = arith.subf %560, %553 : vector<1x128xf32>
    %562 = arith.mulf %561, %559 : vector<1x128xf32>
    %563 = arith.mulf %553, %531 : vector<1x128xf32>
    %564 = arith.addf %562, %563 : vector<1x128xf32>
    %565 = arith.index_cast %c7_i32_162 : i32 to index
    %c0_170 = arith.constant 0 : index
    %566 = vector.load %arg11[%565, %c0_170] : memref<8x128xf32, #tpu.memory_space<vmem>>, vector<1x128xf32>
    tpu.vector_store %arg11[%565, %c0_170], %564 {strides = array<i32>} : memref<8x128xf32, #tpu.memory_space<vmem>>, vector<1x128xf32>,
    %c8_i32_171 = arith.constant 8 : i32
    return
  }
}

</mosaic_0001>

<bundles_post_ra>
// kernel: forward.1
= control target key start
LH: loop header
LB: loop body
LE: loop exit
PB: predicated region body
PF: predicated region fallthrough
CT: control target
= control target key end

     0   :  { %16 = vsyncpa [#allocation6], 0  ;;  %s7821_s0 = inlined_call_operand.vmem [shape: f32[8,64], index: 0, kind: input, shape index: {}]   ;;  %s7822_s1 = inlined_call_operand.hbm [shape: f32[64,384], index: 1, kind: input, shape index: {}]   ;;  %s7823_s2 = inlined_call_operand.vmem [shape: f32[1,384], index: 2, kind: input, shape index: {}]   ;;  %s7824_s3 = inlined_call_operand.vmem [shape: f32[128,384], index: 3, kind: input, shape index: {}]   ;;  %s7825_s4 = inlined_call_operand.vmem [shape: f32[1,128], index: 4, kind: input, shape index: {}]   ;;  %s7826_s5 = inlined_call_operand.hbm [shape: f32[128,128], index: 5, kind: input, shape index: {}]   ;;  %s7827_s6 = inlined_call_operand.vmem [shape: f32[1,128], index: 6, kind: input, shape index: {}]   ;;  %s7828_s7 = inlined_call_operand.vmem [shape: f32[128,384], index: 7, kind: input, shape index: {}]   ;;  %s7829_s8 = inlined_call_operand.vmem [shape: f32[1,384], index: 8, kind: input, shape index: {}]   ;;  %s7830_s9 = inlined_call_operand.hbm [shape: f32[128,384], index: 9, kind: input, shape index: {}]   ;;  %s7831_s10 = inlined_call_operand.vmem [shape: f32[1,128], index: 10, kind: input, shape index: {}]   ;;  %s7832_s11 = inlined_call_operand.vmem [shape: f32[8,128], index: 11, kind: output, shape index: {}]  }
   0x1   :  { %17 = vsyncpa [#allocation8], 0  ;;  %s6334_s17 = smov [#allocation7]   ;;  %s6264_s21 = scalar_lea.hbm %s7826_s5, 2048 }
   0x2   :  { %s43_s18 = sshll.u32 %s6334_s17, 4  ;;  %p6265_p0 = scmp.ne.s32.totalorder %s7826_s5, %s6264_s21  ;;  %s44_s18 = int_to_ptr.vmem [resolvable:$true] %s43_s18 }
   0x3   :  { %p6268_p1 = scmp.lt.u32.totalorder %s6264_s21, %s7826_s5 }
   0x5   :  { %p6270_p2 = pnand %p6268_p1, %p6265_p0 }
   0x7   :  { %6273 = shalt.err (!%p6270_p2)
}
   0x8   :  { %s6274_s26 = scalar_lea.vmem %s44_s18, 2048  ;;  %p6279_p4 = scmp.lt.s32.totalorder %s44_s18, %s44_s18 }
   0x9   :  { %p6275_p3 = scmp.ne.s32.totalorder %s44_s18, %s6274_s26  ;;  %p6280_p5 = scmp.lt.s32.totalorder %s6274_s26, %s6274_s26 }
   0xb   :  { %p6281_p6 = por %p6280_p5, %p6279_p4 }
   0xd   :  { %p6282_p7 = pnand %p6281_p6, %p6275_p3 }
   0xf   :  { %6285 = shalt.err (!%p6282_p7)
}
  0x10   :  { %s6335_s27 = smov 128   ;;  %s6336_s28 = smov 8  }
  0x11   :  { %49 = dma.hbm_to_vmem [thread:$0]  %s7826_s5, 2048, %s44_s18, [#allocation8], %s6335_s27, %s6335_s27, %s6336_s28  }
  0x12   :  { %s6337_s12 = smov [#allocation5]   ;;  %s6286_s16 = scalar_lea.hbm %s7822_s1, 3072 }
  0x13   :  { %s25_s13 = sshll.u32 %s6337_s12, 4  ;;  %p6287_p8 = scmp.ne.s32.totalorder %s7822_s1, %s6286_s16  ;;  %s26_s13 = int_to_ptr.vmem [resolvable:$true] %s25_s13 }
  0x14   :  { %p6290_p9 = scmp.lt.u32.totalorder %s6286_s16, %s7822_s1 }
  0x16   :  { %p6292_p10 = pnand %p6290_p9, %p6287_p8 }
  0x18   :  { %6295 = shalt.err (!%p6292_p10)
}
  0x19   :  { %s6296_s22 = scalar_lea.vmem %s26_s13, 3072  ;;  %p6301_p12 = scmp.lt.s32.totalorder %s26_s13, %s26_s13 }
  0x1a   :  { %p6297_p11 = scmp.ne.s32.totalorder %s26_s13, %s6296_s22  ;;  %p6302_p13 = scmp.lt.s32.totalorder %s6296_s22, %s6296_s22 }
  0x1c   :  { %p6303_p0 = por %p6302_p13, %p6301_p12 }
  0x1e   :  { %p6304_p1 = pnand %p6303_p0, %p6297_p11 }
  0x20   :  { %6307 = shalt.err (!%p6304_p1)
}
  0x21   :  { %s6338_s5 = smov 384   ;;  %s6339_s18 = smov 24  }
  0x22   :  { %31 = dma.hbm_to_vmem [thread:$0]  %s7822_s1, 3072, %s26_s13, [#allocation6], %s6338_s5, %s6338_s5, %s6339_s18  }
  0x23   :  { %s6340_s25 = smov [#allocation9]   ;;  %s6308_s29 = scalar_lea.hbm %s7830_s9, 6144 }
  0x24   :  { %s61_s26 = sshll.u32 %s6340_s25, 4  ;;  %p6309_p2 = scmp.ne.s32.totalorder %s7830_s9, %s6308_s29  ;;  %s62_s26 = int_to_ptr.vmem [resolvable:$true] %s61_s26 }
  0x25   :  { %p6312_p3 = scmp.lt.u32.totalorder %s6308_s29, %s7830_s9 }
  0x27   :  { %p6314_p4 = pnand %p6312_p3, %p6309_p2 }
  0x29   :  { %6317 = shalt.err (!%p6314_p4)
}
  0x2a   :  { %s6318_s16 = scalar_lea.vmem %s62_s26, 6144  ;;  %p6323_p6 = scmp.lt.s32.totalorder %s62_s26, %s62_s26 }
  0x2b   :  { %p6319_p5 = scmp.ne.s32.totalorder %s62_s26, %s6318_s16  ;;  %p6324_p7 = scmp.lt.s32.totalorder %s6318_s16, %s6318_s16 }
  0x2d   :  { %p6325_p8 = por %p6324_p7, %p6323_p6 }
  0x2f   :  { %p6326_p9 = pnand %p6325_p8, %p6319_p5 }
  0x31   :  { %6329 = shalt.err (!%p6326_p9)
}
  0x32   :  { %67 = dma.hbm_to_vmem [thread:$0]  %s7830_s9, 6144, %s62_s26, [#allocation8], %s6338_s5, %s6338_s5, %s6339_s18  }
  0x33   :  { %6330 = dma.done.wait [#allocation6], 3072  }
  0x34   :  { %6331 = vsyncadd [#allocation6], 4294964224 }
  0x35   :  { %6332 = dma.done.wait [#allocation8], 8192  }
  0x36   :  { %6333 = vsyncadd [#allocation8], 4294959104  ;;  %v6341_v0 = vmov 0.0   ;;  %v81_v1 = vld [vmem:[#allocation5 + $0x8] sm:$0xff]  ;;  %v84_v2 = vld [vmem:[#allocation5 + $0x20] sm:$0xff]  ;;  %vm121_vm0 = vcmask 523264  }
  0x37   :  { %189 = vmatprep.mubr.f32.mxu1 %v6341_v0  ;;  %382 = vmatprep.mubr.f32.mxu0 %v6341_v0  ;;  %v80_v3 = vld [vmem:[#allocation5] sm:$0xff]  ;;  %v5089_v4 = vpack.c.bf16 %v84_v2, %v81_v1  ;;  %v83_v5 = vld [vmem:[#allocation5 + $0x18] sm:$0xff]  ;;  %v90_v7 = vld [vmem:[#allocation5 + $0x50] sm:$0xff]  ;;  %v6342_v56 = vmov 0.0|0.0   ;;  %vm6343_vm1 = vmmov 0  }
  0x38   :  { %v87_v6 = vld [vmem:[#allocation5 + $0x38] sm:$0xff]  ;;  %v5091_v8 = vpack.c.bf16 %v83_v5, %v80_v3  ;;  %v86_v10 = vld [vmem:[#allocation5 + $0x30] sm:$0xff]  ;;  %v89_v11 = vld [vmem:[#allocation5 + $0x48] sm:$0xff] }
  0x39   :  { %v5093_v9 = vpack.c.bf16 %v90_v7, %v87_v6  ;;  %v93_v12 = vld [vmem:[#allocation5 + $0x68] sm:$0xff]  ;;  %5090 = vmatprep.subr.bf16.mxu1 %v5089_v4  ;;  %v96_v13 = vld [vmem:[#allocation5 + $0x80] sm:$0xff]  ;;  %v5095_v14 = vpack.c.bf16 %v89_v11, %v86_v10  ;;  %v271_v15 = vld [vmem:[%s7824_s3 + $0x8] sm:$0xff] }
  0x3a   :  { %5092 = vmatpush1.bf16.msra.mxu1 %v5091_v8  ;;  %v274_v16 = vld [vmem:[%s7824_s3 + $0x20] sm:$0xff]  ;;  %v5097_v18 = vpack.c.bf16 %v96_v13, %v93_v12  ;;  %v92_v19 = vld [vmem:[#allocation5 + $0x60] sm:$0xff]  ;;  %v95_v20 = vld [vmem:[#allocation5 + $0x78] sm:$0xff] }
  0x3b   :  { %v270_v17 = vld [vmem:[%s7824_s3] sm:$0xff]  ;;  %5094 = vmatprep.subr.bf16.mxu1 %v5093_v9  ;;  %v6451_v21 = vpack.c.bf16 %v274_v16, %v271_v15  ;;  %v273_v22 = vld [vmem:[%s7824_s3 + $0x18] sm:$0xff]  ;;  %v99_v24 = vld [vmem:[#allocation5 + $0x98] sm:$0xff]  ;;  %v5099_v30 = vpack.c.bf16 %v95_v20, %v92_v19 }
  0x3c   :  { %v6456_v23 = vpack.c.bf16 %v273_v22, %v270_v17  ;;  %v102_v25 = vld [vmem:[#allocation5 + $0xb0] sm:$0xff]  ;;  %v277_v26 = vld [vmem:[%s7824_s3 + $0x38] sm:$0xff]  ;;  %v280_v27 = vld [vmem:[%s7824_s3 + $0x50] sm:$0xff] }
  0x3d   :  { %5118 = vmatprep.subr.bf16.mxu0 %v6451_v21  ;;  %v276_v28 = vld [vmem:[%s7824_s3 + $0x30] sm:$0xff]  ;;  %v279_v29 = vld [vmem:[%s7824_s3 + $0x48] sm:$0xff]  ;;  %v101_v32 = vld [vmem:[#allocation5 + $0xa8] sm:$0xff]  ;;  %v6472_v33 = vpack.c.bf16 %v280_v27, %v277_v26  ;;  %v5101_v35 = vpack.c.bf16 %v102_v25, %v99_v24 }
  0x3e   :  { %5096 = vmatpush1.bf16.msra.mxu1 %v5095_v14  ;;  %5120 = vmatpush1.bf16.msra.mxu0 %v6456_v23  ;;  %v98_v31 = vld [vmem:[#allocation5 + $0x90] sm:$0xff]  ;;  %v6474_v34 = vpack.c.bf16 %v279_v29, %v276_v28  ;;  %v286_v37 = vld [vmem:[%s7824_s3 + $0x80] sm:$0xff]  ;;  %v285_v40 = vld [vmem:[%s7824_s3 + $0x78] sm:$0xff] }
  0x3f   :  { %5098 = vmatprep.subr.bf16.mxu1 %v5097_v18  ;;  %v283_v36 = vld [vmem:[%s7824_s3 + $0x68] sm:$0xff]  ;;  %v282_v38 = vld [vmem:[%s7824_s3 + $0x60] sm:$0xff]  ;;  %5122 = vmatprep.subr.bf16.mxu0 %v6472_v33  ;;  %v289_v41 = vld [vmem:[%s7824_s3 + $0x98] sm:$0xff]  ;;  %v5103_v43 = vpack.c.bf16 %v101_v32, %v98_v31 }
  0x40   :  { %v6486_v39 = vpack.c.bf16 %v286_v37, %v283_v36  ;;  %v292_v42 = vld [vmem:[%s7824_s3 + $0xb0] sm:$0xff]  ;;  %v82_v44 = vld [vmem:[#allocation5 + $0x10] sm:$0xff]  ;;  %v6498_v45 = vpack.c.bf16 %v285_v40, %v282_v38  ;;  %v85_v46 = vld [vmem:[#allocation5 + $0x28] sm:$0xff] }
  0x41   :  { %v6501_v47 = vpack.c.bf16 %v292_v42, %v289_v41  ;;  %v288_v48 = vld [vmem:[%s7824_s3 + $0x90] sm:$0xff]  ;;  %v291_v49 = vld [vmem:[%s7824_s3 + $0xa8] sm:$0xff]  ;;  %v298_v51 = vld [vmem:[%s7824_s3 + $0xe0] sm:$0xff]  ;;  %v5106_v53 = vpack.c.bf16 %v85_v46, %v82_v44 }
  0x42   :  { %5100 = vmatpush1.bf16.msra.mxu1 %v5099_v30  ;;  %5124 = vmatpush1.bf16.msra.mxu0 %v6474_v34  ;;  %v295_v50 = vld [vmem:[%s7824_s3 + $0xc8] sm:$0xff]  ;;  %v6518_v52 = vld [vmem:[%s7821_s0] sm:$0xff]  ;;  %v88_v54 = vld [vmem:[#allocation5 + $0x40] sm:$0xff]  ;;  %v6521_v55 = vpack.c.bf16 %v291_v49, %v288_v48 }
  0x43   :  { %5102 = vmatprep.subr.bf16.mxu1 %v5101_v35  ;;  %5126 = vmatprep.subr.bf16.mxu0 %v6486_v39  ;;  %v91_v57 = vld [vmem:[#allocation5 + $0x58] sm:$0xff]  ;;  %v6525_v58 = vpack.c.bf16 %v298_v51, %v295_v50  ;;  %v294_v59 = vld [vmem:[%s7824_s3 + $0xc0] sm:$0xff]  ;;  %v297_v60 = vld [vmem:[%s7824_s3 + $0xd8] sm:$0xff] }
  0x44   :  { %v301_v61 = vld [vmem:[%s7824_s3 + $0xf8] sm:$0xff]  ;;  %v304_v62 = vld [vmem:[%s7824_s3 + $0x110] sm:$0xff]  ;;  %v5109_v63 = vpack.c.bf16 %v91_v57, %v88_v54  ;;  %v94_v1 = vld [vmem:[#allocation5 + $0x70] sm:$0xff]  ;;  %v6542_v2 = vpack.c.bf16 %v297_v60, %v294_v59  ;;  %v106_v57 = vlaneseq }
  0x45   :  { %v97_v3 = vld [vmem:[#allocation5 + $0x88] sm:$0xff]  ;;  %v6546_v4 = vpack.c.bf16 %v304_v62, %v301_v61  ;;  %v300_v5 = vld [vmem:[%s7824_s3 + $0xf0] sm:$0xff]  ;;  %v303_v6 = vld [vmem:[%s7824_s3 + $0x108] sm:$0xff] }
  0x46   :  { %5104 = vmatpush1.bf16.msra.mxu1 %v5103_v43  ;;  %5128 = vmatpush1.bf16.msra.mxu0 %v6498_v45  ;;  %v307_v7 = vld [vmem:[%s7824_s3 + $0x128] sm:$0xff]  ;;  %v310_v8 = vld [vmem:[%s7824_s3 + $0x140] sm:$0xff]  ;;  %v5112_v9 = vpack.c.bf16 %v97_v3, %v94_v1  ;;  %v100_v10 = vld [vmem:[#allocation5 + $0xa0] sm:$0xff]  ;;  %v6563_v11 = vpack.c.bf16 %v303_v6, %v300_v5  ;;  %v6722_v59 = vshrl.u32 %v106_v57, 7 }
  0x47   :  { %5105 = vmatprep.subr.bf16.mxu1 %v6342_v56  ;;  %5130 = vmatprep.subr.bf16.mxu0 %v6501_v47  ;;  %v103_v12 = vld [vmem:[#allocation5 + $0xb8] sm:$0xff]  ;;  %v6567_v13 = vpack.c.bf16 %v310_v8, %v307_v7  ;;  %v306_v14 = vld [vmem:[%s7824_s3 + $0x120] sm:$0xff]  ;;  %v309_v15 = vld [vmem:[%s7824_s3 + $0x138] sm:$0xff] }
  0x48   :  { %v313_v16 = vld [vmem:[%s7824_s3 + $0x158] sm:$0xff]  ;;  %v316_v17 = vld [vmem:[%s7824_s3 + $0x170] sm:$0xff]  ;;  %v5115_v18 = vpack.c.bf16 %v103_v12, %v100_v10  ;;  %v6582_v19 = vpack.c.bf16 %v309_v15, %v306_v14  ;;  %v275_v22 = vld [vmem:[%s7824_s3 + $0x28] sm:$0xff]  ;;  %v108_v60 = vsub.s32 0, %v6722_v59  ;;  %v112_v62 = vsub.s32 1, %v6722_v59 }
  0x49   :  { %4090 = vmatmul.mubr.msk.f32.vlgmr.msra.gmra.mrb[0].mxu1 %vm121_vm0, %v6518_v52  ;;  %v272_v20 = vld [vmem:[%s7824_s3 + $0x10] sm:$0xff]  ;;  %v6592_v24 = vpack.c.bf16 %v316_v17, %v313_v16  ;;  %v315_v26 = vld [vmem:[%s7824_s3 + $0x168] sm:$0xff]  ;;  %v278_v29 = vld [vmem:[%s7824_s3 + $0x40] sm:$0xff]  ;;  %v116_v8 = vsub.s32 2, %v6722_v59 }
  0x4a   :  { %5107 = vmatpush3.bf16.msra.mxu1 %v5106_v53  ;;  %5132 = vmatpush1.bf16.msra.mxu0 %v6521_v55  ;;  %v312_v25 = vld [vmem:[%s7824_s3 + $0x150] sm:$0xff]  ;;  %v6601_v27 = vpack.c.bf16 %v275_v22, %v272_v20  ;;  %v281_v30 = vld [vmem:[%s7824_s3 + $0x58] sm:$0xff]  ;;  %v287_v35 = vld [vmem:[%s7824_s3 + $0x88] sm:$0xff] }
  0x4b   :  { %5108 = vmatprep.subr.bf16.mxu1 %v6342_v56  ;;  %5134 = vmatprep.subr.bf16.mxu0 %v6525_v58  ;;  %v6603_v28 = vpack.c.bf16 %v315_v26, %v312_v25  ;;  %v6617_v31 = vpack.c.bf16 %v281_v30, %v278_v29  ;;  %v284_v32 = vld [vmem:[%s7824_s3 + $0x70] sm:$0xff]  ;;  %v290_v37 = vld [vmem:[%s7824_s3 + $0xa0] sm:$0xff]  ;;  %v293_v38 = vld [vmem:[%s7824_s3 + $0xb8] sm:$0xff] }
  0x4c   :  { %4456 = vmatprep.mubr.msk.f32.mxu1 %vm6343_vm1, %v6341_v0  ;;  %v6631_v36 = vpack.c.bf16 %v287_v35, %v284_v32  ;;  %v6644_v40 = vpack.c.bf16 %v293_v38, %v290_v37  ;;  %v296_v41 = vld [vmem:[%s7824_s3 + $0xd0] sm:$0xff]  ;;  %v299_v42 = vld [vmem:[%s7824_s3 + $0xe8] sm:$0xff]  ;;  %v302_v44 = vld [vmem:[%s7824_s3 + $0x100] sm:$0xff] }
  0x4d   :  { %v6656_v43 = vpack.c.bf16 %v299_v42, %v296_v41  ;;  %v305_v46 = vld [vmem:[%s7824_s3 + $0x118] sm:$0xff]  ;;  %v308_v49 = vld [vmem:[%s7824_s3 + $0x130] sm:$0xff]  ;;  %v311_v50 = vld [vmem:[%s7824_s3 + $0x148] sm:$0xff] }
  0x4e   :  { %5110 = vmatpush3.bf16.msra.mxu1 %v5109_v63  ;;  %5136 = vmatpush1.bf16.msra.mxu0 %v6542_v2  ;;  %v6668_v48 = vpack.c.bf16 %v305_v46, %v302_v44  ;;  %v6680_v51 = vpack.c.bf16 %v311_v50, %v308_v49  ;;  %v317_v53 = vld [vmem:[%s7824_s3 + $0x178] sm:$0xff]  ;;  %v104_v61 = vld [vmem:[%s7823_s2] sm:$0x7] }
  0x4f   :  { %5111 = vmatprep.subr.bf16.mxu1 %v6342_v56  ;;  %5138 = vmatprep.subr.bf16.mxu0 %v6546_v4  ;;  %v109_v63 = vrot.slane %v104_v61, %v108_v60  ;;  %v113_v1 = vrot.slane %v104_v61, %v112_v62  ;;  %v6739_v35 = vld [vmem:[%s7825_s4] sm:$0x1] }
  0x52   :  { %5113 = vmatpush3.bf16.msra.mxu1 %v5112_v9  ;;  %5140 = vmatpush1.bf16.msra.mxu0 %v6563_v11  ;;  %v117_v9 = vrot.slane %v104_v61, %v116_v8 }
  0x53   :  { %5114 = vmatprep.subr.bf16.mxu1 %v6342_v56  ;;  %5142 = vmatprep.subr.bf16.mxu0 %v6567_v13 }
  0x56   :  { %5116 = vmatpush3.bf16.msra.mxu1 %v5115_v18  ;;  %5144 = vmatpush1.bf16.msra.mxu0 %v6582_v19 }
  0x57   :  { %5149 = vmatprep.subr.bf16.mxu1 %v6342_v56  ;;  %5146 = vmatprep.subr.bf16.mxu0 %v6592_v24 }
  0x59   :  { %4457 = vmatmul.mubr.msk.f32.vlgmr.msra.gmra.mrb[2].mxu1 %vm121_vm0, %v6518_v52  ;;  %v314_v52 = vld [vmem:[%s7824_s3 + $0x160] sm:$0xff] }
  0x5a   :  { %5151 = vmatpush3.bf16.msra.mxu1 %v6601_v27  ;;  %5148 = vmatpush1.bf16.msra.mxu0 %v6603_v28  ;;  %v6692_v54 = vpack.c.bf16 %v317_v53, %v314_v52 }
  0x5b   :  { %5152 = vmatprep.subr.bf16.mxu1 %v6342_v56  ;;  %4491 = vmatprep.mubr.msk.f32.mxu1 %vm6343_vm1, %v6341_v0 }
  0x5c   :  { %5174 = vmatprep.subr.bf16.mxu0 %v6451_v21 }
  0x5d   :  { %383 = vmatmul.mubr.f32.vlgmr.msra.gmra.mrb[0].mxu0 %v6341_v0 }
  0x5e   :  { %5154 = vmatpush3.bf16.msra.mxu1 %v6617_v31  ;;  %5176 = vmatpush1.bf16.msra.mxu0 %v6456_v23 }
  0x5f   :  { %5155 = vmatprep.subr.bf16.mxu1 %v6342_v56  ;;  %5178 = vmatprep.subr.bf16.mxu0 %v6472_v33 }
  0x60   :  { %601 = vmatprep.mubr.f32.mxu0 %v6341_v0 }
  0x62   :  { %5157 = vmatpush3.bf16.msra.mxu1 %v6631_v36  ;;  %5180 = vmatpush1.bf16.msra.mxu0 %v6474_v34 }
  0x63   :  { %5158 = vmatprep.subr.bf16.mxu1 %v6342_v56  ;;  %5182 = vmatprep.subr.bf16.mxu0 %v6486_v39 }
  0x66   :  { %5160 = vmatpush3.bf16.msra.mxu1 %v6644_v40  ;;  %5184 = vmatpush1.bf16.msra.mxu0 %v6498_v45 }
  0x67   :  { %5161 = vmatprep.subr.bf16.mxu1 %v6342_v56  ;;  %5186 = vmatprep.subr.bf16.mxu0 %v6501_v47 }
  0x6a   :  { %5163 = vmatpush3.bf16.msra.mxu1 %v6656_v43  ;;  %5188 = vmatpush1.bf16.msra.mxu0 %v6521_v55 }
  0x6b   :  { %5164 = vmatprep.subr.bf16.mxu1 %v6342_v56  ;;  %5190 = vmatprep.subr.bf16.mxu0 %v6525_v58 }
  0x6e   :  { %5166 = vmatpush3.bf16.msra.mxu1 %v6668_v48  ;;  %5192 = vmatpush1.bf16.msra.mxu0 %v6542_v2 }
  0x6f   :  { %5167 = vmatprep.subr.bf16.mxu1 %v6342_v56  ;;  %5194 = vmatprep.subr.bf16.mxu0 %v6546_v4 }
  0x72   :  { %5169 = vmatpush3.bf16.msra.mxu1 %v6680_v51  ;;  %5196 = vmatpush1.bf16.msra.mxu0 %v6563_v11 }
  0x73   :  { %5170 = vmatprep.subr.bf16.mxu1 %v6342_v56  ;;  %5198 = vmatprep.subr.bf16.mxu0 %v6567_v13 }
  0x76   :  { %5172 = vmatpush3.bf16.msra.mxu1 %v6692_v54  ;;  %5200 = vmatpush1.bf16.msra.mxu0 %v6582_v19 }
  0x77   :  { %5205 = vmatprep.subr.bf16.mxu1 %v6342_v56  ;;  %5202 = vmatprep.subr.bf16.mxu0 %v6592_v24 }
  0x79   :  { %4492 = vmatmul.mubr.f32.vlgmr.msra.gmra.mrb[4].mxu1 %v6341_v0 }
  0x7a   :  { %5207 = vmatpush3.bf16.msra.mxu1 %v6601_v27  ;;  %5204 = vmatpush1.bf16.msra.mxu0 %v6603_v28 }
  0x7b   :  { %5208 = vmatprep.subr.bf16.mxu1 %v6342_v56  ;;  %4526 = vmatprep.mubr.msk.f32.mxu1 %vm6343_vm1, %v6341_v0 }
  0x7c   :  { %5230 = vmatprep.subr.bf16.mxu0 %v6451_v21 }
  0x7e   :  { %5210 = vmatpush3.bf16.msra.mxu1 %v6617_v31 }
  0x7f   :  { %5211 = vmatprep.subr.bf16.mxu1 %v6342_v56 }
  0x82   :  { %5213 = vmatpush3.bf16.msra.mxu1 %v6631_v36 }
  0x83   :  { %5214 = vmatprep.subr.bf16.mxu1 %v6342_v56 }
  0x86   :  { %5216 = vmatpush3.bf16.msra.mxu1 %v6644_v40 }
  0x87   :  { %5217 = vmatprep.subr.bf16.mxu1 %v6342_v56 }
  0x8a   :  { %5219 = vmatpush3.bf16.msra.mxu1 %v6656_v43 }
  0x8b   :  { %5220 = vmatprep.subr.bf16.mxu1 %v6342_v56 }
  0x8e   :  { %5222 = vmatpush3.bf16.msra.mxu1 %v6668_v48 }
  0x8f   :  { %5223 = vmatprep.subr.bf16.mxu1 %v6342_v56 }
  0x92   :  { %5225 = vmatpush3.bf16.msra.mxu1 %v6680_v51 }
  0x93   :  { %5226 = vmatprep.subr.bf16.mxu1 %v6342_v56 }
  0x96   :  { %5228 = vmatpush3.bf16.msra.mxu1 %v6692_v54 }
  0x97   :  { %5261 = vmatprep.subr.bf16.mxu1 %v6342_v56 }
 0x11c   :  { %v191_v3 = vpop.f32.mrb[0].mxu1 }
 0x11d   :  { %v192_v5 = vadd.f32 %v191_v3, %v109_v63  ;;  %v193_v6 = vpop.f32.mrb[1].mxu1 }
 0x11e   :  { %v194_v7 = vadd.f32 %v193_v6, %v113_v1 }
 0x11f   :  { %266 = vst [vmem:[#allocation2] sm:$0xff] %v192_v5 }
 0x120   :  { %267 = vst [vmem:[#allocation2 + $0x8] sm:$0xff] %v194_v7 }
 0x12c   :  { %v262_v10 = vpop.f32.mrb[2].mxu1 }
 0x12d   :  { %v263_v12 = vadd.f32 %v262_v10, %v117_v9  ;;  %v4458_v14 = vpop.f32.mrb[3].mxu1 }
 0x12f   :  { %268 = vst [vmem:[#allocation2 + $0x10] sm:$0xff] %v263_v12 }
 0x130   :  { %v384_v15 = vpop.f32.mrb[0].mxu0 }
 0x131   :  { %v386_v16 = vpop.f32.mrb[1].mxu0 }
 0x136   :  { %v459_v17 = vld [vmem:[#allocation2] ss:$8 sm:$0x7]  ;;  %v679_v5 = vld [vmem:[#allocation2 + $0x1] ss:$8 sm:$0x7] }
 0x137   :  { %v460_v18 = vadd.f32 %v459_v17, %v384_v15  ;;  %v468_v20 = vrot.slane %v459_v17, 1  ;;  %v479_v46 = vrot.slane %v459_v17, 2  ;;  %v688_v14 = vrot.slane %v679_v5, 1 }
 0x139   :  { %v4092_v22 = vmul.f32 -1.442695, %v460_v18  ;;  %v470_v25 = vadd.f32 %v468_v20, %v386_v16 }
 0x13b   :  { %6103 = vpow2.f32 %v4092_v22  ;;  %v4093_v26 = vmul.f32 -1.442695, %v470_v25 }
 0x13d   :  { %6105 = vpow2.f32 %v4093_v26 }
 0x145   :  { %v6104_v29 = vpop.eup %6103 }
 0x146   :  { %v464_v30 = vadd.f32 1.0, %v6104_v29  ;;  %v699_v29 = vrot.slane %v679_v5, 2 }
 0x147   :  { %v6106_v32 = vpop.eup %6105 }
 0x148   :  { %6107 = vrcp.f32 %v464_v30  ;;  %v474_v41 = vadd.f32 1.0, %v6106_v32 }
 0x14a   :  { %6109 = vrcp.f32 %v474_v41 }
 0x14c   :  { %v455_v37 = vpop.f32.mrb[4].mxu1 }
 0x14d   :  { %v4493_v38 = vpop.f32.mrb[5].mxu1  ;;  %v477_v42 = vadd.f32 %v455_v37, %v6739_v35 }
 0x152   :  { %v6108_v44 = vpop.eup %6107 }
 0x153   :  { %v478_v49 = vmul.f32 %v6108_v44, %v477_v42 }
 0x154   :  { %v6110_v52 = vpop.eup %6109 }
 0x155   :  { %v481_v50 = vadd.f32 %v479_v46, %v478_v49  ;;  %v483_v53 = vsub.f32 1.0, %v6110_v52  ;;  %v485_v63 = vmul.f32 0.0, %v6110_v52 }
 0x157   :  { %6111 = vtanh.f32 %v481_v50 }
 0x161   :  { %v6112_v57 = vpop.eup %6111 }
 0x162   :  { %v484_v61 = vmul.f32 %v6112_v57, %v483_v53 }
 0x164   :  { %v6742_v1 = vadd.f32 %v485_v63, %v484_v61 }
 0x166   :  { %v487_v3 = vmax.f32 %v6742_v1, 0.0  ;;  %602 = vmatmul.mubr.f32.vlgmr.msra.gmra.mrb[2].mxu0 %v6742_v1  ;;  %4527 = vmatmul.mubr.f32.vlgmr.msra.gmra.mrb[6].mxu1 %v6742_v1 }
 0x167   :  { %5232 = vmatpush1.bf16.msra.mxu0 %v6456_v23  ;;  %5263 = vmatpush3.bf16.msra.mxu1 %v6601_v27 }
 0x168   :  { %488 = vst [vmem:[#allocation3] sm:$0x1] %v487_v3  ;;  %5234 = vmatprep.subr.bf16.mxu0 %v6472_v33  ;;  %5264 = vmatprep.subr.bf16.mxu1 %v6342_v56 }
 0x169   :  { %821 = vmatprep.mubr.f32.mxu0 %v6341_v0  ;;  %4561 = vmatprep.mubr.msk.f32.mxu1 %vm6343_vm1, %v6341_v0 }
 0x16b   :  { %5236 = vmatpush1.bf16.msra.mxu0 %v6474_v34  ;;  %5266 = vmatpush3.bf16.msra.mxu1 %v6617_v31 }
 0x16c   :  { %5238 = vmatprep.subr.bf16.mxu0 %v6486_v39  ;;  %5267 = vmatprep.subr.bf16.mxu1 %v6342_v56 }
 0x16f   :  { %5240 = vmatpush1.bf16.msra.mxu0 %v6498_v45  ;;  %5269 = vmatpush3.bf16.msra.mxu1 %v6631_v36 }
 0x170   :  { %5242 = vmatprep.subr.bf16.mxu0 %v6501_v47  ;;  %5270 = vmatprep.subr.bf16.mxu1 %v6342_v56 }
 0x173   :  { %5244 = vmatpush1.bf16.msra.mxu0 %v6521_v55  ;;  %5272 = vmatpush3.bf16.msra.mxu1 %v6644_v40 }
 0x174   :  { %5246 = vmatprep.subr.bf16.mxu0 %v6525_v58  ;;  %5273 = vmatprep.subr.bf16.mxu1 %v6342_v56 }
 0x177   :  { %5248 = vmatpush1.bf16.msra.mxu0 %v6542_v2  ;;  %5275 = vmatpush3.bf16.msra.mxu1 %v6656_v43 }
 0x178   :  { %5250 = vmatprep.subr.bf16.mxu0 %v6546_v4  ;;  %5276 = vmatprep.subr.bf16.mxu1 %v6342_v56 }
 0x17b   :  { %5252 = vmatpush1.bf16.msra.mxu0 %v6563_v11  ;;  %5278 = vmatpush3.bf16.msra.mxu1 %v6668_v48 }
 0x17c   :  { %5254 = vmatprep.subr.bf16.mxu0 %v6567_v13  ;;  %5279 = vmatprep.subr.bf16.mxu1 %v6342_v56 }
 0x17f   :  { %5256 = vmatpush1.bf16.msra.mxu0 %v6582_v19  ;;  %5281 = vmatpush3.bf16.msra.mxu1 %v6680_v51 }
 0x180   :  { %5258 = vmatprep.subr.bf16.mxu0 %v6592_v24  ;;  %5282 = vmatprep.subr.bf16.mxu1 %v6342_v56 }
 0x183   :  { %5260 = vmatpush1.bf16.msra.mxu0 %v6603_v28  ;;  %5284 = vmatpush3.bf16.msra.mxu1 %v6692_v54 }
 0x184   :  { %5286 = vmatprep.subr.bf16.mxu0 %v6451_v21  ;;  %5317 = vmatprep.subr.bf16.mxu1 %v6342_v56 }
 0x239   :  { %v603_v6 = vpop.f32.mrb[2].mxu0  ;;  %v674_v7 = vpop.f32.mrb[6].mxu1 }
 0x23a   :  { %v680_v9 = vadd.f32 %v679_v5, %v603_v6  ;;  %v605_v10 = vpop.f32.mrb[3].mxu0  ;;  %v4528_v12 = vpop.f32.mrb[7].mxu1  ;;  %v697_v21 = vadd.f32 %v674_v7, %v6739_v35  ;;  %v1156_v6 = vld [vmem:[%s7824_s3 + $0x38] sm:$0xff]  ;;  %v1159_v7 = vld [vmem:[%s7824_s3 + $0x50] sm:$0xff] }
 0x23b   :  { %v690_v16 = vadd.f32 %v688_v14, %v605_v10  ;;  %v1155_v10 = vld [vmem:[%s7824_s3 + $0x30] sm:$0xff]  ;;  %v1158_v12 = vld [vmem:[%s7824_s3 + $0x48] sm:$0xff] }
 0x23c   :  { %v4094_v15 = vmul.f32 -1.442695, %v680_v9  ;;  %v6863_v9 = vpack.c.bf16 %v1159_v7, %v1156_v6  ;;  %v6871_v14 = vpack.c.bf16 %v1158_v12, %v1155_v10  ;;  %v1196_v6 = vld [vmem:[%s7824_s3 + $0x178] sm:$0xff]  ;;  %v1119_v12 = vld [vmem:[#allocation2 + $0x3] ss:$8 sm:$0x7] }
 0x23d   :  { %v4095_v17 = vmul.f32 -1.442695, %v690_v16  ;;  %v1165_v16 = vld [vmem:[%s7824_s3 + $0x80] sm:$0xff] }
 0x23e   :  { %6113 = vpow2.f32 %v4094_v15  ;;  %v1162_v15 = vld [vmem:[%s7824_s3 + $0x68] sm:$0xff] }
 0x23f   :  { %6115 = vpow2.f32 %v4095_v17  ;;  %v6881_v17 = vpack.c.bf16 %v1165_v16, %v1162_v15 }
 0x248   :  { %v6114_v18 = vpop.eup %6113 }
 0x249   :  { %v684_v20 = vadd.f32 1.0, %v6114_v18  ;;  %v6116_v22 = vpop.eup %6115  ;;  %v1161_v18 = vld [vmem:[%s7824_s3 + $0x60] sm:$0xff] }
 0x24a   :  { %v694_v25 = vadd.f32 1.0, %v6116_v22 }
 0x24b   :  { %6117 = vrcp.f32 %v684_v20  ;;  %v1164_v20 = vld [vmem:[%s7824_s3 + $0x78] sm:$0xff] }
 0x24c   :  { %6119 = vrcp.f32 %v694_v25  ;;  %v6889_v22 = vpack.c.bf16 %v1164_v20, %v1161_v18  ;;  %v1168_v25 = vld [vmem:[%s7824_s3 + $0x98] sm:$0xff] }
 0x255   :  { %v6118_v26 = vpop.eup %6117 }
 0x256   :  { %v698_v30 = vmul.f32 %v6118_v26, %v697_v21  ;;  %v6120_v37 = vpop.eup %6119  ;;  %v1171_v21 = vld [vmem:[%s7824_s3 + $0xb0] sm:$0xff] }
 0x257   :  { %v703_v38 = vsub.f32 1.0, %v6120_v37  ;;  %v705_v44 = vmul.f32 %v6120_v37, %v6742_v1  ;;  %v1153_v1 = vld [vmem:[%s7824_s3 + $0x20] sm:$0xff]  ;;  %v6899_v26 = vpack.c.bf16 %v1171_v21, %v1168_v25  ;;  %v1128_v21 = vrot.slane %v1119_v12, 1 }
 0x258   :  { %v701_v32 = vadd.f32 %v699_v29, %v698_v30  ;;  %v1167_v29 = vld [vmem:[%s7824_s3 + $0x90] sm:$0xff]  ;;  %v1170_v30 = vld [vmem:[%s7824_s3 + $0xa8] sm:$0xff] }
 0x259   :  { %v6910_v37 = vpack.c.bf16 %v1170_v30, %v1167_v29 }
 0x25a   :  { %6121 = vtanh.f32 %v701_v32  ;;  %v1169_v32 = vld [vmem:[%s7824_s3 + $0xa0] sm:$0xff] }
 0x264   :  { %v6122_v41 = vpop.eup %6121 }
 0x265   :  { %v704_v42 = vmul.f32 %v6122_v41, %v703_v38  ;;  %v1172_v38 = vld [vmem:[%s7824_s3 + $0xb8] sm:$0xff] }
 0x266   :  { %v6916_v41 = vpack.c.bf16 %v1172_v38, %v1169_v32 }
 0x267   :  { %v6784_v46 = vadd.f32 %v705_v44, %v704_v42  ;;  %v1174_v42 = vld [vmem:[%s7824_s3 + $0xc8] sm:$0xff]  ;;  %v1177_v44 = vld [vmem:[%s7824_s3 + $0xe0] sm:$0xff] }
 0x269   :  { %v707_v49 = vmax.f32 %v6784_v46, 0.0  ;;  %822 = vmatmul.mubr.f32.vlgmr.msra.gmra.mrb[4].mxu0 %v6784_v46  ;;  %4562 = vmatmul.mubr.f32.vlgmr.msra.gmra.mrb[8].mxu1 %v6784_v46 }
 0x26a   :  { %5288 = vmatpush1.bf16.msra.mxu0 %v6456_v23  ;;  %5319 = vmatpush3.bf16.msra.mxu1 %v6601_v27  ;;  %v899_v23 = vld [vmem:[#allocation2 + $0x2] ss:$8 sm:$0x7] }
 0x26b   :  { %708 = vst [vmem:[#allocation3 + $0x1] sm:$0x1] %v707_v49  ;;  %5290 = vmatprep.subr.bf16.mxu0 %v6472_v33  ;;  %5320 = vmatprep.subr.bf16.mxu1 %v6342_v56  ;;  %v1173_v49 = vld [vmem:[%s7824_s3 + $0xc0] sm:$0xff] }
 0x26c   :  { %1041 = vmatprep.mubr.f32.mxu0 %v6341_v0  ;;  %4596 = vmatprep.mubr.msk.f32.mxu1 %vm6343_vm1, %v6341_v0 }
 0x26e   :  { %5292 = vmatpush1.bf16.msra.mxu0 %v6474_v34  ;;  %5322 = vmatpush3.bf16.msra.mxu1 %v6617_v31 }
 0x26f   :  { %5294 = vmatprep.subr.bf16.mxu0 %v6486_v39  ;;  %5323 = vmatprep.subr.bf16.mxu1 %v6342_v56 }
 0x272   :  { %5296 = vmatpush1.bf16.msra.mxu0 %v6498_v45  ;;  %5325 = vmatpush3.bf16.msra.mxu1 %v6631_v36 }
 0x273   :  { %5298 = vmatprep.subr.bf16.mxu0 %v6501_v47  ;;  %5326 = vmatprep.subr.bf16.mxu1 %v6342_v56 }
 0x276   :  { %5300 = vmatpush1.bf16.msra.mxu0 %v6521_v55  ;;  %5328 = vmatpush3.bf16.msra.mxu1 %v6644_v40  ;;  %v908_v55 = vrot.slane %v899_v23, 1 }
 0x277   :  { %5302 = vmatprep.subr.bf16.mxu0 %v6525_v58  ;;  %5329 = vmatprep.subr.bf16.mxu1 %v6342_v56 }
 0x27a   :  { %5304 = vmatpush1.bf16.msra.mxu0 %v6542_v2  ;;  %5331 = vmatpush3.bf16.msra.mxu1 %v6656_v43  ;;  %v919_v43 = vrot.slane %v899_v23, 2 }
 0x27b   :  { %5306 = vmatprep.subr.bf16.mxu0 %v6546_v4  ;;  %5332 = vmatprep.subr.bf16.mxu1 %v6342_v56 }
 0x27e   :  { %5308 = vmatpush1.bf16.msra.mxu0 %v6563_v11  ;;  %5334 = vmatpush3.bf16.msra.mxu1 %v6668_v48 }
 0x27f   :  { %5310 = vmatprep.subr.bf16.mxu0 %v6567_v13  ;;  %5335 = vmatprep.subr.bf16.mxu1 %v6342_v56 }
 0x282   :  { %5312 = vmatpush1.bf16.msra.mxu0 %v6582_v19  ;;  %5337 = vmatpush3.bf16.msra.mxu1 %v6680_v51 }
 0x283   :  { %5314 = vmatprep.subr.bf16.mxu0 %v6592_v24  ;;  %5338 = vmatprep.subr.bf16.mxu1 %v6342_v56 }
 0x286   :  { %5316 = vmatpush1.bf16.msra.mxu0 %v6603_v28  ;;  %5340 = vmatpush3.bf16.msra.mxu1 %v6692_v54 }
 0x287   :  { %5373 = vmatprep.subr.bf16.mxu1 %v6342_v56 }
 0x33c   :  { %v823_v33 = vpop.f32.mrb[4].mxu0  ;;  %v894_v34 = vpop.f32.mrb[8].mxu1 }
 0x33d   :  { %v900_v39 = vadd.f32 %v899_v23, %v823_v33  ;;  %v825_v45 = vpop.f32.mrb[5].mxu0  ;;  %v4563_v47 = vpop.f32.mrb[9].mxu1  ;;  %v917_v28 = vadd.f32 %v894_v34, %v6739_v35  ;;  %v1176_v23 = vld [vmem:[%s7824_s3 + $0xd8] sm:$0xff]  ;;  %v1175_v33 = vld [vmem:[%s7824_s3 + $0xd0] sm:$0xff] }
 0x33e   :  { %v910_v2 = vadd.f32 %v908_v55, %v825_v45  ;;  %v6938_v34 = vpack.c.bf16 %v1176_v23, %v1173_v49  ;;  %v1180_v45 = vld [vmem:[%s7824_s3 + $0xf8] sm:$0xff]  ;;  %v1183_v47 = vld [vmem:[%s7824_s3 + $0x110] sm:$0xff] }
 0x33f   :  { %v4096_v58 = vmul.f32 -1.442695, %v900_v39  ;;  %v1178_v39 = vld [vmem:[%s7824_s3 + $0xe8] sm:$0xff] }
 0x340   :  { %v4097_v4 = vmul.f32 -1.442695, %v910_v2  ;;  %v6950_v55 = vpack.c.bf16 %v1178_v39, %v1175_v33  ;;  %v1179_v2 = vld [vmem:[%s7824_s3 + $0xf0] sm:$0xff]  ;;  %v1139_v39 = vrot.slane %v1119_v12, 2 }
 0x341   :  { %6123 = vpow2.f32 %v4096_v58  ;;  %v6952_v58 = vpack.c.bf16 %v1183_v47, %v1180_v45 }
 0x342   :  { %6125 = vpow2.f32 %v4097_v4  ;;  %v1182_v4 = vld [vmem:[%s7824_s3 + $0x108] sm:$0xff] }
 0x34b   :  { %v6124_v11 = vpop.eup %6123 }
 0x34c   :  { %v904_v13 = vadd.f32 1.0, %v6124_v11  ;;  %v6126_v19 = vpop.eup %6125  ;;  %v1181_v11 = vld [vmem:[%s7824_s3 + $0x100] sm:$0xff] }
 0x34d   :  { %v914_v24 = vadd.f32 1.0, %v6126_v19  ;;  %v1184_v19 = vld [vmem:[%s7824_s3 + $0x118] sm:$0xff] }
 0x34e   :  { %6127 = vrcp.f32 %v904_v13  ;;  %v6964_v13 = vpack.c.bf16 %v1182_v4, %v1179_v2 }
 0x34f   :  { %6129 = vrcp.f32 %v914_v24  ;;  %v1186_v24 = vld [vmem:[%s7824_s3 + $0x128] sm:$0xff] }
 0x358   :  { %v6128_v40 = vpop.eup %6127 }
 0x359   :  { %v918_v48 = vmul.f32 %v6128_v40, %v917_v28  ;;  %v6130_v54 = vpop.eup %6129  ;;  %v1189_v28 = vld [vmem:[%s7824_s3 + $0x140] sm:$0xff]  ;;  %v6977_v40 = vpack.c.bf16 %v1184_v19, %v1181_v11 }
 0x35a   :  { %v923_v50 = vsub.f32 1.0, %v6130_v54  ;;  %v925_v57 = vmul.f32 %v6130_v54, %v6784_v46  ;;  %v6926_v46 = vpack.c.bf16 %v1177_v44, %v1174_v42  ;;  %v1187_v54 = vld [vmem:[%s7824_s3 + $0x130] sm:$0xff] }
 0x35b   :  { %v921_v51 = vadd.f32 %v919_v43, %v918_v48  ;;  %v6979_v43 = vpack.c.bf16 %v1189_v28, %v1186_v24  ;;  %v1185_v48 = vld [vmem:[%s7824_s3 + $0x120] sm:$0xff] }
 0x35d   :  { %6131 = vtanh.f32 %v921_v51  ;;  %v1188_v51 = vld [vmem:[%s7824_s3 + $0x138] sm:$0xff] }
 0x367   :  { %v6132_v52 = vpop.eup %6131 }
 0x368   :  { %v924_v53 = vmul.f32 %v6132_v52, %v923_v50  ;;  %v1190_v50 = vld [vmem:[%s7824_s3 + $0x148] sm:$0xff]  ;;  %v1192_v52 = vld [vmem:[%s7824_s3 + $0x158] sm:$0xff] }
 0x36a   :  { %v6825_v61 = vadd.f32 %v925_v57, %v924_v53  ;;  %v1195_v53 = vld [vmem:[%s7824_s3 + $0x170] sm:$0xff]  ;;  %v7001_v57 = vpack.c.bf16 %v1188_v51, %v1185_v48  ;;  %v1374_v51 = vld [vmem:[%s7824_s3 + $0x28] sm:$0xff] }
 0x36c   :  { %v927_v63 = vmax.f32 %v6825_v61, 0.0  ;;  %1042 = vmatmul.mubr.f32.vlgmr.msra.gmra.mrb[6].mxu0 %v6825_v61  ;;  %4597 = vmatmul.mubr.f32.vlgmr.msra.gmra.mrb[10].mxu1 %v6825_v61 }
 0x36d   :  { %5375 = vmatpush3.bf16.msra.mxu1 %v6601_v27  ;;  %1261 = vmatprep.mubr.f32.mxu0 %v6341_v0  ;;  %v1150_v27 = vld [vmem:[%s7824_s3 + $0x8] sm:$0xff] }
 0x36e   :  { %928 = vst [vmem:[#allocation3 + $0x2] sm:$0x1] %v927_v63  ;;  %5376 = vmatprep.subr.bf16.mxu1 %v6342_v56  ;;  %4631 = vmatprep.mubr.msk.f32.mxu1 %vm6343_vm1, %v6341_v0  ;;  %v6845_v3 = vpack.c.bf16 %v1153_v1, %v1150_v27  ;;  %v7005_v63 = vpack.c.bf16 %v1190_v50, %v1187_v54  ;;  %v1191_v1 = vld [vmem:[%s7824_s3 + $0x150] sm:$0xff]  ;;  %v1377_v50 = vld [vmem:[%s7824_s3 + $0x40] sm:$0xff] }
 0x36f   :  { %v7007_v27 = vpack.c.bf16 %v1195_v53, %v1192_v52  ;;  %v1380_v52 = vld [vmem:[%s7824_s3 + $0x58] sm:$0xff] }
 0x370   :  { %5342 = vmatprep.subr.bf16.mxu0 %v6845_v3  ;;  %v7076_v53 = vpack.c.bf16 %v1380_v52, %v1377_v50 }
 0x371   :  { %5378 = vmatpush3.bf16.msra.mxu1 %v6617_v31  ;;  %v1149_v31 = vld [vmem:[%s7824_s3] sm:$0xff] }
 0x372   :  { %5379 = vmatprep.subr.bf16.mxu1 %v6342_v56 }
 0x375   :  { %5381 = vmatpush3.bf16.msra.mxu1 %v6631_v36  ;;  %v1152_v36 = vld [vmem:[%s7824_s3 + $0x18] sm:$0xff] }
 0x376   :  { %5382 = vmatprep.subr.bf16.mxu1 %v6342_v56  ;;  %v6853_v5 = vpack.c.bf16 %v1152_v36, %v1149_v31  ;;  %v1194_v31 = vld [vmem:[%s7824_s3 + $0x168] sm:$0xff]  ;;  %v1193_v36 = vld [vmem:[%s7824_s3 + $0x160] sm:$0xff] }
 0x377   :  { %v7023_v7 = vpack.c.bf16 %v1194_v31, %v1191_v1  ;;  %v7027_v10 = vpack.c.bf16 %v1196_v6, %v1193_v36  ;;  %v1383_v1 = vld [vmem:[%s7824_s3 + $0x70] sm:$0xff]  ;;  %v1386_v31 = vld [vmem:[%s7824_s3 + $0x88] sm:$0xff] }
 0x378   :  { %5344 = vmatpush1.bf16.msra.mxu0 %v6853_v5  ;;  %v7086_v36 = vpack.c.bf16 %v1386_v31, %v1383_v1  ;;  %v1339_v6 = vld [vmem:[#allocation2 + $0x4] ss:$8 sm:$0x7] }
 0x379   :  { %5346 = vmatprep.subr.bf16.mxu0 %v6863_v9  ;;  %5384 = vmatpush3.bf16.msra.mxu1 %v6916_v41 }
 0x37a   :  { %5385 = vmatprep.subr.bf16.mxu1 %v6342_v56 }
 0x37c   :  { %5348 = vmatpush1.bf16.msra.mxu0 %v6871_v14 }
 0x37d   :  { %5350 = vmatprep.subr.bf16.mxu0 %v6881_v17  ;;  %5387 = vmatpush3.bf16.msra.mxu1 %v6950_v55 }
 0x37e   :  { %5388 = vmatprep.subr.bf16.mxu1 %v6342_v56 }
 0x380   :  { %5352 = vmatpush1.bf16.msra.mxu0 %v6889_v22 }
 0x381   :  { %5354 = vmatprep.subr.bf16.mxu0 %v6899_v26  ;;  %5390 = vmatpush3.bf16.msra.mxu1 %v6977_v40 }
 0x382   :  { %5391 = vmatprep.subr.bf16.mxu1 %v6342_v56 }
 0x384   :  { %5356 = vmatpush1.bf16.msra.mxu0 %v6910_v37 }
 0x385   :  { %5358 = vmatprep.subr.bf16.mxu0 %v6926_v46  ;;  %5393 = vmatpush3.bf16.msra.mxu1 %v7005_v63 }
 0x386   :  { %5394 = vmatprep.subr.bf16.mxu1 %v6342_v56 }
 0x388   :  { %5360 = vmatpush1.bf16.msra.mxu0 %v6938_v34 }
 0x389   :  { %5362 = vmatprep.subr.bf16.mxu0 %v6952_v58  ;;  %5396 = vmatpush3.bf16.msra.mxu1 %v7027_v10 }
 0x38a   :  { %5429 = vmatprep.subr.bf16.mxu1 %v6342_v56 }
 0x38c   :  { %5364 = vmatpush1.bf16.msra.mxu0 %v6964_v13 }
 0x38d   :  { %5366 = vmatprep.subr.bf16.mxu0 %v6979_v43 }
 0x390   :  { %5368 = vmatpush1.bf16.msra.mxu0 %v7001_v57 }
 0x391   :  { %5370 = vmatprep.subr.bf16.mxu0 %v7007_v27 }
 0x394   :  { %5372 = vmatpush1.bf16.msra.mxu0 %v7023_v7 }
 0x395   :  { %5398 = vmatprep.subr.bf16.mxu0 %v6845_v3 }
 0x43f   :  { %v1043_v15 = vpop.f32.mrb[6].mxu0  ;;  %v1114_v16 = vpop.f32.mrb[10].mxu1 }
 0x440   :  { %v1120_v18 = vadd.f32 %v1119_v12, %v1043_v15  ;;  %v1045_v20 = vpop.f32.mrb[7].mxu0  ;;  %v4598_v25 = vpop.f32.mrb[11].mxu1  ;;  %v1137_v23 = vadd.f32 %v1114_v16, %v6739_v35 }
 0x441   :  { %v1130_v30 = vadd.f32 %v1128_v21, %v1045_v20  ;;  %v1348_v25 = vrot.slane %v1339_v6, 1 }
 0x442   :  { %v4098_v29 = vmul.f32 -1.442695, %v1120_v18 }
 0x443   :  { %v4099_v32 = vmul.f32 -1.442695, %v1130_v30 }
 0x444   :  { %6133 = vpow2.f32 %v4098_v29 }
 0x445   :  { %6135 = vpow2.f32 %v4099_v32 }
 0x44e   :  { %v6134_v38 = vpop.eup %6133 }
 0x44f   :  { %v1124_v42 = vadd.f32 1.0, %v6134_v38  ;;  %v6136_v44 = vpop.eup %6135 }
 0x450   :  { %v1134_v49 = vadd.f32 1.0, %v6136_v44 }
 0x451   :  { %6137 = vrcp.f32 %v1124_v42 }
 0x452   :  { %6139 = vrcp.f32 %v1134_v49 }
 0x45b   :  { %v6138_v33 = vpop.eup %6137 }
 0x45c   :  { %v1138_v45 = vmul.f32 %v6138_v33, %v1137_v23  ;;  %v6140_v2 = vpop.eup %6139  ;;  %v1359_v33 = vrot.slane %v1339_v6, 2 }
 0x45d   :  { %v1143_v4 = vsub.f32 1.0, %v6140_v2  ;;  %v1145_v24 = vmul.f32 %v6140_v2, %v6825_v61  ;;  %v1371_v61 = vld [vmem:[%s7824_s3 + $0x10] sm:$0xff] }
 0x45e   :  { %v1141_v47 = vadd.f32 %v1139_v39, %v1138_v45  ;;  %v7066_v54 = vpack.c.bf16 %v1374_v51, %v1371_v61 }
 0x460   :  { %6141 = vtanh.f32 %v1141_v47 }
 0x46a   :  { %v6142_v11 = vpop.eup %6141 }
 0x46b   :  { %v1144_v19 = vmul.f32 %v6142_v11, %v1143_v4 }
 0x46d   :  { %v7036_v28 = vadd.f32 %v1145_v24, %v1144_v19 }
 0x46f   :  { %v1147_v48 = vmax.f32 %v7036_v28, 0.0  ;;  %1262 = vmatmul.mubr.f32.vlgmr.msra.gmra.mrb[8].mxu0 %v7036_v28  ;;  %4632 = vmatmul.mubr.f32.vlgmr.msra.gmra.mrb[12].mxu1 %v7036_v28 }
 0x470   :  { %5400 = vmatpush1.bf16.msra.mxu0 %v6853_v5  ;;  %1481 = vmatprep.mubr.f32.mxu0 %v6341_v0 }
 0x471   :  { %1148 = vst [vmem:[#allocation3 + $0x3] sm:$0x1] %v1147_v48  ;;  %5402 = vmatprep.subr.bf16.mxu0 %v6863_v9  ;;  %4666 = vmatprep.mubr.msk.f32.mxu1 %vm6343_vm1, %v6341_v0 }
 0x472   :  { %5431 = vmatpush3.bf16.msra.mxu1 %v7066_v54 }
 0x473   :  { %5432 = vmatprep.subr.bf16.mxu1 %v6342_v56 }
 0x474   :  { %5404 = vmatpush1.bf16.msra.mxu0 %v6871_v14 }
 0x475   :  { %5406 = vmatprep.subr.bf16.mxu0 %v6881_v17 }
 0x476   :  { %5434 = vmatpush3.bf16.msra.mxu1 %v7076_v53 }
 0x477   :  { %5435 = vmatprep.subr.bf16.mxu1 %v6342_v56 }
 0x478   :  { %5408 = vmatpush1.bf16.msra.mxu0 %v6889_v22 }
 0x479   :  { %5410 = vmatprep.subr.bf16.mxu0 %v6899_v26 }
 0x47a   :  { %5437 = vmatpush3.bf16.msra.mxu1 %v7086_v36 }
 0x47b   :  { %5438 = vmatprep.subr.bf16.mxu1 %v6342_v56 }
 0x47c   :  { %5412 = vmatpush1.bf16.msra.mxu0 %v6910_v37 }
 0x47d   :  { %5414 = vmatprep.subr.bf16.mxu0 %v6926_v46 }
 0x47e   :  { %5440 = vmatpush3.bf16.msra.mxu1 %v6916_v41 }
 0x47f   :  { %5441 = vmatprep.subr.bf16.mxu1 %v6342_v56 }
 0x480   :  { %5416 = vmatpush1.bf16.msra.mxu0 %v6938_v34 }
 0x481   :  { %5418 = vmatprep.subr.bf16.mxu0 %v6952_v58 }
 0x482   :  { %5443 = vmatpush3.bf16.msra.mxu1 %v6950_v55 }
 0x483   :  { %5444 = vmatprep.subr.bf16.mxu1 %v6342_v56 }
 0x484   :  { %5420 = vmatpush1.bf16.msra.mxu0 %v6964_v13 }
 0x485   :  { %5422 = vmatprep.subr.bf16.mxu0 %v6979_v43 }
 0x486   :  { %5446 = vmatpush3.bf16.msra.mxu1 %v6977_v40 }
 0x487   :  { %5447 = vmatprep.subr.bf16.mxu1 %v6342_v56 }
 0x488   :  { %5424 = vmatpush1.bf16.msra.mxu0 %v7001_v57 }
 0x489   :  { %5426 = vmatprep.subr.bf16.mxu0 %v7007_v27 }
 0x48a   :  { %5449 = vmatpush3.bf16.msra.mxu1 %v7005_v63 }
 0x48b   :  { %5450 = vmatprep.subr.bf16.mxu1 %v6342_v56 }
 0x48c   :  { %5428 = vmatpush1.bf16.msra.mxu0 %v7023_v7 }
 0x48d   :  { %5454 = vmatprep.subr.bf16.mxu0 %v6845_v3 }
 0x48e   :  { %5452 = vmatpush3.bf16.msra.mxu1 %v7027_v10 }
 0x48f   :  { %5485 = vmatprep.subr.bf16.mxu1 %v6342_v56 }
 0x542   :  { %v1263_v12 = vpop.f32.mrb[8].mxu0  ;;  %v1334_v15 = vpop.f32.mrb[12].mxu1 }
 0x543   :  { %v1340_v16 = vadd.f32 %v1339_v6, %v1263_v12  ;;  %v1265_v18 = vpop.f32.mrb[9].mxu0  ;;  %v4633_v20 = vpop.f32.mrb[13].mxu1  ;;  %v1357_v49 = vadd.f32 %v1334_v15, %v6739_v35 }
 0x544   :  { %v1350_v29 = vadd.f32 %v1348_v25, %v1265_v18 }
 0x545   :  { %v4100_v21 = vmul.f32 -1.442695, %v1340_v16 }
 0x546   :  { %v4101_v30 = vmul.f32 -1.442695, %v1350_v29 }
 0x547   :  { %6143 = vpow2.f32 %v4100_v21 }
 0x548   :  { %6145 = vpow2.f32 %v4101_v30 }
 0x551   :  { %v6144_v32 = vpop.eup %6143 }
 0x552   :  { %v1344_v38 = vadd.f32 1.0, %v6144_v32  ;;  %v6146_v42 = vpop.eup %6145 }
 0x553   :  { %v1354_v44 = vadd.f32 1.0, %v6146_v42 }
 0x554   :  { %6147 = vrcp.f32 %v1344_v38 }
 0x555   :  { %6149 = vrcp.f32 %v1354_v44 }
 0x55e   :  { %v6148_v23 = vpop.eup %6147 }
 0x55f   :  { %v1358_v39 = vmul.f32 %v6148_v23, %v1357_v49  ;;  %v6150_v47 = vpop.eup %6149 }
 0x560   :  { %v1363_v2 = vsub.f32 1.0, %v6150_v47  ;;  %v1365_v19 = vmul.f32 %v6150_v47, %v7036_v28  ;;  %v1559_v28 = vld [vmem:[#allocation2 + $0x5] ss:$8 sm:$0x7] }
 0x561   :  { %v1361_v45 = vadd.f32 %v1359_v33, %v1358_v39  ;;  %v1568_v31 = vrot.slane %v1559_v28, 1  ;;  %v1579_v29 = vrot.slane %v1559_v28, 2 }
 0x563   :  { %6151 = vtanh.f32 %v1361_v45 }
 0x56d   :  { %v6152_v4 = vpop.eup %6151 }
 0x56e   :  { %v1364_v11 = vmul.f32 %v6152_v4, %v1363_v2  ;;  %v2031_v4 = vld [vmem:[#allocation7 + $0x8] sm:$0xff] }
 0x570   :  { %v7102_v24 = vadd.f32 %v1365_v19, %v1364_v11  ;;  %v2032_v19 = vld [vmem:[#allocation7 + $0x10] sm:$0xff] }
 0x572   :  { %v1367_v48 = vmax.f32 %v7102_v24, 0.0  ;;  %1482 = vmatmul.mubr.f32.vlgmr.msra.gmra.mrb[10].mxu0 %v7102_v24  ;;  %4667 = vmatmul.mubr.f32.vlgmr.msra.gmra.mrb[14].mxu1 %v7102_v24 }
 0x573   :  { %5456 = vmatpush1.bf16.msra.mxu0 %v6853_v5  ;;  %5487 = vmatpush3.bf16.msra.mxu1 %v7066_v54 }
 0x574   :  { %1368 = vst [vmem:[#allocation3 + $0x4] sm:$0x1] %v1367_v48  ;;  %5458 = vmatprep.subr.bf16.mxu0 %v6863_v9  ;;  %5488 = vmatprep.subr.bf16.mxu1 %v6342_v56 }
 0x575   :  { %1701 = vmatprep.mubr.f32.mxu0 %v6341_v0  ;;  %4701 = vmatprep.mubr.msk.f32.mxu1 %vm6343_vm1, %v6341_v0 }
 0x577   :  { %5460 = vmatpush1.bf16.msra.mxu0 %v6871_v14  ;;  %5490 = vmatpush3.bf16.msra.mxu1 %v7076_v53 }
 0x578   :  { %5462 = vmatprep.subr.bf16.mxu0 %v6881_v17  ;;  %5491 = vmatprep.subr.bf16.mxu1 %v6342_v56 }
 0x57b   :  { %5464 = vmatpush1.bf16.msra.mxu0 %v6889_v22  ;;  %5493 = vmatpush3.bf16.msra.mxu1 %v7086_v36 }
 0x57c   :  { %5466 = vmatprep.subr.bf16.mxu0 %v6899_v26  ;;  %5494 = vmatprep.subr.bf16.mxu1 %v6342_v56 }
 0x57f   :  { %5468 = vmatpush1.bf16.msra.mxu0 %v6910_v37  ;;  %5496 = vmatpush3.bf16.msra.mxu1 %v6916_v41 }
 0x580   :  { %5470 = vmatprep.subr.bf16.mxu0 %v6926_v46  ;;  %5497 = vmatprep.subr.bf16.mxu1 %v6342_v56 }
 0x583   :  { %5472 = vmatpush1.bf16.msra.mxu0 %v6938_v34  ;;  %5499 = vmatpush3.bf16.msra.mxu1 %v6950_v55 }
 0x584   :  { %5474 = vmatprep.subr.bf16.mxu0 %v6952_v58  ;;  %5500 = vmatprep.subr.bf16.mxu1 %v6342_v56 }
 0x587   :  { %5476 = vmatpush1.bf16.msra.mxu0 %v6964_v13  ;;  %5502 = vmatpush3.bf16.msra.mxu1 %v6977_v40 }
 0x588   :  { %5478 = vmatprep.subr.bf16.mxu0 %v6979_v43  ;;  %5503 = vmatprep.subr.bf16.mxu1 %v6342_v56 }
 0x58b   :  { %5480 = vmatpush1.bf16.msra.mxu0 %v7001_v57  ;;  %5505 = vmatpush3.bf16.msra.mxu1 %v7005_v63 }
 0x58c   :  { %5482 = vmatprep.subr.bf16.mxu0 %v7007_v27  ;;  %5506 = vmatprep.subr.bf16.mxu1 %v6342_v56 }
 0x58f   :  { %5484 = vmatpush1.bf16.msra.mxu0 %v7023_v7  ;;  %5508 = vmatpush3.bf16.msra.mxu1 %v7027_v10 }
 0x590   :  { %5510 = vmatprep.subr.bf16.mxu0 %v6845_v3  ;;  %5541 = vmatprep.subr.bf16.mxu1 %v6342_v56 }
 0x645   :  { %v1483_v61 = vpop.f32.mrb[10].mxu0  ;;  %v1554_v51 = vpop.f32.mrb[14].mxu1 }
 0x646   :  { %v1560_v50 = vadd.f32 %v1559_v28, %v1483_v61  ;;  %v1485_v52 = vpop.f32.mrb[11].mxu0  ;;  %v4668_v1 = vpop.f32.mrb[15].mxu1  ;;  %v1577_v3 = vadd.f32 %v1554_v51, %v6739_v35  ;;  %v2034_v28 = vld [vmem:[#allocation7 + $0x20] sm:$0xff]  ;;  %v2035_v61 = vld [vmem:[#allocation7 + $0x28] sm:$0xff] }
 0x647   :  { %v1570_v12 = vadd.f32 %v1568_v31, %v1485_v52  ;;  %v5572_v51 = vpack.c.bf16 %v2035_v61, %v2034_v28  ;;  %v2037_v52 = vld [vmem:[#allocation7 + $0x38] sm:$0xff]  ;;  %v2038_v31 = vld [vmem:[#allocation7 + $0x40] sm:$0xff] }
 0x648   :  { %v4102_v6 = vmul.f32 -1.442695, %v1560_v50  ;;  %v2036_v50 = vld [vmem:[#allocation7 + $0x30] sm:$0xff]  ;;  %v2162_v61 = vld [vmem:[%s7828_s7 + $0x138] sm:$0xff] }
 0x649   :  { %v4103_v15 = vmul.f32 -1.442695, %v1570_v12  ;;  %v5575_v1 = vpack.c.bf16 %v2037_v52, %v2036_v50  ;;  %v2166_v50 = vld [vmem:[%s7828_s7 + $0x158] sm:$0xff]  ;;  %v2169_v52 = vld [vmem:[%s7828_s7 + $0x170] sm:$0xff] }
 0x64a   :  { %6153 = vpow2.f32 %v4102_v6  ;;  %v2039_v6 = vld [vmem:[#allocation7 + $0x48] sm:$0xff] }
 0x64b   :  { %6155 = vpow2.f32 %v4103_v15  ;;  %v5578_v12 = vpack.c.bf16 %v2039_v6, %v2038_v31  ;;  %v2040_v15 = vld [vmem:[#allocation7 + $0x50] sm:$0xff]  ;;  %v5617_v31 = vpack.c.bf16 %v2169_v52, %v2166_v50  ;;  %v2337_v52 = vld [vmem:[#allocation9 + $0x20] sm:$0xff] }
 0x64c   :  { %v2168_v6 = vld [vmem:[%s7828_s7 + $0x168] sm:$0xff] }
 0x654   :  { %v6154_v16 = vpop.eup %6153 }
 0x655   :  { %v1564_v18 = vadd.f32 1.0, %v6154_v16  ;;  %v6156_v20 = vpop.eup %6155  ;;  %v2041_v16 = vld [vmem:[#allocation7 + $0x58] sm:$0xff] }
 0x656   :  { %v1574_v25 = vadd.f32 1.0, %v6156_v20  ;;  %v2042_v20 = vld [vmem:[#allocation7 + $0x60] sm:$0xff] }
 0x657   :  { %6157 = vrcp.f32 %v1564_v18  ;;  %v5581_v18 = vpack.c.bf16 %v2041_v16, %v2040_v15  ;;  %v1999_v15 = vld [vmem:[#allocation2 + $0x7] ss:$8 sm:$0x7] }
 0x658   :  { %6159 = vrcp.f32 %v1574_v25  ;;  %v2043_v25 = vld [vmem:[#allocation7 + $0x68] sm:$0xff] }
 0x661   :  { %v6158_v21 = vpop.eup %6157 }
 0x662   :  { %v1578_v30 = vmul.f32 %v6158_v21, %v1577_v3  ;;  %v6160_v38 = vpop.eup %6159  ;;  %v5584_v3 = vpack.c.bf16 %v2043_v25, %v2042_v20  ;;  %v2044_v21 = vld [vmem:[#allocation7 + $0x70] sm:$0xff] }
 0x663   :  { %v1583_v42 = vsub.f32 1.0, %v6160_v38  ;;  %v1585_v23 = vmul.f32 %v6160_v38, %v7102_v24  ;;  %v2033_v24 = vld [vmem:[#allocation7 + $0x18] sm:$0xff]  ;;  %v2127_v38 = vld [vmem:[%s7828_s7 + $0x20] sm:$0xff] }
 0x664   :  { %v1581_v32 = vadd.f32 %v1579_v29, %v1578_v30  ;;  %v5569_v48 = vpack.c.bf16 %v2033_v24, %v2032_v19  ;;  %v2045_v29 = vld [vmem:[#allocation7 + $0x78] sm:$0xff]  ;;  %v2160_v19 = vld [vmem:[%s7828_s7 + $0x128] sm:$0xff]  ;;  %v2163_v24 = vld [vmem:[%s7828_s7 + $0x140] sm:$0xff] }
 0x665   :  { %v5587_v30 = vpack.c.bf16 %v2045_v29, %v2044_v21  ;;  %v5613_v28 = vpack.c.bf16 %v2163_v24, %v2160_v19  ;;  %v2008_v21 = vrot.slane %v1999_v15, 1  ;;  %v2161_v19 = vld [vmem:[%s7828_s7 + $0x130] sm:$0xff]  ;;  %v2164_v24 = vld [vmem:[%s7828_s7 + $0x148] sm:$0xff] }
 0x666   :  { %6161 = vtanh.f32 %v1581_v32  ;;  %v2124_v32 = vld [vmem:[%s7828_s7 + $0x8] sm:$0xff] }
 0x670   :  { %v6162_v44 = vpop.eup %6161 }
 0x671   :  { %v1584_v49 = vmul.f32 %v6162_v44, %v1583_v42  ;;  %v2123_v42 = vld [vmem:[%s7828_s7] sm:$0xff]  ;;  %v5589_v44 = vpack.c.bf16 %v2127_v38, %v2124_v32 }
 0x673   :  { %v7144_v33 = vadd.f32 %v1585_v23, %v1584_v49  ;;  %v2126_v49 = vld [vmem:[%s7828_s7 + $0x18] sm:$0xff] }
 0x674   :  { %v5591_v23 = vpack.c.bf16 %v2126_v49, %v2123_v42 }
 0x675   :  { %v1587_v39 = vmax.f32 %v7144_v33, 0.0  ;;  %1702 = vmatmul.mubr.f32.vlgmr.msra.gmra.mrb[12].mxu0 %v7144_v33  ;;  %4702 = vmatmul.mubr.f32.vlgmr.msra.gmra.mrb[16].mxu1 %v7144_v33 }
 0x676   :  { %5512 = vmatpush1.bf16.msra.mxu0 %v6853_v5  ;;  %5543 = vmatpush3.bf16.msra.mxu1 %v7066_v54  ;;  %v1779_v5 = vld [vmem:[#allocation2 + $0x6] ss:$8 sm:$0x7] }
 0x677   :  { %1588 = vst [vmem:[#allocation3 + $0x5] sm:$0x1] %v1587_v39  ;;  %5514 = vmatprep.subr.bf16.mxu0 %v6863_v9  ;;  %5544 = vmatprep.subr.bf16.mxu1 %v6342_v56  ;;  %v2133_v39 = vld [vmem:[%s7828_s7 + $0x50] sm:$0xff] }
 0x678   :  { %1921 = vmatprep.mubr.f32.mxu0 %v6341_v0  ;;  %4736 = vmatprep.mubr.msk.f32.mxu1 %vm6343_vm1, %v6341_v0 }
 0x67a   :  { %5516 = vmatpush1.bf16.msra.mxu0 %v6871_v14  ;;  %5546 = vmatpush3.bf16.msra.mxu1 %v7076_v53 }
 0x67b   :  { %5518 = vmatprep.subr.bf16.mxu0 %v6881_v17  ;;  %5547 = vmatprep.subr.bf16.mxu1 %v6342_v56 }
 0x67e   :  { %5520 = vmatpush1.bf16.msra.mxu0 %v6889_v22  ;;  %5549 = vmatpush3.bf16.msra.mxu1 %v7086_v36 }
 0x67f   :  { %5522 = vmatprep.subr.bf16.mxu0 %v6899_v26  ;;  %5550 = vmatprep.subr.bf16.mxu1 %v6342_v56 }
 0x682   :  { %5524 = vmatpush1.bf16.msra.mxu0 %v6910_v37  ;;  %5552 = vmatpush3.bf16.msra.mxu1 %v6916_v41  ;;  %v1788_v37 = vrot.slane %v1779_v5, 1 }
 0x683   :  { %5526 = vmatprep.subr.bf16.mxu0 %v6926_v46  ;;  %5553 = vmatprep.subr.bf16.mxu1 %v6342_v56 }
 0x686   :  { %5528 = vmatpush1.bf16.msra.mxu0 %v6938_v34  ;;  %5555 = vmatpush3.bf16.msra.mxu1 %v6950_v55 }
 0x687   :  { %5530 = vmatprep.subr.bf16.mxu0 %v6952_v58  ;;  %5556 = vmatprep.subr.bf16.mxu1 %v6342_v56 }
 0x68a   :  { %5532 = vmatpush1.bf16.msra.mxu0 %v6964_v13  ;;  %5558 = vmatpush3.bf16.msra.mxu1 %v6977_v40 }
 0x68b   :  { %5534 = vmatprep.subr.bf16.mxu0 %v6979_v43  ;;  %5559 = vmatprep.subr.bf16.mxu1 %v6342_v56 }
 0x68e   :  { %5536 = vmatpush1.bf16.msra.mxu0 %v7001_v57  ;;  %5561 = vmatpush3.bf16.msra.mxu1 %v7005_v63  ;;  %v1799_v63 = vrot.slane %v1779_v5, 2 }
 0x68f   :  { %5538 = vmatprep.subr.bf16.mxu0 %v7007_v27  ;;  %5562 = vmatprep.subr.bf16.mxu1 %v6342_v56 }
 0x692   :  { %5540 = vmatpush1.bf16.msra.mxu0 %v7023_v7  ;;  %5564 = vmatpush3.bf16.msra.mxu1 %v7027_v10 }
 0x693   :  { %5565 = vmatprep.subr.bf16.mxu0 %v6342_v56  ;;  %5590 = vmatprep.subr.bf16.mxu1 %v5589_v44 }
 0x748   :  { %v1703_v9 = vpop.f32.mrb[12].mxu0  ;;  %v1774_v14 = vpop.f32.mrb[16].mxu1 }
 0x749   :  { %v1780_v17 = vadd.f32 %v1779_v5, %v1703_v9  ;;  %v1705_v22 = vpop.f32.mrb[13].mxu0  ;;  %v4703_v26 = vpop.f32.mrb[17].mxu1  ;;  %v1797_v43 = vadd.f32 %v1774_v14, %v6739_v35  ;;  %v2030_v35 = vld [vmem:[#allocation7] sm:$0xff]  ;;  %v2129_v5 = vld [vmem:[%s7828_s7 + $0x30] sm:$0xff]  ;;  %v2132_v14 = vld [vmem:[%s7828_s7 + $0x48] sm:$0xff] }
 0x74a   :  { %v1790_v46 = vadd.f32 %v1788_v37, %v1705_v22  ;;  %v5566_v11 = vpack.c.bf16 %v2031_v4, %v2030_v35  ;;  %v2136_v22 = vld [vmem:[%s7828_s7 + $0x68] sm:$0xff]  ;;  %v2139_v26 = vld [vmem:[%s7828_s7 + $0x80] sm:$0xff] }
 0x74b   :  { %v4104_v41 = vmul.f32 -1.442695, %v1780_v17  ;;  %v5595_v17 = vpack.c.bf16 %v2132_v14, %v2129_v5  ;;  %v2135_v37 = vld [vmem:[%s7828_s7 + $0x60] sm:$0xff]  ;;  %v2156_v4 = vld [vmem:[%s7828_s7 + $0x108] sm:$0xff]  ;;  %v2019_v5 = vrot.slane %v1999_v15, 2 }
 0x74c   :  { %v4105_v34 = vmul.f32 -1.442695, %v1790_v46  ;;  %v2138_v46 = vld [vmem:[%s7828_s7 + $0x78] sm:$0xff] }
 0x74d   :  { %6163 = vpow2.f32 %v4104_v41  ;;  %v5597_v41 = vpack.c.bf16 %v2139_v26, %v2136_v22 }
 0x74e   :  { %6165 = vpow2.f32 %v4105_v34  ;;  %v5599_v34 = vpack.c.bf16 %v2138_v46, %v2135_v37 }
 0x757   :  { %v6164_v55 = vpop.eup %6163 }
 0x758   :  { %v1784_v58 = vadd.f32 1.0, %v6164_v55  ;;  %v6166_v13 = vpop.eup %6165  ;;  %v2142_v55 = vld [vmem:[%s7828_s7 + $0x98] sm:$0xff] }
 0x759   :  { %v1794_v40 = vadd.f32 1.0, %v6166_v13  ;;  %v2141_v13 = vld [vmem:[%s7828_s7 + $0x90] sm:$0xff] }
 0x75a   :  { %6167 = vrcp.f32 %v1784_v58  ;;  %v2145_v58 = vld [vmem:[%s7828_s7 + $0xb0] sm:$0xff] }
 0x75b   :  { %6169 = vrcp.f32 %v1794_v40  ;;  %v5601_v40 = vpack.c.bf16 %v2145_v58, %v2142_v55  ;;  %v2125_v55 = vld [vmem:[%s7828_s7 + $0x10] sm:$0xff]  ;;  %v2128_v58 = vld [vmem:[%s7828_s7 + $0x28] sm:$0xff] }
 0x764   :  { %v6168_v57 = vpop.eup %6167 }
 0x765   :  { %v1798_v27 = vmul.f32 %v6168_v57, %v1797_v43  ;;  %v6170_v10 = vpop.eup %6169  ;;  %v2144_v43 = vld [vmem:[%s7828_s7 + $0xa8] sm:$0xff] }
 0x766   :  { %v1803_v54 = vsub.f32 1.0, %v6170_v10  ;;  %v1805_v45 = vmul.f32 %v6170_v10, %v7144_v33  ;;  %v2130_v33 = vld [vmem:[%s7828_s7 + $0x38] sm:$0xff]  ;;  %v5603_v57 = vpack.c.bf16 %v2144_v43, %v2141_v13  ;;  %v5622_v13 = vpack.c.bf16 %v2128_v58, %v2125_v55 }
 0x767   :  { %v1801_v7 = vadd.f32 %v1799_v63, %v1798_v27  ;;  %v5593_v9 = vpack.c.bf16 %v2133_v39, %v2130_v33  ;;  %v2148_v63 = vld [vmem:[%s7828_s7 + $0xc8] sm:$0xff]  ;;  %v2151_v27 = vld [vmem:[%s7828_s7 + $0xe0] sm:$0xff] }
 0x768   :  { %v5605_v10 = vpack.c.bf16 %v2151_v27, %v2148_v63  ;;  %v2137_v63 = vld [vmem:[%s7828_s7 + $0x70] sm:$0xff]  ;;  %v2140_v27 = vld [vmem:[%s7828_s7 + $0x88] sm:$0xff] }
 0x769   :  { %6171 = vtanh.f32 %v1801_v7  ;;  %v2147_v7 = vld [vmem:[%s7828_s7 + $0xc0] sm:$0xff] }
 0x773   :  { %v6172_v53 = vpop.eup %6171 }
 0x774   :  { %v1804_v36 = vmul.f32 %v6172_v53, %v1803_v54  ;;  %v2150_v54 = vld [vmem:[%s7828_s7 + $0xd8] sm:$0xff] }
 0x775   :  { %v5607_v53 = vpack.c.bf16 %v2150_v54, %v2147_v7  ;;  %v5628_v7 = vpack.c.bf16 %v2140_v27, %v2137_v63  ;;  %v2146_v54 = vld [vmem:[%s7828_s7 + $0xb8] sm:$0xff] }
 0x776   :  { %v7185_v47 = vadd.f32 %v1805_v45, %v1804_v36  ;;  %v2154_v36 = vld [vmem:[%s7828_s7 + $0xf8] sm:$0xff]  ;;  %v2157_v45 = vld [vmem:[%s7828_s7 + $0x110] sm:$0xff] }
 0x777   :  { %v5609_v35 = vpack.c.bf16 %v2157_v45, %v2154_v36  ;;  %v2149_v36 = vld [vmem:[%s7828_s7 + $0xd0] sm:$0xff]  ;;  %v2152_v45 = vld [vmem:[%s7828_s7 + $0xe8] sm:$0xff]  ;;  %v2357_v27 = vld [vmem:[#allocation9 + $0xc0] sm:$0xff] }
 0x778   :  { %v1807_v2 = vmax.f32 %v7185_v47, 0.0  ;;  %1922 = vmatmul.mubr.f32.vlgmr.msra.gmra.mrb[14].mxu0 %v7185_v47  ;;  %4737 = vmatmul.mubr.f32.vlgmr.msra.gmra.mrb[18].mxu1 %v7185_v47 }
 0x779   :  { %4771 = vmatprep.mubr.msk.f32.mxu0 %vm6343_vm1, %v6341_v0  ;;  %2252 = vmatprep.mubr.f32.mxu1 %v6341_v0 }
 0x77a   :  { %1808 = vst [vmem:[#allocation3 + $0x6] sm:$0x1] %v1807_v2  ;;  %5567 = vmatpush3.bf16.msra.mxu0 %v5566_v11  ;;  %5592 = vmatpush1.bf16.msra.mxu1 %v5591_v23  ;;  %v2153_v2 = vld [vmem:[%s7828_s7 + $0xf0] sm:$0xff]  ;;  %v6263_v23 = vld [vmem:[%s7825_s4] sm:$0x1] }
 0x77b   :  { %5568 = vmatprep.subr.bf16.mxu0 %v6342_v56  ;;  %5594 = vmatprep.subr.bf16.mxu1 %v5593_v9  ;;  %v5611_v11 = vpack.c.bf16 %v2156_v4, %v2153_v2  ;;  %v5634_v2 = vpack.c.bf16 %v2152_v45, %v2149_v36  ;;  %v2158_v4 = vld [vmem:[%s7828_s7 + $0x118] sm:$0xff]  ;;  %v2362_v36 = vld [vmem:[#allocation9 + $0xe8] sm:$0xff]  ;;  %v2364_v45 = vld [vmem:[#allocation9 + $0xf8] sm:$0xff] }
 0x77e   :  { %5570 = vmatpush3.bf16.msra.mxu0 %v5569_v48  ;;  %5596 = vmatpush1.bf16.msra.mxu1 %v5595_v17  ;;  %v2159_v48 = vld [vmem:[%s7828_s7 + $0x120] sm:$0xff] }
 0x77f   :  { %5571 = vmatprep.subr.bf16.mxu0 %v6342_v56  ;;  %5598 = vmatprep.subr.bf16.mxu1 %v5597_v41 }
 0x782   :  { %5573 = vmatpush3.bf16.msra.mxu0 %v5572_v51  ;;  %5600 = vmatpush1.bf16.msra.mxu1 %v5599_v34  ;;  %v5615_v51 = vpack.c.bf16 %v2162_v61, %v2159_v48  ;;  %v5640_v48 = vpack.c.bf16 %v2164_v24, %v2161_v19  ;;  %v2170_v61 = vld [vmem:[%s7828_s7 + $0x178] sm:$0xff]  ;;  %v2366_v24 = vld [vmem:[#allocation9 + $0x108] sm:$0xff] }
 0x783   :  { %5574 = vmatprep.subr.bf16.mxu0 %v6342_v56  ;;  %5602 = vmatprep.subr.bf16.mxu1 %v5601_v40  ;;  %v2131_v40 = vld [vmem:[%s7828_s7 + $0x40] sm:$0xff] }
 0x786   :  { %5576 = vmatpush3.bf16.msra.mxu0 %v5575_v1  ;;  %5604 = vmatpush1.bf16.msra.mxu1 %v5603_v57  ;;  %v2165_v1 = vld [vmem:[%s7828_s7 + $0x150] sm:$0xff] }
 0x787   :  { %5577 = vmatprep.subr.bf16.mxu0 %v6342_v56  ;;  %5606 = vmatprep.subr.bf16.mxu1 %v5605_v10  ;;  %v2143_v10 = vld [vmem:[%s7828_s7 + $0xa0] sm:$0xff] }
 0x78a   :  { %5579 = vmatpush3.bf16.msra.mxu0 %v5578_v12  ;;  %5608 = vmatpush1.bf16.msra.mxu1 %v5607_v53  ;;  %v5619_v12 = vpack.c.bf16 %v2168_v6, %v2165_v1  ;;  %v5631_v53 = vpack.c.bf16 %v2146_v54, %v2143_v10  ;;  %v2336_v6 = vld [vmem:[#allocation9 + $0x18] sm:$0xff] }
 0x78b   :  { %5580 = vmatprep.subr.bf16.mxu0 %v6342_v56  ;;  %5610 = vmatprep.subr.bf16.mxu1 %v5609_v35  ;;  %v2155_v35 = vld [vmem:[%s7828_s7 + $0x100] sm:$0xff]  ;;  %v2360_v54 = vld [vmem:[#allocation9 + $0xd8] sm:$0xff] }
 0x78e   :  { %5582 = vmatpush3.bf16.msra.mxu0 %v5581_v18  ;;  %5612 = vmatpush1.bf16.msra.mxu1 %v5611_v11  ;;  %v5637_v11 = vpack.c.bf16 %v2158_v4, %v2155_v35  ;;  %v7405_v35 = vpack.c.bf16 %v2360_v54, %v2357_v27  ;;  %v2363_v4 = vld [vmem:[#allocation9 + $0xf0] sm:$0xff] }
 0x78f   :  { %5583 = vmatprep.subr.bf16.mxu0 %v6342_v56  ;;  %5614 = vmatprep.subr.bf16.mxu1 %v5613_v28  ;;  %v2167_v28 = vld [vmem:[%s7828_s7 + $0x160] sm:$0xff] }
 0x790   :  { %v5643_v50 = vpack.c.bf16 %v2170_v61, %v2167_v28  ;;  %v2368_v28 = vld [vmem:[#allocation9 + $0x118] sm:$0xff]  ;;  %v2370_v61 = vld [vmem:[#allocation9 + $0x128] sm:$0xff] }
 0x792   :  { %5585 = vmatpush3.bf16.msra.mxu0 %v5584_v3  ;;  %5616 = vmatpush1.bf16.msra.mxu1 %v5615_v51  ;;  %v2334_v51 = vld [vmem:[#allocation9 + $0x8] sm:$0xff] }
 0x793   :  { %5586 = vmatprep.subr.bf16.mxu0 %v6342_v56  ;;  %5618 = vmatprep.subr.bf16.mxu1 %v5617_v31  ;;  %v7358_v1 = vpack.c.bf16 %v2337_v52, %v2334_v51  ;;  %v2333_v31 = vld [vmem:[#allocation9] sm:$0xff] }
 0x794   :  { %v2373_v51 = vld [vmem:[#allocation9 + $0x140] sm:$0xff] }
 0x795   :  { %v2369_v52 = vld [vmem:[#allocation9 + $0x120] sm:$0xff] }
 0x796   :  { %5588 = vmatpush3.bf16.msra.mxu0 %v5587_v30  ;;  %5620 = vmatpush1.bf16.msra.mxu1 %v5619_v12  ;;  %v2335_v12 = vld [vmem:[#allocation9 + $0x10] sm:$0xff] }
 0x797   :  { %5621 = vmatprep.subr.bf16.mxu0 %v6342_v56  ;;  %5646 = vmatprep.subr.bf16.mxu1 %v7358_v1 }
 0x84b   :  { %v1923_v16 = vpop.f32.mrb[14].mxu0  ;;  %v1994_v18 = vpop.f32.mrb[18].mxu1 }
 0x84c   :  { %v2000_v20 = vadd.f32 %v1999_v15, %v1923_v16  ;;  %v1925_v25 = vpop.f32.mrb[15].mxu0  ;;  %v4738_v3 = vpop.f32.mrb[19].mxu1  ;;  %v2017_v33 = vadd.f32 %v6263_v23, %v1994_v18  ;;  %v2338_v15 = vld [vmem:[#allocation9 + $0x28] sm:$0xff]  ;;  %v2340_v18 = vld [vmem:[#allocation9 + $0x38] sm:$0xff] }
 0x84d   :  { %v2010_v30 = vadd.f32 %v2008_v21, %v1925_v25  ;;  %v4108_v16 = vld [vmem:[%s7827_s6] ss:$0 sm:$0xff]  ;;  %v7365_v3 = vpack.c.bf16 %v2336_v6, %v2333_v31  ;;  %v2339_v21 = vld [vmem:[#allocation9 + $0x30] sm:$0xff]  ;;  %v7421_v6 = vpack.c.bf16 %v2373_v51, %v2370_v61 }
 0x84e   :  { %v4106_v29 = vmul.f32 -1.442695, %v2000_v20  ;;  %v2343_v20 = vld [vmem:[#allocation9 + $0x50] sm:$0xff]  ;;  %v2346_v23 = vld [vmem:[#allocation9 + $0x68] sm:$0xff] }
 0x84f   :  { %v4107_v32 = vmul.f32 -1.442695, %v2010_v30 }
 0x850   :  { %6173 = vpow2.f32 %v4106_v29  ;;  %v7367_v29 = vpack.c.bf16 %v2338_v15, %v2335_v12  ;;  %v2372_v12 = vld [vmem:[#allocation9 + $0x138] sm:$0xff]  ;;  %v2371_v15 = vld [vmem:[#allocation9 + $0x130] sm:$0xff] }
 0x851   :  { %6175 = vpow2.f32 %v4107_v32 }
 0x85a   :  { %v6174_v38 = vpop.eup %6173 }
 0x85b   :  { %v2004_v42 = vadd.f32 1.0, %v6174_v38  ;;  %v6176_v44 = vpop.eup %6175  ;;  %v7369_v38 = vpack.c.bf16 %v2343_v20, %v2340_v18  ;;  %v2376_v18 = vld [vmem:[#allocation9 + $0x158] sm:$0xff]  ;;  %v2379_v20 = vld [vmem:[#allocation9 + $0x170] sm:$0xff] }
 0x85c   :  { %v2014_v49 = vadd.f32 1.0, %v6176_v44  ;;  %v2341_v44 = vld [vmem:[#allocation9 + $0x40] sm:$0xff] }
 0x85d   :  { %6177 = vrcp.f32 %v2004_v42  ;;  %v2342_v42 = vld [vmem:[#allocation9 + $0x48] sm:$0xff] }
 0x85e   :  { %6179 = vrcp.f32 %v2014_v49  ;;  %v2344_v49 = vld [vmem:[#allocation9 + $0x58] sm:$0xff] }
 0x867   :  { %v6178_v39 = vpop.eup %6177 }
 0x868   :  { %v2018_v9 = vmul.f32 %v6178_v39, %v2017_v33  ;;  %v6180_v17 = vpop.eup %6179  ;;  %v2349_v33 = vld [vmem:[#allocation9 + $0x80] sm:$0xff]  ;;  %v7372_v39 = vpack.c.bf16 %v2342_v42, %v2339_v21  ;;  %v2375_v21 = vld [vmem:[#allocation9 + $0x150] sm:$0xff]  ;;  %v2378_v42 = vld [vmem:[#allocation9 + $0x168] sm:$0xff] }
 0x869   :  { %v2023_v22 = vsub.f32 1.0, %v6180_v17  ;;  %v2025_v41 = vmul.f32 %v6180_v17, %v7185_v47  ;;  %v2134_v47 = vld [vmem:[%s7828_s7 + $0x58] sm:$0xff]  ;;  %v2348_v17 = vld [vmem:[#allocation9 + $0x78] sm:$0xff] }
 0x86a   :  { %v2021_v14 = vadd.f32 %v2019_v5, %v2018_v9  ;;  %v5625_v57 = vpack.c.bf16 %v2134_v47, %v2131_v40  ;;  %v2345_v5 = vld [vmem:[#allocation9 + $0x60] sm:$0xff]  ;;  %v7375_v9 = vpack.c.bf16 %v2344_v49, %v2341_v44  ;;  %v2356_v47 = vld [vmem:[#allocation9 + $0xb8] sm:$0xff] }
 0x86b   :  { %v2353_v40 = vld [vmem:[#allocation9 + $0xa0] sm:$0xff]  ;;  %v2380_v49 = vld [vmem:[#allocation9 + $0x178] sm:$0xff] }
 0x86c   :  { %6181 = vtanh.f32 %v2021_v14  ;;  %v7378_v14 = vpack.c.bf16 %v2349_v33, %v2346_v23  ;;  %v2377_v44 = vld [vmem:[#allocation9 + $0x160] sm:$0xff]  ;;  %v7435_v23 = vpack.c.bf16 %v2378_v42, %v2375_v21 }
 0x86d   :  { %v7438_v33 = vpack.c.bf16 %v2380_v49, %v2377_v44 }
 0x876   :  { %v6182_v26 = vpop.eup %6181 }
 0x877   :  { %v2024_v37 = vmul.f32 %v6182_v26, %v2023_v22  ;;  %v2347_v22 = vld [vmem:[#allocation9 + $0x70] sm:$0xff]  ;;  %v2350_v26 = vld [vmem:[#allocation9 + $0x88] sm:$0xff] }
 0x878   :  { %v7388_v55 = vpack.c.bf16 %v2350_v26, %v2347_v22 }
 0x879   :  { %v2026_v46 = vadd.f32 %v2025_v41, %v2024_v37  ;;  %v2352_v37 = vld [vmem:[#allocation9 + $0x98] sm:$0xff]  ;;  %v2355_v41 = vld [vmem:[#allocation9 + $0xb0] sm:$0xff] }
 0x87a   :  { %v7391_v58 = vpack.c.bf16 %v2355_v41, %v2352_v37 }
 0x87b   :  { %v2027_v34 = vmax.f32 %v2026_v46, 0.0  ;;  %v7385_v46 = vpack.c.bf16 %v2348_v17, %v2345_v5  ;;  %v2171_v5 = vld [vmem:[%s7829_s8] sm:$0x7] }
 0x87c   :  { %v2176_v17 = vrot.slane %v2171_v5, %v108_v60  ;;  %v2184_v22 = vrot.slane %v2171_v5, %v116_v8  ;;  %v2180_v26 = vrot.slane %v2171_v5, %v112_v62 }
 0x87d   :  { %2028 = vst [vmem:[#allocation3 + $0x7] sm:$0x1] %v2027_v34  ;;  %v2351_v34 = vld [vmem:[#allocation9 + $0x90] sm:$0xff] }
 0x884   :  { %v2029_v43 = vld [vmem:[#allocation3] sm:$0xff] }
 0x885   :  { %4772 = vmatmul.mubr.f32.vlgmr.msra.gmra.mrb[16].mxu0 %v2029_v43  ;;  %v2358_v43 = vld [vmem:[#allocation9 + $0xc8] sm:$0xff] }
 0x886   :  { %5623 = vmatpush3.bf16.msra.mxu0 %v5622_v13  ;;  %4806 = vmatprep.mubr.msk.f32.mxu0 %vm6343_vm1, %v6341_v0  ;;  %v2354_v13 = vld [vmem:[#allocation9 + $0xa8] sm:$0xff] }
 0x887   :  { %5624 = vmatprep.subr.bf16.mxu0 %v6342_v56  ;;  %v7395_v63 = vpack.c.bf16 %v2354_v13, %v2351_v34 }
 0x88a   :  { %5626 = vmatpush3.bf16.msra.mxu0 %v5625_v57  ;;  %v2361_v57 = vld [vmem:[#allocation9 + $0xe0] sm:$0xff] }
 0x88b   :  { %5627 = vmatprep.subr.bf16.mxu0 %v6342_v56  ;;  %v7401_v10 = vpack.c.bf16 %v2361_v57, %v2358_v43 }
 0x88e   :  { %5629 = vmatpush3.bf16.msra.mxu0 %v5628_v7  ;;  %v7398_v7 = vpack.c.bf16 %v2356_v47, %v2353_v40 }
 0x88f   :  { %5630 = vmatprep.subr.bf16.mxu0 %v6342_v56 }
 0x892   :  { %5632 = vmatpush3.bf16.msra.mxu0 %v5631_v53  ;;  %v2359_v53 = vld [vmem:[#allocation9 + $0xd0] sm:$0xff] }
 0x893   :  { %5633 = vmatprep.subr.bf16.mxu0 %v6342_v56 }
 0x896   :  { %5635 = vmatpush3.bf16.msra.mxu0 %v5634_v2  ;;  %v2367_v2 = vld [vmem:[#allocation9 + $0x110] sm:$0xff] }
 0x897   :  { %5636 = vmatprep.subr.bf16.mxu0 %v6342_v56  ;;  %v7411_v19 = vpack.c.bf16 %v2367_v2, %v2364_v45 }
 0x89a   :  { %5638 = vmatpush3.bf16.msra.mxu0 %v5637_v11  ;;  %v7408_v11 = vpack.c.bf16 %v2362_v36, %v2359_v53 }
 0x89b   :  { %5639 = vmatprep.subr.bf16.mxu0 %v6342_v56 }
 0x89e   :  { %5641 = vmatpush3.bf16.msra.mxu0 %v5640_v48  ;;  %v2365_v48 = vld [vmem:[#allocation9 + $0x100] sm:$0xff] }
 0x89f   :  { %5642 = vmatprep.subr.bf16.mxu0 %v6342_v56  ;;  %v7418_v31 = vpack.c.bf16 %v2368_v28, %v2365_v48  ;;  %v7495_v48 = vld [vmem:[%s7831_s10] sm:$0x1] }
 0x8a2   :  { %5644 = vmatpush3.bf16.msra.mxu0 %v5643_v50  ;;  %v7415_v50 = vpack.c.bf16 %v2366_v24, %v2363_v4 }
 0x8a3   :  { %5677 = vmatprep.subr.bf16.mxu0 %v6342_v56 }
 0x958   :  { %v2119_v25 = vpop.f32.mrb[16].mxu0 }
 0x959   :  { %v2120_v30 = vadd.f32 %v4108_v16, %v2119_v25  ;;  %v4773_v32 = vpop.f32.mrb[17].mxu0  ;;  %v2374_v16 = vld [vmem:[#allocation9 + $0x148] sm:$0xff]  ;;  %v7425_v25 = vpack.c.bf16 %v2372_v12, %v2369_v52 }
 0x95a   :  { %v7431_v32 = vpack.c.bf16 %v2379_v20, %v2376_v18 }
 0x95b   :  { %2253 = vmatmul.mubr.f32.vlgmr.msra.gmra.mrb[20].mxu1 %v2120_v30  ;;  %4807 = vmatmul.mubr.f32.vlgmr.msra.gmra.mrb[18].mxu0 %v2120_v30  ;;  %v7428_v30 = vpack.c.bf16 %v2374_v16, %v2371_v15 }
 0x95c   :  { %5648 = vmatpush1.bf16.msra.mxu1 %v7365_v3  ;;  %5679 = vmatpush3.bf16.msra.mxu0 %v7367_v29 }
 0x95d   :  { %5650 = vmatprep.subr.bf16.mxu1 %v7369_v38  ;;  %5680 = vmatprep.subr.bf16.mxu0 %v6342_v56 }
 0x95e   :  { %2445 = vmatprep.mubr.f32.mxu1 %v6341_v0  ;;  %4841 = vmatprep.mubr.msk.f32.mxu0 %vm6343_vm1, %v6341_v0 }
 0x960   :  { %5652 = vmatpush1.bf16.msra.mxu1 %v7372_v39  ;;  %5682 = vmatpush3.bf16.msra.mxu0 %v7375_v9 }
 0x961   :  { %5654 = vmatprep.subr.bf16.mxu1 %v7378_v14  ;;  %5683 = vmatprep.subr.bf16.mxu0 %v6342_v56 }
 0x964   :  { %5656 = vmatpush1.bf16.msra.mxu1 %v7385_v46  ;;  %5685 = vmatpush3.bf16.msra.mxu0 %v7388_v55 }
 0x965   :  { %5658 = vmatprep.subr.bf16.mxu1 %v7391_v58  ;;  %5686 = vmatprep.subr.bf16.mxu0 %v6342_v56 }
 0x968   :  { %5660 = vmatpush1.bf16.msra.mxu1 %v7395_v63  ;;  %5688 = vmatpush3.bf16.msra.mxu0 %v7398_v7 }
 0x969   :  { %5662 = vmatprep.subr.bf16.mxu1 %v7401_v10  ;;  %5689 = vmatprep.subr.bf16.mxu0 %v6342_v56 }
 0x96c   :  { %5664 = vmatpush1.bf16.msra.mxu1 %v7405_v35  ;;  %5691 = vmatpush3.bf16.msra.mxu0 %v7408_v11 }
 0x96d   :  { %5666 = vmatprep.subr.bf16.mxu1 %v7411_v19  ;;  %5692 = vmatprep.subr.bf16.mxu0 %v6342_v56 }
 0x970   :  { %5668 = vmatpush1.bf16.msra.mxu1 %v7415_v50  ;;  %5694 = vmatpush3.bf16.msra.mxu0 %v7418_v31 }
 0x971   :  { %5670 = vmatprep.subr.bf16.mxu1 %v7421_v6  ;;  %5695 = vmatprep.subr.bf16.mxu0 %v6342_v56 }
 0x974   :  { %5672 = vmatpush1.bf16.msra.mxu1 %v7425_v25  ;;  %5697 = vmatpush3.bf16.msra.mxu0 %v7428_v30 }
 0x975   :  { %5674 = vmatprep.subr.bf16.mxu1 %v7431_v32  ;;  %5698 = vmatprep.subr.bf16.mxu0 %v6342_v56 }
 0x978   :  { %5676 = vmatpush1.bf16.msra.mxu1 %v7435_v23  ;;  %5700 = vmatpush3.bf16.msra.mxu0 %v7438_v33 }
 0x979   :  { %5702 = vmatprep.subr.bf16.mxu1 %v7358_v1  ;;  %5733 = vmatprep.subr.bf16.mxu0 %v6342_v56 }
 0x97b   :  { %2446 = vmatmul.mubr.f32.vlgmr.msra.gmra.mrb[22].mxu1 %v6341_v0  ;;  %4842 = vmatmul.mubr.f32.vlgmr.msra.gmra.mrb[20].mxu0 %v6341_v0 }
 0x97c   :  { %5704 = vmatpush1.bf16.msra.mxu1 %v7365_v3  ;;  %5735 = vmatpush3.bf16.msra.mxu0 %v7367_v29 }
 0x97d   :  { %5706 = vmatprep.subr.bf16.mxu1 %v7369_v38  ;;  %5736 = vmatprep.subr.bf16.mxu0 %v6342_v56 }
 0x97e   :  { %2663 = vmatprep.mubr.f32.mxu1 %v6341_v0  ;;  %4876 = vmatprep.mubr.msk.f32.mxu0 %vm6343_vm1, %v6341_v0 }
 0x980   :  { %5708 = vmatpush1.bf16.msra.mxu1 %v7372_v39  ;;  %5738 = vmatpush3.bf16.msra.mxu0 %v7375_v9 }
 0x981   :  { %5710 = vmatprep.subr.bf16.mxu1 %v7378_v14  ;;  %5739 = vmatprep.subr.bf16.mxu0 %v6342_v56 }
 0x984   :  { %5712 = vmatpush1.bf16.msra.mxu1 %v7385_v46  ;;  %5741 = vmatpush3.bf16.msra.mxu0 %v7388_v55 }
 0x985   :  { %5714 = vmatprep.subr.bf16.mxu1 %v7391_v58  ;;  %5742 = vmatprep.subr.bf16.mxu0 %v6342_v56 }
 0x988   :  { %5716 = vmatpush1.bf16.msra.mxu1 %v7395_v63  ;;  %5744 = vmatpush3.bf16.msra.mxu0 %v7398_v7 }
 0x989   :  { %5718 = vmatprep.subr.bf16.mxu1 %v7401_v10  ;;  %5745 = vmatprep.subr.bf16.mxu0 %v6342_v56 }
 0x98c   :  { %5720 = vmatpush1.bf16.msra.mxu1 %v7405_v35  ;;  %5747 = vmatpush3.bf16.msra.mxu0 %v7408_v11 }
 0x98d   :  { %5722 = vmatprep.subr.bf16.mxu1 %v7411_v19  ;;  %5748 = vmatprep.subr.bf16.mxu0 %v6342_v56 }
 0x990   :  { %5724 = vmatpush1.bf16.msra.mxu1 %v7415_v50  ;;  %5750 = vmatpush3.bf16.msra.mxu0 %v7418_v31 }
 0x991   :  { %5726 = vmatprep.subr.bf16.mxu1 %v7421_v6  ;;  %5751 = vmatprep.subr.bf16.mxu0 %v6342_v56 }
 0x994   :  { %5728 = vmatpush1.bf16.msra.mxu1 %v7425_v25  ;;  %5753 = vmatpush3.bf16.msra.mxu0 %v7428_v30 }
 0x995   :  { %5730 = vmatprep.subr.bf16.mxu1 %v7431_v32  ;;  %5754 = vmatprep.subr.bf16.mxu0 %v6342_v56 }
 0x998   :  { %5732 = vmatpush1.bf16.msra.mxu1 %v7435_v23  ;;  %5756 = vmatpush3.bf16.msra.mxu0 %v7438_v33 }
 0x999   :  { %5758 = vmatprep.subr.bf16.mxu1 %v7358_v1  ;;  %5789 = vmatprep.subr.bf16.mxu0 %v6342_v56 }
 0xa2e   :  { %v2254_v37 = vpop.f32.mrb[20].mxu1  ;;  %v2325_v41 = vpop.f32.mrb[18].mxu0 }
 0xa2f   :  { %v2255_v34 = vadd.f32 %v2254_v37, %v2176_v17  ;;  %v2326_v13 = vadd.f32 %v2325_v41, %v2184_v22  ;;  %v2256_v40 = vpop.f32.mrb[21].mxu1  ;;  %v4808_v47 = vpop.f32.mrb[19].mxu0 }
 0xa30   :  { %v2257_v43 = vadd.f32 %v2256_v40, %v2180_v26 }
 0xa31   :  { %2329 = vst [vmem:[#allocation4] sm:$0xff] %v2255_v34  ;;  %2331 = vst [vmem:[#allocation4 + $0x10] sm:$0xff] %v2326_v13 }
 0xa32   :  { %2330 = vst [vmem:[#allocation4 + $0x8] sm:$0xff] %v2257_v43 }
 0xa39   :  { %v2522_v57 = vld [vmem:[#allocation4] ss:$8 sm:$0x7]  ;;  %v2741_v49 = vld [vmem:[#allocation4 + $0x1] ss:$8 sm:$0x7] }
 0xa3a   :  { %v2531_v8 = vrot.slane %v2522_v57, 1  ;;  %v2542_v52 = vrot.slane %v2522_v57, 2  ;;  %v2750_v41 = vrot.slane %v2741_v49, 1 }
 0xa4e   :  { %v2447_v27 = vpop.f32.mrb[22].mxu1  ;;  %v2518_v54 = vpop.f32.mrb[20].mxu0 }
 0xa4f   :  { %v2523_v60 = vadd.f32 %v2522_v57, %v2447_v27  ;;  %v2449_v53 = vpop.f32.mrb[23].mxu1  ;;  %v4843_v36 = vpop.f32.mrb[21].mxu0  ;;  %v2540_v61 = vadd.f32 %v2518_v54, %v7495_v48 }
 0xa50   :  { %v2533_v59 = vadd.f32 %v2531_v8, %v2449_v53 }
 0xa51   :  { %v4109_v45 = vmul.f32 -1.442695, %v2523_v60  ;;  %v2761_v60 = vrot.slane %v2741_v49, 2 }
 0xa52   :  { %v4110_v62 = vmul.f32 -1.442695, %v2533_v59 }
 0xa53   :  { %6183 = vpow2.f32 %v4109_v45 }
 0xa54   :  { %6185 = vpow2.f32 %v4110_v62 }
 0xa5d   :  { %v6184_v2 = vpop.eup %6183 }
 0xa5e   :  { %v2527_v4 = vadd.f32 1.0, %v6184_v2  ;;  %v6186_v24 = vpop.eup %6185 }
 0xa5f   :  { %v2537_v28 = vadd.f32 1.0, %v6186_v24 }
 0xa60   :  { %6187 = vrcp.f32 %v2527_v4 }
 0xa61   :  { %6189 = vrcp.f32 %v2537_v28 }
 0xa6a   :  { %v6188_v51 = vpop.eup %6187 }
 0xa6b   :  { %v2541_v12 = vmul.f32 %v6188_v51, %v2540_v61  ;;  %v6190_v16 = vpop.eup %6189 }
 0xa6c   :  { %v2546_v18 = vsub.f32 1.0, %v6190_v16  ;;  %v2548_v42 = vmul.f32 0.0, %v6190_v16 }
 0xa6d   :  { %v2544_v15 = vadd.f32 %v2542_v52, %v2541_v12 }
 0xa6f   :  { %6191 = vtanh.f32 %v2544_v15  ;;  %v3212_v15 = vld [vmem:[#allocation9 + $0x20] sm:$0xff] }
 0xa79   :  { %v6192_v20 = vpop.eup %6191 }
 0xa7a   :  { %v2547_v21 = vmul.f32 %v6192_v20, %v2546_v18  ;;  %v3208_v18 = vld [vmem:[#allocation9] sm:$0xff]  ;;  %v3211_v20 = vld [vmem:[#allocation9 + $0x18] sm:$0xff] }
 0xa7c   :  { %v7498_v44 = vadd.f32 %v2548_v42, %v2547_v21  ;;  %v7608_v21 = vpack.c.bf16 %v3211_v20, %v3208_v18 }
 0xa7e   :  { %2550 = vst [vmem:[%s7832_s11] sm:$0x1] %v7498_v44  ;;  %2664 = vmatmul.mubr.f32.vlgmr.msra.gmra.mrb[24].mxu1 %v7498_v44  ;;  %4877 = vmatmul.mubr.f32.vlgmr.msra.gmra.mrb[22].mxu0 %v7498_v44 }
 0xa7f   :  { %5760 = vmatpush1.bf16.msra.mxu1 %v7365_v3  ;;  %5791 = vmatpush3.bf16.msra.mxu0 %v7367_v29 }
 0xa80   :  { %5762 = vmatprep.subr.bf16.mxu1 %v7369_v38  ;;  %5792 = vmatprep.subr.bf16.mxu0 %v6342_v56 }
 0xa81   :  { %2882 = vmatprep.mubr.f32.mxu1 %v6341_v0  ;;  %4911 = vmatprep.mubr.msk.f32.mxu0 %vm6343_vm1, %v6341_v0 }
 0xa83   :  { %5764 = vmatpush1.bf16.msra.mxu1 %v7372_v39  ;;  %5794 = vmatpush3.bf16.msra.mxu0 %v7375_v9 }
 0xa84   :  { %5766 = vmatprep.subr.bf16.mxu1 %v7378_v14  ;;  %5795 = vmatprep.subr.bf16.mxu0 %v6342_v56 }
 0xa87   :  { %5768 = vmatpush1.bf16.msra.mxu1 %v7385_v46  ;;  %5797 = vmatpush3.bf16.msra.mxu0 %v7388_v55 }
 0xa88   :  { %5770 = vmatprep.subr.bf16.mxu1 %v7391_v58  ;;  %5798 = vmatprep.subr.bf16.mxu0 %v6342_v56 }
 0xa8b   :  { %5772 = vmatpush1.bf16.msra.mxu1 %v7395_v63  ;;  %5800 = vmatpush3.bf16.msra.mxu0 %v7398_v7 }
 0xa8c   :  { %5774 = vmatprep.subr.bf16.mxu1 %v7401_v10  ;;  %5801 = vmatprep.subr.bf16.mxu0 %v6342_v56 }
 0xa8f   :  { %5776 = vmatpush1.bf16.msra.mxu1 %v7405_v35  ;;  %5803 = vmatpush3.bf16.msra.mxu0 %v7408_v11 }
 0xa90   :  { %5778 = vmatprep.subr.bf16.mxu1 %v7411_v19  ;;  %5804 = vmatprep.subr.bf16.mxu0 %v6342_v56 }
 0xa93   :  { %5780 = vmatpush1.bf16.msra.mxu1 %v7415_v50  ;;  %5806 = vmatpush3.bf16.msra.mxu0 %v7418_v31 }
 0xa94   :  { %5782 = vmatprep.subr.bf16.mxu1 %v7421_v6  ;;  %5807 = vmatprep.subr.bf16.mxu0 %v6342_v56 }
 0xa97   :  { %5784 = vmatpush1.bf16.msra.mxu1 %v7425_v25  ;;  %5809 = vmatpush3.bf16.msra.mxu0 %v7428_v30 }
 0xa98   :  { %5786 = vmatprep.subr.bf16.mxu1 %v7431_v32  ;;  %5810 = vmatprep.subr.bf16.mxu0 %v6342_v56 }
 0xa9b   :  { %5788 = vmatpush1.bf16.msra.mxu1 %v7435_v23  ;;  %5812 = vmatpush3.bf16.msra.mxu0 %v7438_v33 }
 0xa9c   :  { %5814 = vmatprep.subr.bf16.mxu1 %v7358_v1  ;;  %5845 = vmatprep.subr.bf16.mxu0 %v6342_v56 }
 0xb51   :  { %v2665_v5 = vpop.f32.mrb[24].mxu1  ;;  %v2736_v17 = vpop.f32.mrb[22].mxu0 }
 0xb52   :  { %v2742_v22 = vadd.f32 %v2741_v49, %v2665_v5  ;;  %v2667_v26 = vpop.f32.mrb[25].mxu1  ;;  %v4878_v37 = vpop.f32.mrb[23].mxu0  ;;  %v2759_v1 = vadd.f32 %v2736_v17, %v7495_v48  ;;  %v3221_v5 = vld [vmem:[#allocation9 + $0x68] sm:$0xff]  ;;  %v3224_v17 = vld [vmem:[#allocation9 + $0x80] sm:$0xff] }
 0xb53   :  { %v2752_v13 = vadd.f32 %v2750_v41, %v2667_v26  ;;  %v3220_v26 = vld [vmem:[#allocation9 + $0x60] sm:$0xff]  ;;  %v3223_v37 = vld [vmem:[#allocation9 + $0x78] sm:$0xff] }
 0xb54   :  { %v4111_v34 = vmul.f32 -1.442695, %v2742_v22  ;;  %v7618_v22 = vpack.c.bf16 %v3224_v17, %v3221_v5  ;;  %v7620_v41 = vpack.c.bf16 %v3223_v37, %v3220_v26 }
 0xb55   :  { %v4112_v40 = vmul.f32 -1.442695, %v2752_v13  ;;  %v3230_v13 = vld [vmem:[#allocation9 + $0xb0] sm:$0xff] }
 0xb56   :  { %6193 = vpow2.f32 %v4111_v34  ;;  %v3227_v34 = vld [vmem:[#allocation9 + $0x98] sm:$0xff] }
 0xb57   :  { %6195 = vpow2.f32 %v4112_v40  ;;  %v7624_v40 = vpack.c.bf16 %v3230_v13, %v3227_v34 }
 0xb60   :  { %v6194_v47 = vpop.eup %6193 }
 0xb61   :  { %v2746_v43 = vadd.f32 1.0, %v6194_v47  ;;  %v6196_v57 = vpop.eup %6195  ;;  %v3226_v47 = vld [vmem:[#allocation9 + $0x90] sm:$0xff] }
 0xb62   :  { %v2756_v27 = vadd.f32 1.0, %v6196_v57 }
 0xb63   :  { %6197 = vrcp.f32 %v2746_v43  ;;  %v3229_v43 = vld [vmem:[#allocation9 + $0xa8] sm:$0xff] }
 0xb64   :  { %6199 = vrcp.f32 %v2756_v27  ;;  %v7626_v57 = vpack.c.bf16 %v3229_v43, %v3226_v47  ;;  %v3233_v27 = vld [vmem:[#allocation9 + $0xc8] sm:$0xff] }
 0xb6d   :  { %v6198_v54 = vpop.eup %6197 }
 0xb6e   :  { %v2760_v53 = vmul.f32 %v6198_v54, %v2759_v1  ;;  %v6200_v8 = vpop.eup %6199  ;;  %v3236_v1 = vld [vmem:[#allocation9 + $0xe0] sm:$0xff] }
 0xb6f   :  { %v2765_v45 = vsub.f32 1.0, %v6200_v8  ;;  %v2767_v2 = vmul.f32 %v6200_v8, %v7498_v44  ;;  %v3214_v44 = vld [vmem:[#allocation9 + $0x30] sm:$0xff]  ;;  %v3232_v54 = vld [vmem:[#allocation9 + $0xc0] sm:$0xff]  ;;  %v3237_v8 = vld [vmem:[#allocation9 + $0xe8] sm:$0xff] }
 0xb70   :  { %v2763_v36 = vadd.f32 %v2761_v60, %v2760_v53  ;;  %v7629_v60 = vpack.c.bf16 %v3236_v1, %v3233_v27  ;;  %v3235_v53 = vld [vmem:[#allocation9 + $0xd8] sm:$0xff] }
 0xb72   :  { %6201 = vtanh.f32 %v2763_v36  ;;  %v3234_v36 = vld [vmem:[#allocation9 + $0xd0] sm:$0xff] }
 0xb7c   :  { %v6202_v59 = vpop.eup %6201 }
 0xb7d   :  { %v2766_v62 = vmul.f32 %v6202_v59, %v2765_v45  ;;  %v7632_v45 = vpack.c.bf16 %v3235_v53, %v3232_v54  ;;  %v7634_v59 = vpack.c.bf16 %v3237_v8, %v3234_v36 }
 0xb7f   :  { %v7543_v4 = vadd.f32 %v2767_v2, %v2766_v62  ;;  %v3239_v62 = vld [vmem:[#allocation9 + $0xf8] sm:$0xff]  ;;  %v3242_v2 = vld [vmem:[#allocation9 + $0x110] sm:$0xff] }
 0xb81   :  { %2769 = vst [vmem:[%s7832_s11 + $0x1] sm:$0x1] %v7543_v4  ;;  %2883 = vmatmul.mubr.f32.vlgmr.msra.gmra.mrb[26].mxu1 %v7543_v4  ;;  %4912 = vmatmul.mubr.f32.vlgmr.msra.gmra.mrb[24].mxu0 %v7543_v4 }
 0xb82   :  { %5816 = vmatpush1.bf16.msra.mxu1 %v7365_v3  ;;  %5847 = vmatpush3.bf16.msra.mxu0 %v7367_v29  ;;  %v2960_v3 = vld [vmem:[#allocation4 + $0x2] ss:$8 sm:$0x7] }
 0xb83   :  { %5818 = vmatprep.subr.bf16.mxu1 %v7369_v38  ;;  %5848 = vmatprep.subr.bf16.mxu0 %v6342_v56 }
 0xb84   :  { %3101 = vmatprep.mubr.f32.mxu1 %v6341_v0  ;;  %4946 = vmatprep.mubr.msk.f32.mxu0 %vm6343_vm1, %v6341_v0 }
 0xb86   :  { %5820 = vmatpush1.bf16.msra.mxu1 %v7372_v39  ;;  %5850 = vmatpush3.bf16.msra.mxu0 %v7375_v9 }
 0xb87   :  { %5822 = vmatprep.subr.bf16.mxu1 %v7378_v14  ;;  %5851 = vmatprep.subr.bf16.mxu0 %v6342_v56 }
 0xb8a   :  { %5824 = vmatpush1.bf16.msra.mxu1 %v7385_v46  ;;  %5853 = vmatpush3.bf16.msra.mxu0 %v7388_v55 }
 0xb8b   :  { %5826 = vmatprep.subr.bf16.mxu1 %v7391_v58  ;;  %5854 = vmatprep.subr.bf16.mxu0 %v6342_v56 }
 0xb8e   :  { %5828 = vmatpush1.bf16.msra.mxu1 %v7395_v63  ;;  %5856 = vmatpush3.bf16.msra.mxu0 %v7398_v7  ;;  %v2969_v63 = vrot.slane %v2960_v3, 1 }
 0xb8f   :  { %5830 = vmatprep.subr.bf16.mxu1 %v7401_v10  ;;  %5857 = vmatprep.subr.bf16.mxu0 %v6342_v56 }
 0xb92   :  { %5832 = vmatpush1.bf16.msra.mxu1 %v7405_v35  ;;  %5859 = vmatpush3.bf16.msra.mxu0 %v7408_v11 }
 0xb93   :  { %5834 = vmatprep.subr.bf16.mxu1 %v7411_v19  ;;  %5860 = vmatprep.subr.bf16.mxu0 %v6342_v56 }
 0xb96   :  { %5836 = vmatpush1.bf16.msra.mxu1 %v7415_v50  ;;  %5862 = vmatpush3.bf16.msra.mxu0 %v7418_v31 }
 0xb97   :  { %5838 = vmatprep.subr.bf16.mxu1 %v7421_v6  ;;  %5863 = vmatprep.subr.bf16.mxu0 %v6342_v56 }
 0xb9a   :  { %5840 = vmatpush1.bf16.msra.mxu1 %v7425_v25  ;;  %5865 = vmatpush3.bf16.msra.mxu0 %v7428_v30 }
 0xb9b   :  { %5842 = vmatprep.subr.bf16.mxu1 %v7431_v32  ;;  %5866 = vmatprep.subr.bf16.mxu0 %v6342_v56  ;;  %v2980_v32 = vrot.slane %v2960_v3, 2 }
 0xb9e   :  { %5844 = vmatpush1.bf16.msra.mxu1 %v7435_v23  ;;  %5868 = vmatpush3.bf16.msra.mxu0 %v7438_v33 }
 0xb9f   :  { %5901 = vmatprep.subr.bf16.mxu0 %v6342_v56 }
 0xc54   :  { %v2884_v38 = vpop.f32.mrb[26].mxu1  ;;  %v2955_v39 = vpop.f32.mrb[24].mxu0 }
 0xc55   :  { %v2961_v14 = vadd.f32 %v2960_v3, %v2884_v38  ;;  %v2886_v46 = vpop.f32.mrb[27].mxu1  ;;  %v4913_v58 = vpop.f32.mrb[25].mxu0  ;;  %v2978_v25 = vadd.f32 %v2955_v39, %v7495_v48  ;;  %v7637_v3 = vpack.c.bf16 %v3242_v2, %v3239_v62  ;;  %v3241_v38 = vld [vmem:[#allocation9 + $0x108] sm:$0xff]  ;;  %v3240_v39 = vld [vmem:[#allocation9 + $0x100] sm:$0xff] }
 0xc56   :  { %v2971_v35 = vadd.f32 %v2969_v63, %v2886_v46  ;;  %v3245_v58 = vld [vmem:[#allocation9 + $0x128] sm:$0xff]  ;;  %v3248_v63 = vld [vmem:[#allocation9 + $0x140] sm:$0xff] }
 0xc57   :  { %v4113_v10 = vmul.f32 -1.442695, %v2961_v14  ;;  %v3243_v14 = vld [vmem:[#allocation9 + $0x118] sm:$0xff] }
 0xc58   :  { %v4114_v11 = vmul.f32 -1.442695, %v2971_v35  ;;  %v7640_v46 = vpack.c.bf16 %v3243_v14, %v3240_v39  ;;  %v3249_v35 = vld [vmem:[#allocation9 + $0x148] sm:$0xff]  ;;  %v3435_v14 = vld [vmem:[#allocation9 + $0x40] sm:$0xff] }
 0xc59   :  { %6203 = vpow2.f32 %v4113_v10  ;;  %v3246_v10 = vld [vmem:[#allocation9 + $0x130] sm:$0xff] }
 0xc5a   :  { %6205 = vpow2.f32 %v4114_v11 }
 0xc63   :  { %v6204_v19 = vpop.eup %6203 }
 0xc64   :  { %v2965_v50 = vadd.f32 1.0, %v6204_v19  ;;  %v6206_v31 = vpop.eup %6205  ;;  %v7647_v19 = vpack.c.bf16 %v3248_v63, %v3245_v58  ;;  %v3438_v58 = vld [vmem:[#allocation9 + $0x58] sm:$0xff] }
 0xc65   :  { %v2975_v6 = vadd.f32 1.0, %v6206_v31  ;;  %v3247_v31 = vld [vmem:[#allocation9 + $0x138] sm:$0xff]  ;;  %v7704_v63 = vpack.c.bf16 %v3438_v58, %v3435_v14 }
 0xc66   :  { %6207 = vrcp.f32 %v2965_v50  ;;  %v3244_v50 = vld [vmem:[#allocation9 + $0x120] sm:$0xff] }
 0xc67   :  { %6209 = vrcp.f32 %v2975_v6  ;;  %v7650_v6 = vpack.c.bf16 %v3249_v35, %v3246_v10  ;;  %v3441_v10 = vld [vmem:[#allocation9 + $0x70] sm:$0xff]  ;;  %v3444_v35 = vld [vmem:[#allocation9 + $0x88] sm:$0xff] }
 0xc70   :  { %v6208_v30 = vpop.eup %6207 }
 0xc71   :  { %v2979_v23 = vmul.f32 %v6208_v30, %v2978_v25  ;;  %v6210_v24 = vpop.eup %6209  ;;  %v3251_v25 = vld [vmem:[#allocation9 + $0x158] sm:$0xff]  ;;  %v3254_v30 = vld [vmem:[#allocation9 + $0x170] sm:$0xff] }
 0xc72   :  { %v2984_v28 = vsub.f32 1.0, %v6210_v24  ;;  %v2986_v52 = vmul.f32 %v6210_v24, %v7543_v4  ;;  %v3238_v4 = vld [vmem:[#allocation9 + $0xf0] sm:$0xff]  ;;  %v7657_v24 = vpack.c.bf16 %v3254_v30, %v3251_v25  ;;  %v3450_v25 = vld [vmem:[#allocation9 + $0xb8] sm:$0xff] }
 0xc73   :  { %v2982_v33 = vadd.f32 %v2980_v32, %v2979_v23  ;;  %v7644_v11 = vpack.c.bf16 %v3241_v38, %v3238_v4  ;;  %v3252_v32 = vld [vmem:[#allocation9 + $0x160] sm:$0xff]  ;;  %v3255_v23 = vld [vmem:[#allocation9 + $0x178] sm:$0xff]  ;;  %v3432_v38 = vld [vmem:[#allocation9 + $0x28] sm:$0xff] }
 0xc75   :  { %6211 = vtanh.f32 %v2982_v33  ;;  %v7654_v33 = vpack.c.bf16 %v3247_v31, %v3244_v50  ;;  %v7708_v50 = vpack.c.bf16 %v3444_v35, %v3441_v10  ;;  %v3447_v31 = vld [vmem:[#allocation9 + $0xa0] sm:$0xff] }
 0xc76   :  { %v7712_v30 = vpack.c.bf16 %v3450_v25, %v3447_v31 }
 0xc7f   :  { %v6212_v61 = vpop.eup %6211 }
 0xc80   :  { %v2985_v51 = vmul.f32 %v6212_v61, %v2984_v28  ;;  %v3250_v28 = vld [vmem:[#allocation9 + $0x150] sm:$0xff]  ;;  %v3253_v61 = vld [vmem:[#allocation9 + $0x168] sm:$0xff] }
 0xc82   :  { %v7587_v12 = vadd.f32 %v2986_v52, %v2985_v51  ;;  %v7660_v51 = vpack.c.bf16 %v3255_v23, %v3252_v32  ;;  %v7664_v52 = vpack.c.bf16 %v3253_v61, %v3250_v28  ;;  %v3398_v32 = vld [vmem:[#allocation4 + $0x4] ss:$8 sm:$0x7] }
 0xc84   :  { %2988 = vst [vmem:[%s7832_s11 + $0x2] sm:$0x1] %v7587_v12  ;;  %3102 = vmatmul.mubr.f32.vlgmr.msra.gmra.mrb[28].mxu1 %v7587_v12  ;;  %4947 = vmatmul.mubr.f32.vlgmr.msra.gmra.mrb[26].mxu0 %v7587_v12 }
 0xc85   :  { %5903 = vmatpush3.bf16.msra.mxu0 %v7367_v29  ;;  %3320 = vmatprep.mubr.f32.mxu1 %v6341_v0  ;;  %v3209_v29 = vld [vmem:[#allocation9 + $0x8] sm:$0xff] }
 0xc86   :  { %5904 = vmatprep.subr.bf16.mxu0 %v6342_v56  ;;  %4981 = vmatprep.mubr.msk.f32.mxu0 %vm6343_vm1, %v6341_v0  ;;  %v7606_v16 = vpack.c.bf16 %v3212_v15, %v3209_v29  ;;  %v3179_v29 = vld [vmem:[#allocation4 + $0x3] ss:$8 sm:$0x7] }
 0xc87   :  { %v3199_v27 = vrot.slane %v3179_v29, 2 }
 0xc88   :  { %5870 = vmatprep.subr.bf16.mxu1 %v7606_v16 }
 0xc89   :  { %5906 = vmatpush3.bf16.msra.mxu0 %v7375_v9  ;;  %5872 = vmatpush1.bf16.msra.mxu1 %v7608_v21  ;;  %v3215_v9 = vld [vmem:[#allocation9 + $0x38] sm:$0xff] }
 0xc8a   :  { %5907 = vmatprep.subr.bf16.mxu0 %v6342_v56 }
 0xc8d   :  { %5909 = vmatpush3.bf16.msra.mxu0 %v7388_v55  ;;  %v3218_v55 = vld [vmem:[#allocation9 + $0x50] sm:$0xff] }
 0xc8e   :  { %5910 = vmatprep.subr.bf16.mxu0 %v6342_v56  ;;  %v7612_v42 = vpack.c.bf16 %v3218_v55, %v3215_v9 }
 0xc90   :  { %5874 = vmatprep.subr.bf16.mxu1 %v7612_v42 }
 0xc91   :  { %5912 = vmatpush3.bf16.msra.mxu0 %v7398_v7  ;;  %v3217_v7 = vld [vmem:[#allocation9 + $0x48] sm:$0xff] }
 0xc92   :  { %5913 = vmatprep.subr.bf16.mxu0 %v6342_v56  ;;  %v7614_v49 = vpack.c.bf16 %v3217_v7, %v3214_v44  ;;  %v3188_v44 = vrot.slane %v3179_v29, 1 }
 0xc94   :  { %5876 = vmatpush1.bf16.msra.mxu1 %v7614_v49 }
 0xc95   :  { %5878 = vmatprep.subr.bf16.mxu1 %v7618_v22  ;;  %5915 = vmatpush3.bf16.msra.mxu0 %v7634_v59 }
 0xc96   :  { %5916 = vmatprep.subr.bf16.mxu0 %v6342_v56 }
 0xc98   :  { %5880 = vmatpush1.bf16.msra.mxu1 %v7620_v41 }
 0xc99   :  { %5882 = vmatprep.subr.bf16.mxu1 %v7624_v40  ;;  %5918 = vmatpush3.bf16.msra.mxu0 %v7640_v46 }
 0xc9a   :  { %5919 = vmatprep.subr.bf16.mxu0 %v6342_v56 }
 0xc9c   :  { %5884 = vmatpush1.bf16.msra.mxu1 %v7626_v57 }
 0xc9d   :  { %5886 = vmatprep.subr.bf16.mxu1 %v7629_v60  ;;  %5921 = vmatpush3.bf16.msra.mxu0 %v7650_v6 }
 0xc9e   :  { %5922 = vmatprep.subr.bf16.mxu0 %v6342_v56 }
 0xca0   :  { %5888 = vmatpush1.bf16.msra.mxu1 %v7632_v45 }
 0xca1   :  { %5890 = vmatprep.subr.bf16.mxu1 %v7637_v3  ;;  %5924 = vmatpush3.bf16.msra.mxu0 %v7660_v51 }
 0xca2   :  { %5957 = vmatprep.subr.bf16.mxu0 %v6342_v56 }
 0xca4   :  { %5892 = vmatpush1.bf16.msra.mxu1 %v7644_v11 }
 0xca5   :  { %5894 = vmatprep.subr.bf16.mxu1 %v7647_v19 }
 0xca8   :  { %5896 = vmatpush1.bf16.msra.mxu1 %v7654_v33 }
 0xca9   :  { %5898 = vmatprep.subr.bf16.mxu1 %v7657_v24 }
 0xcac   :  { %5900 = vmatpush1.bf16.msra.mxu1 %v7664_v52 }
 0xcad   :  { %5926 = vmatprep.subr.bf16.mxu1 %v7606_v16 }
 0xd57   :  { %v3103_v15 = vpop.f32.mrb[28].mxu1  ;;  %v3174_v18 = vpop.f32.mrb[26].mxu0 }
 0xd58   :  { %v3180_v20 = vadd.f32 %v3179_v29, %v3103_v15  ;;  %v3105_v9 = vpop.f32.mrb[29].mxu1  ;;  %v4948_v55 = vpop.f32.mrb[27].mxu0  ;;  %v3197_v47 = vadd.f32 %v3174_v18, %v7495_v48  ;;  %v3407_v18 = vrot.slane %v3398_v32, 1 }
 0xd59   :  { %v3190_v5 = vadd.f32 %v3188_v44, %v3105_v9 }
 0xd5a   :  { %v4115_v7 = vmul.f32 -1.442695, %v3180_v20 }
 0xd5b   :  { %v4116_v17 = vmul.f32 -1.442695, %v3190_v5 }
 0xd5c   :  { %6213 = vpow2.f32 %v4115_v7 }
 0xd5d   :  { %6215 = vpow2.f32 %v4116_v17 }
 0xd66   :  { %v6214_v26 = vpop.eup %6213 }
 0xd67   :  { %v3184_v37 = vadd.f32 1.0, %v6214_v26  ;;  %v6216_v34 = vpop.eup %6215 }
 0xd68   :  { %v3194_v13 = vadd.f32 1.0, %v6216_v34  ;;  %v3418_v34 = vrot.slane %v3398_v32, 2 }
 0xd69   :  { %6217 = vrcp.f32 %v3184_v37 }
 0xd6a   :  { %6219 = vrcp.f32 %v3194_v13 }
 0xd73   :  { %v6218_v43 = vpop.eup %6217 }
 0xd74   :  { %v3198_v1 = vmul.f32 %v6218_v43, %v3197_v47  ;;  %v6220_v53 = vpop.eup %6219 }
 0xd75   :  { %v3203_v36 = vsub.f32 1.0, %v6220_v53  ;;  %v3205_v2 = vmul.f32 %v6220_v53, %v7587_v12  ;;  %v3429_v12 = vld [vmem:[#allocation9 + $0x10] sm:$0xff] }
 0xd76   :  { %v3201_v54 = vadd.f32 %v3199_v27, %v3198_v1  ;;  %v7700_v39 = vpack.c.bf16 %v3432_v38, %v3429_v12 }
 0xd78   :  { %6221 = vtanh.f32 %v3201_v54 }
 0xd82   :  { %v6222_v8 = vpop.eup %6221 }
 0xd83   :  { %v3204_v62 = vmul.f32 %v6222_v8, %v3203_v36  ;;  %v3617_v8 = vld [vmem:[#allocation4 + $0x5] ss:$8 sm:$0x7] }
 0xd84   :  { %v3626_v14 = vrot.slane %v3617_v8, 1 }
 0xd85   :  { %v7673_v4 = vadd.f32 %v3205_v2, %v3204_v62 }
 0xd87   :  { %3207 = vst [vmem:[%s7832_s11 + $0x3] sm:$0x1] %v7673_v4  ;;  %3321 = vmatmul.mubr.f32.vlgmr.msra.gmra.mrb[30].mxu1 %v7673_v4  ;;  %4982 = vmatmul.mubr.f32.vlgmr.msra.gmra.mrb[28].mxu0 %v7673_v4 }
 0xd88   :  { %5928 = vmatpush1.bf16.msra.mxu1 %v7608_v21  ;;  %3539 = vmatprep.mubr.f32.mxu1 %v6341_v0 }
 0xd89   :  { %5930 = vmatprep.subr.bf16.mxu1 %v7612_v42  ;;  %5016 = vmatprep.mubr.msk.f32.mxu0 %vm6343_vm1, %v6341_v0 }
 0xd8a   :  { %5959 = vmatpush3.bf16.msra.mxu0 %v7700_v39 }
 0xd8b   :  { %5960 = vmatprep.subr.bf16.mxu0 %v6342_v56 }
 0xd8c   :  { %5932 = vmatpush1.bf16.msra.mxu1 %v7614_v49 }
 0xd8d   :  { %5934 = vmatprep.subr.bf16.mxu1 %v7618_v22 }
 0xd8e   :  { %5962 = vmatpush3.bf16.msra.mxu0 %v7704_v63 }
 0xd8f   :  { %5963 = vmatprep.subr.bf16.mxu0 %v6342_v56 }
 0xd90   :  { %5936 = vmatpush1.bf16.msra.mxu1 %v7620_v41 }
 0xd91   :  { %5938 = vmatprep.subr.bf16.mxu1 %v7624_v40 }
 0xd92   :  { %5965 = vmatpush3.bf16.msra.mxu0 %v7708_v50 }
 0xd93   :  { %5966 = vmatprep.subr.bf16.mxu0 %v6342_v56 }
 0xd94   :  { %5940 = vmatpush1.bf16.msra.mxu1 %v7626_v57 }
 0xd95   :  { %5942 = vmatprep.subr.bf16.mxu1 %v7629_v60 }
 0xd96   :  { %5968 = vmatpush3.bf16.msra.mxu0 %v7712_v30 }
 0xd97   :  { %5969 = vmatprep.subr.bf16.mxu0 %v6342_v56 }
 0xd98   :  { %5944 = vmatpush1.bf16.msra.mxu1 %v7632_v45 }
 0xd99   :  { %5946 = vmatprep.subr.bf16.mxu1 %v7637_v3 }
 0xd9a   :  { %5971 = vmatpush3.bf16.msra.mxu0 %v7634_v59 }
 0xd9b   :  { %5972 = vmatprep.subr.bf16.mxu0 %v6342_v56 }
 0xd9c   :  { %5948 = vmatpush1.bf16.msra.mxu1 %v7644_v11 }
 0xd9d   :  { %5950 = vmatprep.subr.bf16.mxu1 %v7647_v19 }
 0xd9e   :  { %5974 = vmatpush3.bf16.msra.mxu0 %v7640_v46 }
 0xd9f   :  { %5975 = vmatprep.subr.bf16.mxu0 %v6342_v56 }
 0xda0   :  { %5952 = vmatpush1.bf16.msra.mxu1 %v7654_v33 }
 0xda1   :  { %5954 = vmatprep.subr.bf16.mxu1 %v7657_v24 }
 0xda2   :  { %5977 = vmatpush3.bf16.msra.mxu0 %v7650_v6 }
 0xda3   :  { %5978 = vmatprep.subr.bf16.mxu0 %v6342_v56 }
 0xda4   :  { %5956 = vmatpush1.bf16.msra.mxu1 %v7664_v52 }
 0xda5   :  { %5982 = vmatprep.subr.bf16.mxu1 %v7606_v16 }
 0xda6   :  { %5980 = vmatpush3.bf16.msra.mxu0 %v7660_v51 }
 0xda7   :  { %6013 = vmatprep.subr.bf16.mxu0 %v6342_v56 }
 0xe5a   :  { %v3322_v23 = vpop.f32.mrb[30].mxu1  ;;  %v3393_v28 = vpop.f32.mrb[28].mxu0 }
 0xe5b   :  { %v3399_v61 = vadd.f32 %v3398_v32, %v3322_v23  ;;  %v3324_v29 = vpop.f32.mrb[31].mxu1  ;;  %v4983_v15 = vpop.f32.mrb[29].mxu0  ;;  %v3416_v26 = vadd.f32 %v3393_v28, %v7495_v48 }
 0xe5c   :  { %v3409_v9 = vadd.f32 %v3407_v18, %v3324_v29 }
 0xe5d   :  { %v4117_v20 = vmul.f32 -1.442695, %v3399_v61  ;;  %v3637_v61 = vrot.slane %v3617_v8, 2 }
 0xe5e   :  { %v4118_v55 = vmul.f32 -1.442695, %v3409_v9 }
 0xe5f   :  { %6223 = vpow2.f32 %v4117_v20 }
 0xe60   :  { %6225 = vpow2.f32 %v4118_v55 }
 0xe69   :  { %v6224_v44 = vpop.eup %6223 }
 0xe6a   :  { %v3403_v7 = vadd.f32 1.0, %v6224_v44  ;;  %v6226_v5 = vpop.eup %6225 }
 0xe6b   :  { %v3413_v17 = vadd.f32 1.0, %v6226_v5  ;;  %v4055_v5 = vld [vmem:[#allocation4 + $0x7] ss:$8 sm:$0x7] }
 0xe6c   :  { %6227 = vrcp.f32 %v3403_v7 }
 0xe6d   :  { %6229 = vrcp.f32 %v3413_v17 }
 0xe76   :  { %v6228_v37 = vpop.eup %6227 }
 0xe77   :  { %v3417_v13 = vmul.f32 %v6228_v37, %v3416_v26  ;;  %v6230_v43 = vpop.eup %6229 }
 0xe78   :  { %v3422_v27 = vsub.f32 1.0, %v6230_v43  ;;  %v3424_v53 = vmul.f32 %v6230_v43, %v7673_v4 }
 0xe79   :  { %v3420_v47 = vadd.f32 %v3418_v34, %v3417_v13 }
 0xe7b   :  { %6231 = vtanh.f32 %v3420_v47  ;;  %v4064_v47 = vrot.slane %v4055_v5, 1 }
 0xe85   :  { %v6232_v1 = vpop.eup %6231 }
 0xe86   :  { %v3423_v54 = vmul.f32 %v6232_v1, %v3422_v27 }
 0xe88   :  { %v7726_v36 = vadd.f32 %v3424_v53, %v3423_v54 }
 0xe8a   :  { %3426 = vst [vmem:[%s7832_s11 + $0x4] sm:$0x1] %v7726_v36  ;;  %3540 = vmatmul.mubr.f32.vlgmr.msra.gmra.mrb[32].mxu1 %v7726_v36  ;;  %5017 = vmatmul.mubr.f32.vlgmr.msra.gmra.mrb[30].mxu0 %v7726_v36 }
 0xe8b   :  { %5984 = vmatpush1.bf16.msra.mxu1 %v7608_v21  ;;  %6015 = vmatpush3.bf16.msra.mxu0 %v7700_v39 }
 0xe8c   :  { %5986 = vmatprep.subr.bf16.mxu1 %v7612_v42  ;;  %6016 = vmatprep.subr.bf16.mxu0 %v6342_v56 }
 0xe8d   :  { %3758 = vmatprep.mubr.f32.mxu1 %v6341_v0  ;;  %5051 = vmatprep.mubr.msk.f32.mxu0 %vm6343_vm1, %v6341_v0 }
 0xe8f   :  { %5988 = vmatpush1.bf16.msra.mxu1 %v7614_v49  ;;  %6018 = vmatpush3.bf16.msra.mxu0 %v7704_v63 }
 0xe90   :  { %5990 = vmatprep.subr.bf16.mxu1 %v7618_v22  ;;  %6019 = vmatprep.subr.bf16.mxu0 %v6342_v56 }
 0xe93   :  { %5992 = vmatpush1.bf16.msra.mxu1 %v7620_v41  ;;  %6021 = vmatpush3.bf16.msra.mxu0 %v7708_v50 }
 0xe94   :  { %5994 = vmatprep.subr.bf16.mxu1 %v7624_v40  ;;  %6022 = vmatprep.subr.bf16.mxu0 %v6342_v56 }
 0xe97   :  { %5996 = vmatpush1.bf16.msra.mxu1 %v7626_v57  ;;  %6024 = vmatpush3.bf16.msra.mxu0 %v7712_v30 }
 0xe98   :  { %5998 = vmatprep.subr.bf16.mxu1 %v7629_v60  ;;  %6025 = vmatprep.subr.bf16.mxu0 %v6342_v56 }
 0xe9b   :  { %6000 = vmatpush1.bf16.msra.mxu1 %v7632_v45  ;;  %6027 = vmatpush3.bf16.msra.mxu0 %v7634_v59 }
 0xe9c   :  { %6002 = vmatprep.subr.bf16.mxu1 %v7637_v3  ;;  %6028 = vmatprep.subr.bf16.mxu0 %v6342_v56 }
 0xe9f   :  { %6004 = vmatpush1.bf16.msra.mxu1 %v7644_v11  ;;  %6030 = vmatpush3.bf16.msra.mxu0 %v7640_v46 }
 0xea0   :  { %6006 = vmatprep.subr.bf16.mxu1 %v7647_v19  ;;  %6031 = vmatprep.subr.bf16.mxu0 %v6342_v56 }
 0xea3   :  { %6008 = vmatpush1.bf16.msra.mxu1 %v7654_v33  ;;  %6033 = vmatpush3.bf16.msra.mxu0 %v7650_v6 }
 0xea4   :  { %6010 = vmatprep.subr.bf16.mxu1 %v7657_v24  ;;  %6034 = vmatprep.subr.bf16.mxu0 %v6342_v56 }
 0xea7   :  { %6012 = vmatpush1.bf16.msra.mxu1 %v7664_v52  ;;  %6036 = vmatpush3.bf16.msra.mxu0 %v7660_v51 }
 0xea8   :  { %6038 = vmatprep.subr.bf16.mxu1 %v7606_v16  ;;  %6069 = vmatprep.subr.bf16.mxu0 %v6342_v56 }
 0xf5d   :  { %v3541_v62 = vpop.f32.mrb[32].mxu1  ;;  %v3612_v2 = vpop.f32.mrb[30].mxu0 }
 0xf5e   :  { %v3618_v4 = vadd.f32 %v3617_v8, %v3541_v62  ;;  %v3543_v12 = vpop.f32.mrb[33].mxu1  ;;  %v5018_v38 = vpop.f32.mrb[31].mxu0  ;;  %v3635_v16 = vadd.f32 %v3612_v2, %v7495_v48 }
 0xf5f   :  { %v3628_v10 = vadd.f32 %v3626_v14, %v3543_v12 }
 0xf60   :  { %v4119_v58 = vmul.f32 -1.442695, %v3618_v4  ;;  %v4075_v4 = vrot.slane %v4055_v5, 2 }
 0xf61   :  { %v4120_v35 = vmul.f32 -1.442695, %v3628_v10 }
 0xf62   :  { %6233 = vpow2.f32 %v4119_v58 }
 0xf63   :  { %6235 = vpow2.f32 %v4120_v35 }
 0xf6c   :  { %v6234_v31 = vpop.eup %6233 }
 0xf6d   :  { %v3622_v25 = vadd.f32 1.0, %v6234_v31  ;;  %v6236_v32 = vpop.eup %6235 }
 0xf6e   :  { %v3632_v23 = vadd.f32 1.0, %v6236_v32 }
 0xf6f   :  { %6237 = vrcp.f32 %v3622_v25 }
 0xf70   :  { %6239 = vrcp.f32 %v3632_v23 }
 0xf79   :  { %v6238_v28 = vpop.eup %6237 }
 0xf7a   :  { %v3636_v29 = vmul.f32 %v6238_v28, %v3635_v16  ;;  %v6240_v18 = vpop.eup %6239 }
 0xf7b   :  { %v3641_v20 = vsub.f32 1.0, %v6240_v18  ;;  %v3643_v44 = vmul.f32 %v6240_v18, %v7726_v36 }
 0xf7c   :  { %v3639_v15 = vadd.f32 %v3637_v61, %v3636_v29 }
 0xf7e   :  { %6241 = vtanh.f32 %v3639_v15 }
 0xf88   :  { %v6242_v9 = vpop.eup %6241 }
 0xf89   :  { %v3642_v55 = vmul.f32 %v6242_v9, %v3641_v20 }
 0xf8b   :  { %v7771_v7 = vadd.f32 %v3643_v44, %v3642_v55 }
 0xf8d   :  { %3645 = vst [vmem:[%s7832_s11 + $0x5] sm:$0x1] %v7771_v7  ;;  %3759 = vmatmul.mubr.f32.vlgmr.msra.gmra.mrb[34].mxu1 %v7771_v7  ;;  %5052 = vmatmul.mubr.f32.vlgmr.msra.gmra.mrb[32].mxu0 %v7771_v7 }
 0xf8e   :  { %6040 = vmatpush1.bf16.msra.mxu1 %v7608_v21  ;;  %6071 = vmatpush3.bf16.msra.mxu0 %v7700_v39 }
 0xf8f   :  { %6042 = vmatprep.subr.bf16.mxu1 %v7612_v42  ;;  %6072 = vmatprep.subr.bf16.mxu0 %v6342_v56 }
 0xf90   :  { %3977 = vmatprep.mubr.f32.mxu1 %v6341_v0  ;;  %5086 = vmatprep.mubr.msk.f32.mxu0 %vm6343_vm1, %v6341_v0  ;;  %v3836_v0 = vld [vmem:[#allocation4 + $0x6] ss:$8 sm:$0x7] }
 0xf92   :  { %6044 = vmatpush1.bf16.msra.mxu1 %v7614_v49  ;;  %6074 = vmatpush3.bf16.msra.mxu0 %v7704_v63 }
 0xf93   :  { %6046 = vmatprep.subr.bf16.mxu1 %v7618_v22  ;;  %6075 = vmatprep.subr.bf16.mxu0 %v6342_v56 }
 0xf96   :  { %6048 = vmatpush1.bf16.msra.mxu1 %v7620_v41  ;;  %6077 = vmatpush3.bf16.msra.mxu0 %v7708_v50 }
 0xf97   :  { %6050 = vmatprep.subr.bf16.mxu1 %v7624_v40  ;;  %6078 = vmatprep.subr.bf16.mxu0 %v6342_v56  ;;  %v3845_v40 = vrot.slane %v3836_v0, 1 }
 0xf9a   :  { %6052 = vmatpush1.bf16.msra.mxu1 %v7626_v57  ;;  %6080 = vmatpush3.bf16.msra.mxu0 %v7712_v30 }
 0xf9b   :  { %6054 = vmatprep.subr.bf16.mxu1 %v7629_v60  ;;  %6081 = vmatprep.subr.bf16.mxu0 %v6342_v56 }
 0xf9e   :  { %6056 = vmatpush1.bf16.msra.mxu1 %v7632_v45  ;;  %6083 = vmatpush3.bf16.msra.mxu0 %v7634_v59 }
 0xf9f   :  { %6058 = vmatprep.subr.bf16.mxu1 %v7637_v3  ;;  %6084 = vmatprep.subr.bf16.mxu0 %v6342_v56 }
 0xfa2   :  { %6060 = vmatpush1.bf16.msra.mxu1 %v7644_v11  ;;  %6086 = vmatpush3.bf16.msra.mxu0 %v7640_v46 }
 0xfa3   :  { %6062 = vmatprep.subr.bf16.mxu1 %v7647_v19  ;;  %6087 = vmatprep.subr.bf16.mxu0 %v6342_v56 }
 0xfa6   :  { %6064 = vmatpush1.bf16.msra.mxu1 %v7654_v33  ;;  %6089 = vmatpush3.bf16.msra.mxu0 %v7650_v6  ;;  %v3856_v6 = vrot.slane %v3836_v0, 2 }
 0xfa7   :  { %6066 = vmatprep.subr.bf16.mxu1 %v7657_v24  ;;  %6090 = vmatprep.subr.bf16.mxu0 %v6342_v56 }
 0xfaa   :  { %6068 = vmatpush1.bf16.msra.mxu1 %v7664_v52  ;;  %6092 = vmatpush3.bf16.msra.mxu0 %v7660_v51 }
0x1060   :  { %v3760_v21 = vpop.f32.mrb[34].mxu1  ;;  %v3831_v42 = vpop.f32.mrb[32].mxu0 }
0x1061   :  { %v3837_v49 = vadd.f32 %v3836_v0, %v3760_v21  ;;  %v3762_v22 = vpop.f32.mrb[35].mxu1  ;;  %v5053_v41 = vpop.f32.mrb[33].mxu0  ;;  %v3854_v11 = vadd.f32 %v3831_v42, %v7495_v48 }
0x1062   :  { %v3847_v60 = vadd.f32 %v3845_v40, %v3762_v22 }
0x1063   :  { %v4121_v57 = vmul.f32 -1.442695, %v3837_v49 }
0x1064   :  { %v4122_v45 = vmul.f32 -1.442695, %v3847_v60 }
0x1065   :  { %6243 = vpow2.f32 %v4121_v57 }
0x1066   :  { %6245 = vpow2.f32 %v4122_v45 }
0x106f   :  { %v6244_v59 = vpop.eup %6243 }
0x1070   :  { %v3841_v3 = vadd.f32 1.0, %v6244_v59  ;;  %v6246_v56 = vpop.eup %6245 }
0x1071   :  { %v3851_v46 = vadd.f32 1.0, %v6246_v56 }
0x1072   :  { %6247 = vrcp.f32 %v3841_v3 }
0x1073   :  { %6249 = vrcp.f32 %v3851_v46 }
0x107c   :  { %v6248_v19 = vpop.eup %6247 }
0x107d   :  { %v3855_v33 = vmul.f32 %v6248_v19, %v3854_v11  ;;  %v6250_v51 = vpop.eup %6249 }
0x107e   :  { %v3860_v52 = vsub.f32 1.0, %v6250_v51  ;;  %v3862_v50 = vmul.f32 %v6250_v51, %v7771_v7 }
0x107f   :  { %v3858_v24 = vadd.f32 %v3856_v6, %v3855_v33 }
0x1081   :  { %6251 = vtanh.f32 %v3858_v24 }
0x108b   :  { %v6252_v39 = vpop.eup %6251 }
0x108c   :  { %v3861_v63 = vmul.f32 %v6252_v39, %v3860_v52 }
0x108e   :  { %v3863_v30 = vadd.f32 %v3862_v50, %v3861_v63 }
0x1090   :  { %3864 = vst [vmem:[%s7832_s11 + $0x6] sm:$0x1] %v3863_v30  ;;  %3978 = vmatmul.mubr.f32.vlgmr.msra.gmra.mrb[36].mxu1 %v3863_v30  ;;  %5087 = vmatmul.mubr.f32.vlgmr.msra.gmra.mrb[34].mxu0 %v3863_v30 }
0x1163   :  { %v3979_v17 = vpop.f32.mrb[36].mxu1  ;;  %v4050_v26 = vpop.f32.mrb[34].mxu0 }
0x1164   :  { %v4056_v37 = vadd.f32 %v4055_v5, %v3979_v17  ;;  %v3981_v34 = vpop.f32.mrb[37].mxu1  ;;  %v5088_v13 = vpop.f32.mrb[35].mxu0  ;;  %v4073_v62 = vadd.f32 %v4050_v26, %v7495_v48 }
0x1165   :  { %v4066_v27 = vadd.f32 %v4064_v47, %v3981_v34 }
0x1166   :  { %v4123_v43 = vmul.f32 -1.442695, %v4056_v37 }
0x1167   :  { %v4124_v1 = vmul.f32 -1.442695, %v4066_v27 }
0x1168   :  { %6253 = vpow2.f32 %v4123_v43 }
0x1169   :  { %6255 = vpow2.f32 %v4124_v1 }
0x1172   :  { %v6254_v54 = vpop.eup %6253 }
0x1173   :  { %v4060_v53 = vadd.f32 1.0, %v6254_v54  ;;  %v6256_v36 = vpop.eup %6255 }
0x1174   :  { %v4070_v8 = vadd.f32 1.0, %v6256_v36 }
0x1175   :  { %6257 = vrcp.f32 %v4060_v53 }
0x1176   :  { %6259 = vrcp.f32 %v4070_v8 }
0x117f   :  { %v6258_v2 = vpop.eup %6257 }
0x1180   :  { %v4074_v12 = vmul.f32 %v6258_v2, %v4073_v62  ;;  %v6260_v14 = vpop.eup %6259 }
0x1181   :  { %v4079_v58 = vsub.f32 1.0, %v6260_v14  ;;  %v4081_v31 = vmul.f32 %v6260_v14, %v3863_v30 }
0x1182   :  { %v4077_v38 = vadd.f32 %v4075_v4, %v4074_v12 }
0x1184   :  { %6261 = vtanh.f32 %v4077_v38 }
0x118e   :  { %v6262_v10 = vpop.eup %6261 }
0x118f   :  { %v4080_v35 = vmul.f32 %v6262_v10, %v4079_v58 }
0x1191   :  { %v4082_v25 = vadd.f32 %v4081_v31, %v4080_v35 }
0x1193   :  { %4083 = vst [vmem:[%s7832_s11 + $0x7] sm:$0x1] %v4082_v25 }
0x1194   :  { %4088 = vsyncpa [#allocation6], 1 }
0x1195   :  { %4089 = vsyncpa [#allocation8], 1 }

</bundles_post_ra>
